<compile_context>
chip_gen: v5e
topology: v5e:2x2
jax: 0.10.0
libtpu: 0.0.40
codegen_flags: <defaults>
</compile_context>

<pallas_src>
import functools

import jax
import jax.numpy as jnp
from jax import lax
from jax.experimental import pallas as pl
from jax.experimental.pallas import tpu as pltpu

NUM_WORDS = 8          # sequence length (sublane-aligned; module example uses 2)
WORD_WIDTH = 512       # hidden width (fixed by the module)
PROJ_WIDTH = 64        # per-head projection width
NUM_HEADS = 8
FFN_WIDTH = 2048
LN_EPS = 1e-5          # nn.LayerNorm default
LEAKY_SLOPE = 0.01     # nn.LeakyReLU default
INV_D = 1.0 / WORD_WIDTH


def _layer_norm_f32(x, gamma, beta):
    mean = jnp.sum(x, axis=-1, keepdims=True) * INV_D
    xc = x - mean
    var = jnp.sum(xc * xc, axis=-1, keepdims=True) * INV_D
    return xc * lax.rsqrt(var + LN_EPS) * gamma + beta


def encoder_kernel(x_ref, wq_ref, wk_ref, wv_ref, wof_ref,
                   w1_ref, b1_ref, w2_ref, b2_ref,
                   gamma_ref, beta_ref, out_ref,
                   ln1_ref, acc_ref):
    k = pl.program_id(0)

    # ---- step 0: self-attention (single shared head) + residual + LN1 ----
    @pl.when(k == 0)
    def _attention_and_ln1():
        x = x_ref[...]                                   # (N, D) f32
        x_bf = x.astype(jnp.bfloat16)
        q = jnp.dot(x_bf, wq_ref[...], preferred_element_type=jnp.float32) * 0.125
        kk = jnp.dot(x_bf, wk_ref[...], preferred_element_type=jnp.float32)
        v = jnp.dot(x_bf, wv_ref[...], preferred_element_type=jnp.float32)

        # scores (1/8 scale already folded into q); contract last dims, no .T
        s = lax.dot_general(q.astype(jnp.bfloat16), kk.astype(jnp.bfloat16),
                            (((1,), (1,)), ((), ())),
                            preferred_element_type=jnp.float32)      # (N, N)
        m = jnp.max(s, axis=-1, keepdims=True)
        e = jnp.exp(s - m)
        p = e * pl.reciprocal(jnp.sum(e, axis=-1, keepdims=True), approx=True)
        head = jnp.dot(p.astype(jnp.bfloat16), v.astype(jnp.bfloat16),
                       preferred_element_type=jnp.float32)           # (N, P)

        # concat of 8 identical heads @ W_O == head @ (sum of W_O row blocks)
        mh = jnp.dot(head.astype(jnp.bfloat16), wof_ref[...],
                     preferred_element_type=jnp.float32)             # (N, D)

        ln1_ref[...] = _layer_norm_f32(mh + x, gamma_ref[...], beta_ref[...])
        acc_ref[...] = jnp.zeros_like(acc_ref)

    # ---- every step: one FFN hidden chunk ----
    ln1_bf = ln1_ref[...].astype(jnp.bfloat16)
    h1 = jnp.dot(ln1_bf, w1_ref[...],
                 preferred_element_type=jnp.float32) + b1_ref[...]   # (N, C)
    h1 = jnp.maximum(h1, LEAKY_SLOPE * h1)                            # LeakyReLU
    acc_ref[...] += jnp.dot(h1.astype(jnp.bfloat16), w2_ref[...],
                            preferred_element_type=jnp.float32)       # (N, D)

    # ---- last step: bias2 + residual + LN2 + store ----
    @pl.when(k == pl.num_programs(0) - 1)
    def _finalize():
        ffn = acc_ref[...] + b2_ref[...]
        out_ref[...] = _layer_norm_f32(ffn + ln1_ref[...],
                                       gamma_ref[...], beta_ref[...])


def prepare_params(params):
    """One-time preprocessing: fold W_O's 8 row-blocks and pre-cast to bf16."""
    bf = jnp.bfloat16
    wo_folded = params["wo"].reshape(NUM_HEADS, PROJ_WIDTH, WORD_WIDTH).sum(axis=0)
    return dict(
        wq=params["wq"].astype(bf),
        wk=params["wk"].astype(bf),
        wv=params["wv"].astype(bf),
        wof=wo_folded.astype(bf),
        w1=params["w1"].astype(bf),
        b1=params["b1"],
        w2=params["w2"].astype(bf),
        b2=params["b2"],
        gamma=params["gamma"],
        beta=params["beta"],
    )


@functools.partial(jax.jit, static_argnames=("ffn_chunks",))
def encoder_forward(x, prepared, ffn_chunks=2):
    # ffn_chunks: 2 recommended on v6e/v7x, 4 on v5e (more DMA time to hide).
    n, d = x.shape
    assert d == WORD_WIDTH
    assert FFN_WIDTH % ffn_chunks == 0
    c = FFN_WIDTH // ffn_chunks

    grid_spec = pltpu.PrefetchScalarGridSpec(
        num_scalar_prefetch=0,
        grid=(ffn_chunks,),
        in_specs=[
            pl.BlockSpec((n, WORD_WIDTH), lambda k: (0, 0)),          # x
            pl.BlockSpec((WORD_WIDTH, PROJ_WIDTH), lambda k: (0, 0)),  # wq
            pl.BlockSpec((WORD_WIDTH, PROJ_WIDTH), lambda k: (0, 0)),  # wk
            pl.BlockSpec((WORD_WIDTH, PROJ_WIDTH), lambda k: (0, 0)),  # wv
            pl.BlockSpec((PROJ_WIDTH, WORD_WIDTH), lambda k: (0, 0)),  # wof
            pl.BlockSpec((WORD_WIDTH, c), lambda k: (0, k)),           # w1 chunk
            pl.BlockSpec((1, c), lambda k: (0, k)),                    # b1 chunk
            pl.BlockSpec((c, WORD_WIDTH), lambda k: (k, 0)),           # w2 chunk
            pl.BlockSpec((1, WORD_WIDTH), lambda k: (0, 0)),           # b2
            pl.BlockSpec((1, WORD_WIDTH), lambda k: (0, 0)),           # gamma
            pl.BlockSpec((1, WORD_WIDTH), lambda k: (0, 0)),           # beta
        ],
        out_specs=pl.BlockSpec((n, WORD_WIDTH), lambda k: (0, 0)),
        scratch_shapes=[
            pltpu.VMEM((n, WORD_WIDTH), jnp.float32),   # ln1 (resident)
            pltpu.VMEM((n, WORD_WIDTH), jnp.float32),   # ffn accumulator
        ],
    )

    return pl.pallas_call(
        encoder_kernel,
        out_shape=jax.ShapeDtypeStruct((n, WORD_WIDTH), jnp.float32),
        grid_spec=grid_spec,
        compiler_params=pltpu.CompilerParams(
            dimension_semantics=("arbitrary",),
            vmem_limit_bytes=32 * 1024 * 1024,
        ),
    )(x,
      prepared["wq"], prepared["wk"], prepared["wv"], prepared["wof"],
      prepared["w1"], prepared["b1"], prepared["w2"], prepared["b2"],
      prepared["gamma"], prepared["beta"])


def encoder_reference(x, p):
    """Module-faithful plain-JAX reference (f32, 8 explicit heads, full W_O)."""
    heads = []
    for _ in range(NUM_HEADS):
        q = x @ p["wq"]
        k = x @ p["wk"]
        v = x @ p["wv"]
        s = jax.nn.softmax((q @ k.T) / 8.0, axis=1)
        heads.append(s @ v)
    mh = jnp.concatenate(heads, axis=1) @ p["wo"]
    ln1 = _layer_norm_f32(mh + x, p["gamma"], p["beta"])
    h1 = ln1 @ p["w1"] + p["b1"]
    h1 = jnp.where(h1 > 0, h1, LEAKY_SLOPE * h1)
    ffn = h1 @ p["w2"] + p["b2"]
    return _layer_norm_f32(ffn + ln1, p["gamma"], p["beta"])


def make_params(key):
    ks = jax.random.split(key, 8)
    scale = 100.0
    # Shared W_Q / W_K / W_V (single copy each, as in the PyTorch module).
    wq = jax.random.normal(ks[0], (WORD_WIDTH, PROJ_WIDTH), jnp.float32) / scale
    wk = jax.random.normal(ks[1], (WORD_WIDTH, PROJ_WIDTH), jnp.float32) / scale
    wv = jax.random.normal(ks[2], (WORD_WIDTH, PROJ_WIDTH), jnp.float32) / scale
    wo = jax.random.normal(ks[3], (WORD_WIDTH, WORD_WIDTH), jnp.float32) / scale
    # nn.Linear-style uniform init, weights stored as [in, out].
    lim1 = 1.0 / (WORD_WIDTH ** 0.5)
    w1 = jax.random.uniform(ks[4], (WORD_WIDTH, FFN_WIDTH), jnp.float32, -lim1, lim1)
    b1 = jax.random.uniform(ks[5], (1, FFN_WIDTH), jnp.float32, -lim1, lim1)
    lim2 = 1.0 / (FFN_WIDTH ** 0.5)
    w2 = jax.random.uniform(ks[6], (FFN_WIDTH, WORD_WIDTH), jnp.float32, -lim2, lim2)
    b2 = jax.random.uniform(ks[7], (1, WORD_WIDTH), jnp.float32, -lim2, lim2)
    # nn.LayerNorm default init (same instance used for both norms).
    gamma = jnp.ones((1, WORD_WIDTH), jnp.float32)
    beta = jnp.zeros((1, WORD_WIDTH), jnp.float32)
    return dict(wq=wq, wk=wk, wv=wv, wo=wo,
                w1=w1, b1=b1, w2=w2, b2=b2, gamma=gamma, beta=beta)


if __name__ == "__main__":
    key = jax.random.PRNGKey(0)
    k_x, k_p = jax.random.split(key)
    x = jax.random.normal(k_x, (NUM_WORDS, WORD_WIDTH), jnp.float32)
    params = make_params(k_p)

    # One-time weight preprocessing (outside the hot path).
    prepared = jax.tree_util.tree_map(jax.block_until_ready,
                                      prepare_params(params))

    out = encoder_forward(x, prepared, ffn_chunks=2)
    out = jax.block_until_ready(out)

    ref = encoder_reference(x, params)
    assert out.shape == (NUM_WORDS, WORD_WIDTH)
    # Tolerance covers bf16 operand storage in the kernel vs. the f32 reference.
    assert jnp.allclose(out, ref, rtol=5e-2, atol=5e-2), "mismatch vs JAX reference"
    print("KERNEL_OK")
</pallas_src>

<mosaic_0001>
module attributes {stable_mosaic.version = 11 : i64} {
  func.func @encoder_kernel(%arg0: i32, %arg1: memref<8x512xf32, #tpu.memory_space<vmem>>, %arg2: memref<512x64xbf16, #tpu.memory_space<vmem>>, %arg3: memref<512x64xbf16, #tpu.memory_space<vmem>>, %arg4: memref<512x64xbf16, #tpu.memory_space<vmem>>, %arg5: memref<64x512xbf16, #tpu.memory_space<vmem>>, %arg6: memref<512x1024xbf16, #tpu.memory_space<vmem>>, %arg7: memref<1x1024xf32, #tpu.memory_space<vmem>>, %arg8: memref<1024x512xbf16, #tpu.memory_space<vmem>>, %arg9: memref<1x512xf32, #tpu.memory_space<vmem>>, %arg10: memref<1x512xf32, #tpu.memory_space<vmem>>, %arg11: memref<1x512xf32, #tpu.memory_space<vmem>>, %arg12: memref<8x512xf32, #tpu.memory_space<vmem>>, %arg13: memref<8x512xf32, #tpu.memory_space<vmem>>, %arg14: memref<8x512xf32, #tpu.memory_space<vmem>>) attributes {dimension_semantics = [#tpu.dimension_semantics<arbitrary>], iteration_bounds = array<i64: 2>, scalar_prefetch = 0 : i64, scratch_operands = 2 : i64, tpu.core_type = #tpu.core_type<tc>, window_params = [{pipeline_mode = #tpu.pipeline_mode<synchronous>, transform_indices = @transform_0, window_bounds = array<i64: 8, 512>}, {pipeline_mode = #tpu.pipeline_mode<synchronous>, transform_indices = @transform_1, window_bounds = array<i64: 512, 64>}, {pipeline_mode = #tpu.pipeline_mode<synchronous>, transform_indices = @transform_2, window_bounds = array<i64: 512, 64>}, {pipeline_mode = #tpu.pipeline_mode<synchronous>, transform_indices = @transform_3, window_bounds = array<i64: 512, 64>}, {pipeline_mode = #tpu.pipeline_mode<synchronous>, transform_indices = @transform_4, window_bounds = array<i64: 64, 512>}, {transform_indices = @transform_5, window_bounds = array<i64: 512, 1024>}, {transform_indices = @transform_6, window_bounds = array<i64: 1, 1024>}, {transform_indices = @transform_7, window_bounds = array<i64: 1024, 512>}, {pipeline_mode = #tpu.pipeline_mode<synchronous>, transform_indices = @transform_8, window_bounds = array<i64: 1, 512>}, {pipeline_mode = #tpu.pipeline_mode<synchronous>, transform_indices = @transform_9, window_bounds = array<i64: 1, 512>}, {pipeline_mode = #tpu.pipeline_mode<synchronous>, transform_indices = @transform_10, window_bounds = array<i64: 1, 512>}, {pipeline_mode = #tpu.pipeline_mode<synchronous>, transform_indices = @transform_11, window_bounds = array<i64: 8, 512>}]} {
    %c0_i32 = arith.constant 0 : i32
    %0 = arith.cmpi eq, %arg0, %c0_i32 : i32
    %1 = arith.extui %0 : i1 to i32
    %c0_i32_0 = arith.constant 0 : i32
    %2 = arith.cmpi ne, %1, %c0_i32_0 : i32
    scf.if %2 {
      %c0_15 = arith.constant 0 : index
      %c0_16 = arith.constant 0 : index
      %22 = vector.load %arg1[%c0_15, %c0_16] : memref<8x512xf32, #tpu.memory_space<vmem>>, vector<8x512xf32>
      %23 = arith.truncf %22 : vector<8x512xf32> to vector<8x512xbf16>
      %c0_17 = arith.constant 0 : index
      %c0_18 = arith.constant 0 : index
      %24 = vector.load %arg2[%c0_17, %c0_18] : memref<512x64xbf16, #tpu.memory_space<vmem>>, vector<512x64xbf16>
      %cst_19 = arith.constant dense<0.000000e+00> : vector<8x64xf32>
      %25 = tpu.matmul %23, %24, %cst_19 {dimension_numbers = #tpu.dot_dimension_numbers<[1], [0], [0], [1], [0, 0, 1, 1], [], []>} : vector<8x512xbf16>, vector<512x64xbf16>, vector<8x64xf32> -> vector<8x64xf32>
      %cst_20 = arith.constant 1.250000e-01 : f32
      %26 = vector.broadcast %cst_20 : f32 to vector<8x64xf32>
      %27 = arith.mulf %25, %26 : vector<8x64xf32>
      %c0_21 = arith.constant 0 : index
      %c0_22 = arith.constant 0 : index
      %28 = vector.load %arg3[%c0_21, %c0_22] : memref<512x64xbf16, #tpu.memory_space<vmem>>, vector<512x64xbf16>
      %cst_23 = arith.constant dense<0.000000e+00> : vector<8x64xf32>
      %29 = tpu.matmul %23, %28, %cst_23 {dimension_numbers = #tpu.dot_dimension_numbers<[1], [0], [0], [1], [0, 0, 1, 1], [], []>} : vector<8x512xbf16>, vector<512x64xbf16>, vector<8x64xf32> -> vector<8x64xf32>
      %c0_24 = arith.constant 0 : index
      %c0_25 = arith.constant 0 : index
      %30 = vector.load %arg4[%c0_24, %c0_25] : memref<512x64xbf16, #tpu.memory_space<vmem>>, vector<512x64xbf16>
      %cst_26 = arith.constant dense<0.000000e+00> : vector<8x64xf32>
      %31 = tpu.matmul %23, %30, %cst_26 {dimension_numbers = #tpu.dot_dimension_numbers<[1], [0], [0], [1], [0, 0, 1, 1], [], []>} : vector<8x512xbf16>, vector<512x64xbf16>, vector<8x64xf32> -> vector<8x64xf32>
      %32 = arith.truncf %27 : vector<8x64xf32> to vector<8x64xbf16>
      %33 = arith.truncf %29 : vector<8x64xf32> to vector<8x64xbf16>
      %cst_27 = arith.constant dense<0.000000e+00> : vector<8x8xf32>
      %34 = tpu.matmul %32, %33, %cst_27 {dimension_numbers = #tpu.dot_dimension_numbers<[1], [1], [0], [0], [0, 0, 1, 0], [], []>} : vector<8x64xbf16>, vector<8x64xbf16>, vector<8x8xf32> -> vector<8x8xf32>
      %cst_28 = arith.constant dense<0xFF800000> : vector<8xf32>
      %35 = vector.multi_reduction <maximumf>, %34, %cst_28 [1] : vector<8x8xf32> to vector<8xf32>
      %36 = vector.shape_cast %35 : vector<8xf32> to vector<8x1xf32>
      %37 = vector.broadcast %36 : vector<8x1xf32> to vector<8x8xf32>
      %38 = arith.subf %34, %37 : vector<8x8xf32>
      %39 = math.exp %38 : vector<8x8xf32>
      %cst_29 = arith.constant dense<0.000000e+00> : vector<8xf32>
      %40 = vector.multi_reduction <add>, %39, %cst_29 [1] : vector<8x8xf32> to vector<8xf32>
      %41 = vector.shape_cast %40 : vector<8xf32> to vector<8x1xf32>
      %42 = tpu.reciprocal %41 {approx = true} : vector<8x1xf32> -> vector<8x1xf32>
      %43 = vector.broadcast %42 : vector<8x1xf32> to vector<8x8xf32>
      %44 = arith.mulf %39, %43 : vector<8x8xf32>
      %45 = arith.truncf %44 : vector<8x8xf32> to vector<8x8xbf16>
      %46 = arith.truncf %31 : vector<8x64xf32> to vector<8x64xbf16>
      %cst_30 = arith.constant dense<0.000000e+00> : vector<8x64xf32>
      %47 = tpu.matmul %45, %46, %cst_30 {dimension_numbers = #tpu.dot_dimension_numbers<[1], [0], [0], [1], [0, 0, 1, 1], [], []>} : vector<8x8xbf16>, vector<8x64xbf16>, vector<8x64xf32> -> vector<8x64xf32>
      %48 = arith.truncf %47 : vector<8x64xf32> to vector<8x64xbf16>
      %c0_31 = arith.constant 0 : index
      %c0_32 = arith.constant 0 : index
      %49 = vector.load %arg5[%c0_31, %c0_32] : memref<64x512xbf16, #tpu.memory_space<vmem>>, vector<64x512xbf16>
      %cst_33 = arith.constant dense<0.000000e+00> : vector<8x512xf32>
      %50 = tpu.matmul %48, %49, %cst_33 {dimension_numbers = #tpu.dot_dimension_numbers<[1], [0], [0], [1], [0, 0, 1, 1], [], []>} : vector<8x64xbf16>, vector<64x512xbf16>, vector<8x512xf32> -> vector<8x512xf32>
      %51 = arith.addf %50, %22 : vector<8x512xf32>
      %c0_34 = arith.constant 0 : index
      %c0_35 = arith.constant 0 : index
      %52 = vector.load %arg10[%c0_34, %c0_35] : memref<1x512xf32, #tpu.memory_space<vmem>>, vector<1x512xf32>
      %c0_36 = arith.constant 0 : index
      %c0_37 = arith.constant 0 : index
      %53 = vector.load %arg11[%c0_36, %c0_37] : memref<1x512xf32, #tpu.memory_space<vmem>>, vector<1x512xf32>
      %cst_38 = arith.constant dense<0.000000e+00> : vector<8xf32>
      %54 = vector.multi_reduction <add>, %51, %cst_38 [1] : vector<8x512xf32> to vector<8xf32>
      %55 = vector.shape_cast %54 : vector<8xf32> to vector<8x1xf32>
      %cst_39 = arith.constant 0.001953125 : f32
      %56 = vector.broadcast %cst_39 : f32 to vector<8x1xf32>
      %57 = arith.mulf %55, %56 : vector<8x1xf32>
      %58 = vector.broadcast %57 : vector<8x1xf32> to vector<8x512xf32>
      %59 = arith.subf %51, %58 : vector<8x512xf32>
      %60 = arith.mulf %59, %59 : vector<8x512xf32>
      %cst_40 = arith.constant dense<0.000000e+00> : vector<8xf32>
      %61 = vector.multi_reduction <add>, %60, %cst_40 [1] : vector<8x512xf32> to vector<8xf32>
      %62 = vector.shape_cast %61 : vector<8xf32> to vector<8x1xf32>
      %cst_41 = arith.constant 0.001953125 : f32
      %63 = vector.broadcast %cst_41 : f32 to vector<8x1xf32>
      %64 = arith.mulf %62, %63 : vector<8x1xf32>
      %cst_42 = arith.constant 9.99999974E-6 : f32
      %65 = vector.broadcast %cst_42 : f32 to vector<8x1xf32>
      %66 = arith.addf %64, %65 : vector<8x1xf32>
      %67 = math.rsqrt %66 : vector<8x1xf32>
      %68 = vector.broadcast %67 : vector<8x1xf32> to vector<8x512xf32>
      %69 = arith.mulf %59, %68 : vector<8x512xf32>
      %70 = vector.broadcast %52 : vector<1x512xf32> to vector<8x512xf32>
      %71 = arith.mulf %69, %70 : vector<8x512xf32>
      %72 = vector.broadcast %53 : vector<1x512xf32> to vector<8x512xf32>
      %73 = arith.addf %71, %72 : vector<8x512xf32>
      %c0_43 = arith.constant 0 : index
      %c0_44 = arith.constant 0 : index
      %74 = vector.load %arg13[%c0_43, %c0_44] : memref<8x512xf32, #tpu.memory_space<vmem>>, vector<8x512xf32>
      tpu.vector_store %arg13[%c0_43, %c0_44], %73 {strides = array<i32>} : memref<8x512xf32, #tpu.memory_space<vmem>>, vector<8x512xf32>,
      %cst_45 = arith.constant 0.000000e+00 : f32
      %75 = vector.broadcast %cst_45 : f32 to vector<8x512xf32>
      %c0_46 = arith.constant 0 : index
      %c0_47 = arith.constant 0 : index
      %76 = vector.load %arg14[%c0_46, %c0_47] : memref<8x512xf32, #tpu.memory_space<vmem>>, vector<8x512xf32>
      tpu.vector_store %arg14[%c0_46, %c0_47], %75 {strides = array<i32>} : memref<8x512xf32, #tpu.memory_space<vmem>>, vector<8x512xf32>,
    } else {
    }
    %c0 = arith.constant 0 : index
    %c0_1 = arith.constant 0 : index
    %3 = vector.load %arg13[%c0, %c0_1] : memref<8x512xf32, #tpu.memory_space<vmem>>, vector<8x512xf32>
    %4 = arith.truncf %3 : vector<8x512xf32> to vector<8x512xbf16>
    %c0_2 = arith.constant 0 : index
    %c0_3 = arith.constant 0 : index
    %5 = vector.load %arg6[%c0_2, %c0_3] : memref<512x1024xbf16, #tpu.memory_space<vmem>>, vector<512x1024xbf16>
    %cst = arith.constant dense<0.000000e+00> : vector<8x1024xf32>
    %6 = tpu.matmul %4, %5, %cst {dimension_numbers = #tpu.dot_dimension_numbers<[1], [0], [0], [1], [0, 0, 1, 1], [], []>} : vector<8x512xbf16>, vector<512x1024xbf16>, vector<8x1024xf32> -> vector<8x1024xf32>
    %c0_4 = arith.constant 0 : index
    %c0_5 = arith.constant 0 : index
    %7 = vector.load %arg7[%c0_4, %c0_5] : memref<1x1024xf32, #tpu.memory_space<vmem>>, vector<1x1024xf32>
    %8 = vector.broadcast %7 : vector<1x1024xf32> to vector<8x1024xf32>
    %9 = arith.addf %6, %8 : vector<8x1024xf32>
    %cst_6 = arith.constant 0.00999999977 : f32
    %10 = vector.broadcast %cst_6 : f32 to vector<8x1024xf32>
    %11 = arith.mulf %10, %9 : vector<8x1024xf32>
    %12 = arith.maximumf %9, %11 : vector<8x1024xf32>
    %c0_7 = arith.constant 0 : index
    %c0_8 = arith.constant 0 : index
    %13 = vector.load %arg14[%c0_7, %c0_8] : memref<8x512xf32, #tpu.memory_space<vmem>>, vector<8x512xf32>
    %14 = arith.truncf %12 : vector<8x1024xf32> to vector<8x1024xbf16>
    %c0_9 = arith.constant 0 : index
    %c0_10 = arith.constant 0 : index
    %15 = vector.load %arg8[%c0_9, %c0_10] : memref<1024x512xbf16, #tpu.memory_space<vmem>>, vector<1024x512xbf16>
    %cst_11 = arith.constant dense<0.000000e+00> : vector<8x512xf32>
    %16 = tpu.matmul %14, %15, %cst_11 {dimension_numbers = #tpu.dot_dimension_numbers<[1], [0], [0], [1], [0, 0, 1, 1], [], []>} : vector<8x1024xbf16>, vector<1024x512xbf16>, vector<8x512xf32> -> vector<8x512xf32>
    %17 = arith.addf %13, %16 : vector<8x512xf32>
    %c0_12 = arith.constant 0 : index
    %c0_13 = arith.constant 0 : index
    %18 = vector.load %arg14[%c0_12, %c0_13] : memref<8x512xf32, #tpu.memory_space<vmem>>, vector<8x512xf32>
    tpu.vector_store %arg14[%c0_12, %c0_13], %17 {strides = array<i32>} : memref<8x512xf32, #tpu.memory_space<vmem>>, vector<8x512xf32>,
    %c1_i32 = arith.constant 1 : i32
    %19 = arith.cmpi eq, %arg0, %c1_i32 : i32
    %20 = arith.extui %19 : i1 to i32
    %c0_i32_14 = arith.constant 0 : i32
    %21 = arith.cmpi ne, %20, %c0_i32_14 : i32
    scf.if %21 {
      %c0_15 = arith.constant 0 : index
      %c0_16 = arith.constant 0 : index
      %22 = vector.load %arg14[%c0_15, %c0_16] : memref<8x512xf32, #tpu.memory_space<vmem>>, vector<8x512xf32>
      %c0_17 = arith.constant 0 : index
      %c0_18 = arith.constant 0 : index
      %23 = vector.load %arg9[%c0_17, %c0_18] : memref<1x512xf32, #tpu.memory_space<vmem>>, vector<1x512xf32>
      %24 = vector.broadcast %23 : vector<1x512xf32> to vector<8x512xf32>
      %25 = arith.addf %22, %24 : vector<8x512xf32>
      %c0_19 = arith.constant 0 : index
      %c0_20 = arith.constant 0 : index
      %26 = vector.load %arg13[%c0_19, %c0_20] : memref<8x512xf32, #tpu.memory_space<vmem>>, vector<8x512xf32>
      %27 = arith.addf %25, %26 : vector<8x512xf32>
      %c0_21 = arith.constant 0 : index
      %c0_22 = arith.constant 0 : index
      %28 = vector.load %arg10[%c0_21, %c0_22] : memref<1x512xf32, #tpu.memory_space<vmem>>, vector<1x512xf32>
      %c0_23 = arith.constant 0 : index
      %c0_24 = arith.constant 0 : index
      %29 = vector.load %arg11[%c0_23, %c0_24] : memref<1x512xf32, #tpu.memory_space<vmem>>, vector<1x512xf32>
      %cst_25 = arith.constant dense<0.000000e+00> : vector<8xf32>
      %30 = vector.multi_reduction <add>, %27, %cst_25 [1] : vector<8x512xf32> to vector<8xf32>
      %31 = vector.shape_cast %30 : vector<8xf32> to vector<8x1xf32>
      %cst_26 = arith.constant 0.001953125 : f32
      %32 = vector.broadcast %cst_26 : f32 to vector<8x1xf32>
      %33 = arith.mulf %31, %32 : vector<8x1xf32>
      %34 = vector.broadcast %33 : vector<8x1xf32> to vector<8x512xf32>
      %35 = arith.subf %27, %34 : vector<8x512xf32>
      %36 = arith.mulf %35, %35 : vector<8x512xf32>
      %cst_27 = arith.constant dense<0.000000e+00> : vector<8xf32>
      %37 = vector.multi_reduction <add>, %36, %cst_27 [1] : vector<8x512xf32> to vector<8xf32>
      %38 = vector.shape_cast %37 : vector<8xf32> to vector<8x1xf32>
      %cst_28 = arith.constant 0.001953125 : f32
      %39 = vector.broadcast %cst_28 : f32 to vector<8x1xf32>
      %40 = arith.mulf %38, %39 : vector<8x1xf32>
      %cst_29 = arith.constant 9.99999974E-6 : f32
      %41 = vector.broadcast %cst_29 : f32 to vector<8x1xf32>
      %42 = arith.addf %40, %41 : vector<8x1xf32>
      %43 = math.rsqrt %42 : vector<8x1xf32>
      %44 = vector.broadcast %43 : vector<8x1xf32> to vector<8x512xf32>
      %45 = arith.mulf %35, %44 : vector<8x512xf32>
      %46 = vector.broadcast %28 : vector<1x512xf32> to vector<8x512xf32>
      %47 = arith.mulf %45, %46 : vector<8x512xf32>
      %48 = vector.broadcast %29 : vector<1x512xf32> to vector<8x512xf32>
      %49 = arith.addf %47, %48 : vector<8x512xf32>
      %c0_30 = arith.constant 0 : index
      %c0_31 = arith.constant 0 : index
      %50 = vector.load %arg12[%c0_30, %c0_31] : memref<8x512xf32, #tpu.memory_space<vmem>>, vector<8x512xf32>
      tpu.vector_store %arg12[%c0_30, %c0_31], %49 {strides = array<i32>} : memref<8x512xf32, #tpu.memory_space<vmem>>, vector<8x512xf32>,
    } else {
    }
    return
  }
  func.func @transform_0(%arg0: i32) -> (i32, i32) {
    %c0_i32 = arith.constant 0 : i32
    %c0_i32_0 = arith.constant 0 : i32
    %c0_i32_1 = arith.constant 0 : i32
    return %c0_i32, %c0_i32_0 : i32, i32
  }
  func.func @transform_1(%arg0: i32) -> (i32, i32) {
    %c0_i32 = arith.constant 0 : i32
    %c0_i32_0 = arith.constant 0 : i32
    %c0_i32_1 = arith.constant 0 : i32
    return %c0_i32, %c0_i32_0 : i32, i32
  }
  func.func @transform_2(%arg0: i32) -> (i32, i32) {
    %c0_i32 = arith.constant 0 : i32
    %c0_i32_0 = arith.constant 0 : i32
    %c0_i32_1 = arith.constant 0 : i32
    return %c0_i32, %c0_i32_0 : i32, i32
  }
  func.func @transform_3(%arg0: i32) -> (i32, i32) {
    %c0_i32 = arith.constant 0 : i32
    %c0_i32_0 = arith.constant 0 : i32
    %c0_i32_1 = arith.constant 0 : i32
    return %c0_i32, %c0_i32_0 : i32, i32
  }
  func.func @transform_4(%arg0: i32) -> (i32, i32) {
    %c0_i32 = arith.constant 0 : i32
    %c0_i32_0 = arith.constant 0 : i32
    %c0_i32_1 = arith.constant 0 : i32
    return %c0_i32, %c0_i32_0 : i32, i32
  }
  func.func @transform_5(%arg0: i32) -> (i32, i32) {
    %c0_i32 = arith.constant 0 : i32
    %c0_i32_0 = arith.constant 0 : i32
    return %c0_i32, %arg0 : i32, i32
  }
  func.func @transform_6(%arg0: i32) -> (i32, i32) {
    %c0_i32 = arith.constant 0 : i32
    %c0_i32_0 = arith.constant 0 : i32
    return %c0_i32, %arg0 : i32, i32
  }
  func.func @transform_7(%arg0: i32) -> (i32, i32) {
    %c0_i32 = arith.constant 0 : i32
    %c0_i32_0 = arith.constant 0 : i32
    return %arg0, %c0_i32 : i32, i32
  }
  func.func @transform_8(%arg0: i32) -> (i32, i32) {
    %c0_i32 = arith.constant 0 : i32
    %c0_i32_0 = arith.constant 0 : i32
    %c0_i32_1 = arith.constant 0 : i32
    return %c0_i32, %c0_i32_0 : i32, i32
  }
  func.func @transform_9(%arg0: i32) -> (i32, i32) {
    %c0_i32 = arith.constant 0 : i32
    %c0_i32_0 = arith.constant 0 : i32
    %c0_i32_1 = arith.constant 0 : i32
    return %c0_i32, %c0_i32_0 : i32, i32
  }
  func.func @transform_10(%arg0: i32) -> (i32, i32) {
    %c0_i32 = arith.constant 0 : i32
    %c0_i32_0 = arith.constant 0 : i32
    %c0_i32_1 = arith.constant 0 : i32
    return %c0_i32, %c0_i32_0 : i32, i32
  }
  func.func @transform_11(%arg0: i32) -> (i32, i32) {
    %c0_i32 = arith.constant 0 : i32
    %c0_i32_0 = arith.constant 0 : i32
    %c0_i32_1 = arith.constant 0 : i32
    return %c0_i32, %c0_i32_0 : i32, i32
  }
}

</mosaic_0001>

<bundles_post_ra>
// kernel: encoder_forward.1
= control target key start
LH: loop header
LB: loop body
LE: loop exit
PB: predicated region body
PF: predicated region fallthrough
CT: control target
= control target key end

     0   :  { %s11365_s0 = inlined_call_operand.hbm [shape: f32[8,512], index: 0, kind: input, shape index: {}]   ;;  %s11366_s1 = inlined_call_operand.vmem [shape: bf16[512,64], index: 1, kind: input, shape index: {}]   ;;  %s11367_s2 = inlined_call_operand.vmem [shape: bf16[512,64], index: 2, kind: input, shape index: {}]   ;;  %s11368_s3 = inlined_call_operand.vmem [shape: bf16[512,64], index: 3, kind: input, shape index: {}]   ;;  %s11369_s4 = inlined_call_operand.hbm [shape: bf16[64,512], index: 4, kind: input, shape index: {}]   ;;  %s11370_s5 = inlined_call_operand.hbm [shape: bf16[512,2048], index: 5, kind: input, shape index: {}]   ;;  %s11371_s6 = inlined_call_operand.hbm [shape: f32[1,2048], index: 6, kind: input, shape index: {}]   ;;  %s11372_s7 = inlined_call_operand.hbm [shape: bf16[2048,512], index: 7, kind: input, shape index: {}]   ;;  %s11373_s8 = inlined_call_operand.hbm [shape: f32[1,512], index: 8, kind: input, shape index: {}]   ;;  %s11374_s9 = inlined_call_operand.hbm [shape: f32[1,512], index: 9, kind: input, shape index: {}]   ;;  %s11375_s10 = inlined_call_operand.hbm [shape: f32[1,512], index: 10, kind: input, shape index: {}]   ;;  %s11376_s11 = inlined_call_operand.hbm [shape: f32[8,512], index: 11, kind: output, shape index: {}]  }
   0x1   :  { %11385 = sst [smem:[#allocation25_spill]] %s11365_s0 }
   0x2   :  { %11386 = sst [smem:[#allocation26_spill]] %s11366_s1 }
   0x3   :  { %11387 = sst [smem:[#allocation27_spill]] %s11367_s2 }
   0x4   :  { %11388 = sst [smem:[#allocation28_spill]] %s11368_s3 }
   0x5   :  { %11389 = sst [smem:[#allocation29_spill]] %s11369_s4 }
   0x6   :  { %11390 = sst [smem:[#allocation30_spill]] %s11370_s5 }
   0x7   :  { %11391 = sst [smem:[#allocation31_spill]] %s11376_s11 }
   0x8   :  { %16 = vsyncpa [#allocation5], 0 }
   0x9   :  { %17 = vsyncpa [#allocation8], 0 }
   0xa   :  { %18 = vsyncpa [#allocation14], 0 }
   0xb   :  { %19 = vsyncpa [#allocation6], 0  ;;  %s9651_s17 = smov 0   ;;  %s9653_s18 = smov 0  }
   0xc   :  { %s9655_s19 = smov 0   ;;  %s9657_s20 = smov 0  }
   0xd LB: > { %s9670_s21 = sadd.s32 4294967295, %s9577_s20   ;;  %p150_p0 = scmp.ne.s32.totalorder %s9569_s18, %s9565_s17  ;;  %s9577_s20 = sphi %s9657_s20, %s11409_s20   ;;  %s9573_s19 = sphi %s9655_s19, %s11413_s19   ;;  %s9569_s18 = sphi %s9653_s18, %s11412_s18   ;;  %s9565_s17 = sphi %s9651_s17, %s11411_s17  }
   0xe   : > { %p151_p1 = scmp.eq.s32.totalorder %s9670_s21, 0  ;;  %p5973_p2 = scmp.ge.s32.totalorder %s9577_s20, 1 }
   0xf   : > { %p297_p3 = scmp.lt.s32.totalorder %s9577_s20, 3  ;;  %p5974_p4 = scmp.ne.s32.totalorder %s9670_s21, 0 }
  0x10   : > { %p9679_p5 = por %p151_p1, %p150_p0  ;;  %s11393_s0 = sld [smem:[#allocation25_spill]] }
  0x11   : > { %p9686_p6 = pnand %p5973_p2, %p297_p3  ;;  %s9579_s27 = smov [#allocation4]  }
  0x12   : > { %s311_s28 = sshll.u32 %s9579_s27, 4  ;;  %s9699_s30 = sadd.s32 1, %s9577_s20   ;;  %s312_s28 = int_to_ptr.vmem [resolvable:$true] %s311_s28 }
  0x13   : > { %p9163_p7 = pneg %p9686_p6  ;;  %11396 = sst [smem:[#allocation23_spill]] %s9699_s30 }
  0x14   : > { %s137_s12 = sadd.s32 1, %s9573_s19  ;;  %s134_s13 = ssub.s32 %s9577_s20, %s9699_s30 }
  0x15   : > { %p9694_p8 = pnand %p9163_p7, %p151_p1  ;;  %p135_p9 = scmp.eq.s32.totalorder %s134_s13, 0 }
  0x16   : > { %s309_s25 = sshll.u32 %s11393_s0, 4  ;;  %p144_p10 = scmp.ne.s32.totalorder %s9573_s19, %s9569_s18  ;;  %s310_s25 = int_to_ptr.hbm [resolvable:$true] %s309_s25 }
  0x17   : > { %9166 = dma.hbm_to_vmem [thread:$0]  (!%p9694_p8), %s310_s25, 512, %s312_s28, [#allocation5]  }
  0x18   : > { %p145_p11 = scmp.eq.s32.totalorder %s9577_s20, 0  ;;  %p9194_p12 = scmp.lt.s32.totalorder %s9577_s20, 2 }
  0x19   : > { %s9711_s14 = scalar_select %p135_p9, %s9573_s19, %s137_s12  }
  0x1a   : > { %p146_p13 = por %p145_p11, %p144_p10  ;;  %s381_s15 = sand.u32 1, %s9577_s20  }
  0x1b   : > { %11397 = sst [smem:[#allocation24_spill]] %s9711_s14  ;;  %s11379_s16 = sand.u32 1, %s9573_s19  }
  0x1c   : > { %s9717_s17 = sshll.u32 %s11379_s16, 11  ;;  %s8506_s23 = sshll.u32 %s9577_s20, 5 }
  0x1d   : > { %s11398_s5 = sld [smem:[#allocation30_spill]]  ;;  %s385_s28 = scalar_lea.vmem [#allocation9], %s9717_s17 }
  0x1e   : > { %s393_s13 = sshll.u32 %s385_s28, 4  ;;  %p9726_p0 = pnand %p9194_p12, %p146_p13  ;;  %s394_s13 = int_to_ptr.vmem [resolvable:$true] %s393_s13 }
  0x1f   : > { %s11400_s4 = sld [smem:[#allocation29_spill]]  ;;  %s9733_s11 = scalar_lea.sflag [#allocation5], %s381_s15 }
  0x20   : > { %p9289_p3 = pneg %p9726_p0 }
  0x23   : > { %s390_s0 = scalar_lea.hbm %s11398_s5, %s8506_s23  ;;  %s9292_s28 = scalar_lea.hbm %s11398_s5, 4096 }
  0x24   : > { %s391_s25 = sshll.u32 %s390_s0, 4  ;;  %s392_s25 = int_to_ptr.hbm [resolvable:$true] %s391_s25 }
  0x25   : > { %s329_s16 = sshll.u32 %s11400_s4, 4  ;;  %s9285_s24 = sshra.s32 %s392_s25, 4  ;;  %s9286_s24 = int_to_ptr.hbm [resolvable:$true] %s9285_s24  ;;  %s330_s16 = int_to_ptr.hbm [resolvable:$true] %s329_s16 }
  0x26   : > { %s9287_s0 = scalar_lea.hbm %s9286_s24, 2048  ;;  %p9293_p10 = scmp.lt.s32.totalorder %s9286_s24, %s11398_s5 }
  0x27   : > { %p9288_p2 = scmp.ne.s32.totalorder %s9286_s24, %s9287_s0  ;;  %p9294_p11 = scmp.lt.s32.totalorder %s9292_s28, %s9287_s0 }
  0x29   : > { %p9290_p7 = pnand %p9289_p3, %p9288_p2  ;;  %p9295_p12 = por %p9294_p11, %p9293_p10 }
  0x2b   : > { %p9291_p9 = pneg %p9290_p7 }
  0x2d   : > { %p9296_p13 = pnand %p9295_p12, %p9291_p9 }
  0x2f   : > { %9299 = shalt.err (!%p9296_p13)
}
  0x30   : > { %s9580_s15 = smov 1024   ;;  %s9581_s4 = smov 512  }
  0x31   : > { %s9582_s3 = smov 32   ;;  %s9583_s23 = smov [#allocation7]  }
  0x32   : > { %9182 = dma.hbm_to_vmem [thread:$0]  (!%p9726_p0), %s392_s25, 32768, %s394_s13, %s9733_s11, %s9580_s15, %s9581_s4, %s9582_s3  }
  0x33   : > { %s331_s27 = sshll.u32 %s9583_s23, 4  ;;  %s11383_s24 = smov 256   ;;  %s332_s27 = int_to_ptr.vmem [resolvable:$true] %s331_s27 }
  0x34   : > { %s11384_s0 = smov 16   ;;  %s356_s14 = sshll.u32 %s11374_s9, 4  ;;  %s357_s14 = int_to_ptr.hbm [resolvable:$true] %s356_s14 }
  0x35   : > { %9169 = dma.hbm_to_vmem [thread:$0]  (!%p9694_p8), %s330_s16, 2048, %s332_s27, [#allocation8], %s11383_s24, %s11383_s24, %s11384_s0  }
  0x36   : > { %s9586_s5 = smov [#allocation13]   ;;  %s11401_s3 = sand.u32 1, %s9573_s19  }
  0x37   : > { %s358_s2 = sshll.u32 %s9586_s5, 4  ;;  %s5983_s4 = sshll.u32 %s11401_s3, 3  ;;  %s359_s2 = int_to_ptr.vmem [resolvable:$true] %s358_s2 }
  0x38   : > { %9175 = dma.hbm_to_vmem [thread:$0]  (!%p9694_p8), %s357_s14, 64, %s359_s2, [#allocation14]  }
  0x39   : > { %s5984_s25 = sshll.u32 %s9577_s20, 3  ;;  %s407_s1 = scalar_lea.vmem [#allocation10], %s5983_s4 }
  0x3a   : > { %s411_s23 = scalar_lea.hbm %s11371_s6, %s5984_s25  ;;  %s415_s16 = sshll.u32 %s407_s1, 4  ;;  %s416_s16 = int_to_ptr.vmem [resolvable:$true] %s415_s16 }
  0x3b   : > { %s413_s27 = sshll.u32 %s411_s23, 4  ;;  %s344_s5 = sshll.u32 %s11373_s8, 4  ;;  %s414_s27 = int_to_ptr.hbm [resolvable:$true] %s413_s27  ;;  %s345_s5 = int_to_ptr.hbm [resolvable:$true] %s344_s5 }
  0x3c   : > { %s9375_s24 = sshra.s32 %s414_s27, 4  ;;  %s9382_s3 = scalar_lea.hbm %s11371_s6, 16  ;;  %s9376_s24 = int_to_ptr.hbm [resolvable:$true] %s9375_s24 }
  0x3d   : > { %s9377_s0 = scalar_lea.hbm %s9376_s24, 8  ;;  %p9383_p10 = scmp.lt.s32.totalorder %s9376_s24, %s11371_s6 }
  0x3e   : > { %p9378_p2 = scmp.ne.s32.totalorder %s9376_s24, %s9377_s0  ;;  %p9384_p11 = scmp.lt.s32.totalorder %s9382_s3, %s9377_s0 }
  0x40   : > { %p9380_p7 = pnand %p9378_p2, %p9289_p3  ;;  %p9385_p12 = por %p9384_p11, %p9383_p10 }
  0x42   : > { %p9381_p9 = pneg %p9380_p7 }
  0x44   : > { %p9386_p13 = pnand %p9385_p12, %p9381_p9 }
  0x46   : > { %9389 = shalt.err (!%p9386_p13)
}
  0x47   : > { %9185 = dma.hbm_to_vmem [thread:$0]  (!%p9726_p0), %s414_s27, 128, %s416_s16, %s9733_s11  }
  0x48   : > { %s9587_s25 = smov [#allocation12]   ;;  %s368_s28 = sshll.u32 %s11375_s10, 4  ;;  %s369_s28 = int_to_ptr.hbm [resolvable:$true] %s368_s28 }
  0x49   : > { %s346_s13 = sshll.u32 %s9587_s25, 4  ;;  %s9588_s24 = smov [#allocation15]   ;;  %s347_s13 = int_to_ptr.vmem [resolvable:$true] %s346_s13 }
  0x4a   : > { %9172 = dma.hbm_to_vmem [thread:$0]  (!%p9694_p8), %s345_s5, 64, %s347_s13, [#allocation8]  }
  0x4b   : > { %s370_s0 = sshll.u32 %s9588_s24, 4  ;;  %s8508_s30 = sshll.u32 %s9577_s20, 11  ;;  %s371_s0 = int_to_ptr.vmem [resolvable:$true] %s370_s0 }
  0x4c   : > { %s432_s16 = scalar_lea.hbm %s11372_s7, %s8508_s30  ;;  %s426_s3 = scalar_lea.vmem [#allocation11], %s9717_s17 }
  0x4d   : > { %9178 = dma.hbm_to_vmem [thread:$0]  (!%p9694_p8), %s369_s28, 64, %s371_s0, [#allocation14]  }
  0x4e   : > { %s433_s27 = sshll.u32 %s432_s16, 4  ;;  %s435_s1 = sshll.u32 %s426_s3, 4  ;;  %s434_s27 = int_to_ptr.hbm [resolvable:$true] %s433_s27  ;;  %s436_s1 = int_to_ptr.vmem [resolvable:$true] %s435_s1 }
  0x4f   : > { %s9465_s4 = sshra.s32 %s434_s27, 4  ;;  %s9472_s13 = scalar_lea.hbm %s11372_s7, 4096  ;;  %s9466_s4 = int_to_ptr.hbm [resolvable:$true] %s9465_s4 }
  0x50   : > { %s9467_s25 = scalar_lea.hbm %s9466_s4, 2048  ;;  %p9473_p8 = scmp.lt.s32.totalorder %s9466_s4, %s11372_s7 }
  0x51   : > { %p9468_p2 = scmp.ne.s32.totalorder %s9466_s4, %s9467_s25  ;;  %p9474_p10 = scmp.lt.s32.totalorder %s9472_s13, %s9467_s25 }
  0x53   : > { %p9470_p7 = pnand %p9468_p2, %p9289_p3  ;;  %p9475_p11 = por %p9474_p10, %p9473_p8 }
  0x55   : > { %p9471_p9 = pneg %p9470_p7 }
  0x57   : > { %p9476_p12 = pnand %p9475_p11, %p9471_p9 }
  0x59   : > { %9479 = shalt.err (!%p9476_p12)
}
  0x5a   : > { %s11402_s17 = smov 16   ;;  %s11403_s23 = smov 256  }
  0x5b   : > { %9188 = dma.hbm_to_vmem [thread:$0]  (!%p9726_p0), %s434_s27, 32768, %s436_s1, %s9733_s11, %s11403_s23, %s11403_s23, %s11402_s17  }
  0x5c   : > { %447 = sbr.rel (%p9686_p6) target bundleno = 2293 (0x8f5), region = 64 }
  0x61   : > { %9540 = dma.done.wait (%p151_p1), [#allocation5], 512  }
  0x62   : > { %9542 = vsyncadd (%p151_p1), [#allocation5], 4294966784 }
  0x63   : > { %9544 = dma.done.wait (%p151_p1), [#allocation8], 2048  }
  0x64   : > { %9546 = vsyncadd (%p151_p1), [#allocation8], 4294965248  ;;  %s459_s12 = sand.u32 1, %s9670_s21   ;;  %s461_s11 = sand.u32 1, %s9569_s18  }
  0x65   : > { %s5992_s28 = sshll.u32 %s461_s11, 11  ;;  %s460_s26 = scalar_lea.sflag [#allocation5], %s459_s12 }
  0x66   : > { %s9819_s24 = scalar_lea.vmem [#allocation9], %s5992_s28 }
  0x67   : > { %9548 = dma.done.wait (%p9679_p5), %s460_s26, 65664  }
  0x68   : > { %9550 = vsyncadd (%p9679_p5), %s460_s26, 4294901632  ;;  %s9825_s0 = sshll.u32 %s461_s11, 3  ;;  %s9828_s2 = scalar_lea.vmem [#allocation11], %s5992_s28 }
  0x69   : > { %s473_s30 = scalar_lea.vmem [#allocation10], %s9825_s0 }
  0x6a   : > { %9552 = dma.done.wait (%p151_p1), [#allocation8], 64  }
  0x6b   : > { %9554 = vsyncadd (%p151_p1), [#allocation8], 4294967232 }
  0x6c   : > { %9556 = dma.done.wait (%p151_p1), [#allocation14], 128  }
  0x6d   : > { %9558 = vsyncadd (%p151_p1), [#allocation14], 4294967168  ;;  %550 = sbr.rel (%p5974_p4) target bundleno = 1253 (0x4e5), region = 100  ;;  %s11404_s16 = sld [smem:[#allocation26_spill]] (!%p5974_p4) }
  0x6e   : > { %s11405_s17 = sld [smem:[#allocation27_spill]] (!%p5974_p4) }
  0x6f   : > { %s11407_s13 = sld [smem:[#allocation28_spill]] (!%p5974_p4) }
  0x72   : > { %v9939_v33 = vld [vmem:[#allocation4 + $0x10] sm:$0xff]  ;;  %v9941_v34 = vld [vmem:[#allocation4 + $0x18] sm:$0xff]  ;;  %v9946_v36 = vld [vmem:[#allocation4] sm:$0xff]  ;;  %vm1486_vm0 = vcmask 523264   ;;  %vm1523_vm1 = vcmask 1043456   ;;  %vm1506_vm2 = vcmask 64512  }
  0x73   : > { %v8516_v0 = vld [vmem:[%s11404_s16 + $0x38] sm:$0xff]  ;;  %v8515_v4 = vld [vmem:[%s11404_s16 + $0x30] sm:$0xff]  ;;  %v8514_v8 = vld [vmem:[%s11404_s16 + $0x28] sm:$0xff]  ;;  %v9958_v40 = vpack.c.bf16 %v9939_v33, %v9939_v33  ;;  %v9962_v41 = vpack.c.bf16 %v9941_v34, %v9941_v34  ;;  %v9966_v42 = vpack.c.bf16 %v9946_v36, %v9946_v36 }
  0x74   : > { %v8524_v1 = vld [vmem:[%s11404_s16 + $0x78] sm:$0xff]  ;;  %815 = vmatpush.bf16.msra.mxu0 %v8516_v0  ;;  %v8523_v5 = vld [vmem:[%s11404_s16 + $0x70] sm:$0xff]  ;;  %v8522_v9 = vld [vmem:[%s11404_s16 + $0x68] sm:$0xff]  ;;  %s11406_s23 = smov %s11405_s17 }
  0x75   : > { %v8532_v2 = vld [vmem:[%s11404_s16 + $0xb8] sm:$0xff]  ;;  %828 = vmatpush.bf16.msra.mxu1 %v8524_v1  ;;  %v8531_v6 = vld [vmem:[%s11404_s16 + $0xb0] sm:$0xff]  ;;  %v8530_v10 = vld [vmem:[%s11404_s16 + $0xa8] sm:$0xff] }
  0x76   : > { %v8540_v3 = vld [vmem:[%s11404_s16 + $0xf8] sm:$0xff]  ;;  %841 = vmatpush.bf16.msra.mxu2 %v8532_v2  ;;  %v8539_v7 = vld [vmem:[%s11404_s16 + $0xf0] sm:$0xff]  ;;  %v8538_v11 = vld [vmem:[%s11404_s16 + $0xe8] sm:$0xff] }
  0x77   : > { %854 = vmatpush.bf16.msra.mxu3 %v8540_v3  ;;  %v8513_v12 = vld [vmem:[%s11404_s16 + $0x20] sm:$0xff]  ;;  %v8512_v16 = vld [vmem:[%s11404_s16 + $0x18] sm:$0xff]  ;;  %v8511_v20 = vld [vmem:[%s11404_s16 + $0x10] sm:$0xff] }
  0x78   : > { %816 = vmatpush.bf16.msra.mxu0 %v8515_v4  ;;  %v8521_v13 = vld [vmem:[%s11404_s16 + $0x60] sm:$0xff]  ;;  %v8520_v17 = vld [vmem:[%s11404_s16 + $0x58] sm:$0xff]  ;;  %v8519_v21 = vld [vmem:[%s11404_s16 + $0x50] sm:$0xff] }
  0x79   : > { %829 = vmatpush.bf16.msra.mxu1 %v8523_v5  ;;  %v8529_v14 = vld [vmem:[%s11404_s16 + $0xa0] sm:$0xff]  ;;  %v8528_v18 = vld [vmem:[%s11404_s16 + $0x98] sm:$0xff]  ;;  %v8527_v22 = vld [vmem:[%s11404_s16 + $0x90] sm:$0xff] }
  0x7a   : > { %842 = vmatpush.bf16.msra.mxu2 %v8531_v6  ;;  %v8537_v15 = vld [vmem:[%s11404_s16 + $0xe0] sm:$0xff]  ;;  %v8536_v19 = vld [vmem:[%s11404_s16 + $0xd8] sm:$0xff]  ;;  %v8535_v23 = vld [vmem:[%s11404_s16 + $0xd0] sm:$0xff] }
  0x7b   : > { %855 = vmatpush.bf16.msra.mxu3 %v8539_v7  ;;  %v8510_v24 = vld [vmem:[%s11404_s16 + $0x8] sm:$0xff]  ;;  %v8509_v28 = vld [vmem:[%s11404_s16] sm:$0xff]  ;;  %v8548_v32 = vld [vmem:[%s11405_s17 + $0x38] sm:$0xff] }
  0x7c   : > { %817 = vmatpush.bf16.msra.mxu0 %v8514_v8  ;;  %v8518_v25 = vld [vmem:[%s11404_s16 + $0x48] sm:$0xff]  ;;  %v8517_v29 = vld [vmem:[%s11404_s16 + $0x40] sm:$0xff]  ;;  %v8556_v35 = vld [vmem:[%s11406_s23 + $0x78] sm:$0xff] }
  0x7d   : > { %830 = vmatpush.bf16.msra.mxu1 %v8522_v9  ;;  %v8526_v26 = vld [vmem:[%s11404_s16 + $0x88] sm:$0xff]  ;;  %v8525_v30 = vld [vmem:[%s11404_s16 + $0x80] sm:$0xff]  ;;  %v8564_v38 = vld [vmem:[%s11406_s23 + $0xb8] sm:$0xff] }
  0x7e   : > { %843 = vmatpush.bf16.msra.mxu2 %v8530_v10  ;;  %v8534_v27 = vld [vmem:[%s11404_s16 + $0xc8] sm:$0xff]  ;;  %v8533_v31 = vld [vmem:[%s11404_s16 + $0xc0] sm:$0xff]  ;;  %v8572_v39 = vld [vmem:[%s11406_s23 + $0xf8] sm:$0xff] }
  0x7f   : > { %856 = vmatpush.bf16.msra.mxu3 %v8538_v11  ;;  %v9948_v37 = vld [vmem:[#allocation4 + $0x8] sm:$0xff]  ;;  %v8547_v44 = vld [vmem:[%s11406_s23 + $0x30] sm:$0xff]  ;;  %v8545_v52 = vld [vmem:[%s11406_s23 + $0x20] sm:$0xff] }
  0x80   : > { %818 = vmatpush.bf16.msra.mxu0 %v8513_v12  ;;  %v9970_v43 = vpack.c.bf16 %v9948_v37, %v9948_v37  ;;  %v8555_v45 = vld [vmem:[%s11406_s23 + $0x70] sm:$0xff]  ;;  %v8546_v48 = vld [vmem:[%s11406_s23 + $0x28] sm:$0xff]  ;;  %v8553_v53 = vld [vmem:[%s11406_s23 + $0x60] sm:$0xff] }
  0x81   : > { %831 = vmatpush.bf16.msra.mxu1 %v8521_v13  ;;  %v8563_v46 = vld [vmem:[%s11406_s23 + $0xb0] sm:$0xff]  ;;  %v8554_v49 = vld [vmem:[%s11406_s23 + $0x68] sm:$0xff]  ;;  %v8561_v54 = vld [vmem:[%s11406_s23 + $0xa0] sm:$0xff] }
  0x82   : > { %844 = vmatpush.bf16.msra.mxu2 %v8529_v14  ;;  %v8571_v47 = vld [vmem:[%s11406_s23 + $0xf0] sm:$0xff]  ;;  %v8562_v50 = vld [vmem:[%s11406_s23 + $0xa8] sm:$0xff]  ;;  %v8569_v55 = vld [vmem:[%s11406_s23 + $0xe0] sm:$0xff] }
  0x83   : > { %857 = vmatpush.bf16.msra.mxu3 %v8537_v15  ;;  %v8570_v51 = vld [vmem:[%s11406_s23 + $0xe8] sm:$0xff]  ;;  %v8544_v56 = vld [vmem:[%s11406_s23 + $0x18] sm:$0xff]  ;;  %v8543_v60 = vld [vmem:[%s11406_s23 + $0x10] sm:$0xff] }
  0x84   : > { %819 = vmatpush.bf16.msra.mxu0 %v8512_v16  ;;  %v8552_v57 = vld [vmem:[%s11406_s23 + $0x58] sm:$0xff]  ;;  %v8551_v61 = vld [vmem:[%s11406_s23 + $0x50] sm:$0xff]  ;;  %v8542_v0 = vld [vmem:[%s11406_s23 + $0x8] sm:$0xff] }
  0x85   : > { %832 = vmatpush.bf16.msra.mxu1 %v8520_v17  ;;  %v8560_v58 = vld [vmem:[%s11406_s23 + $0x98] sm:$0xff]  ;;  %v8559_v62 = vld [vmem:[%s11406_s23 + $0x90] sm:$0xff]  ;;  %v8550_v1 = vld [vmem:[%s11406_s23 + $0x48] sm:$0xff] }
  0x86   : > { %845 = vmatpush.bf16.msra.mxu2 %v8528_v18  ;;  %v8568_v59 = vld [vmem:[%s11406_s23 + $0xd8] sm:$0xff]  ;;  %v8567_v63 = vld [vmem:[%s11406_s23 + $0xd0] sm:$0xff]  ;;  %v8558_v2 = vld [vmem:[%s11406_s23 + $0x88] sm:$0xff] }
  0x87   : > { %858 = vmatpush.bf16.msra.mxu3 %v8536_v19  ;;  %v8566_v3 = vld [vmem:[%s11406_s23 + $0xc8] sm:$0xff]  ;;  %v8541_v4 = vld [vmem:[%s11406_s23] sm:$0xff]  ;;  %v8580_v8 = vld [vmem:[%s11407_s13 + $0x38] sm:$0xff] }
  0x88   : > { %820 = vmatpush.bf16.msra.mxu0 %v8511_v20  ;;  %v8549_v5 = vld [vmem:[%s11406_s23 + $0x40] sm:$0xff]  ;;  %v8596_v9 = vld [vmem:[%s11407_s13 + $0xb8] sm:$0xff]  ;;  %v8579_v10 = vld [vmem:[%s11407_s13 + $0x30] sm:$0xff] }
  0x89   : > { %833 = vmatpush.bf16.msra.mxu1 %v8519_v21  ;;  %v8557_v6 = vld [vmem:[%s11406_s23 + $0x80] sm:$0xff]  ;;  %v8604_v11 = vld [vmem:[%s11407_s13 + $0xf8] sm:$0xff]  ;;  %v8578_v12 = vld [vmem:[%s11407_s13 + $0x28] sm:$0xff] }
  0x8a   : > { %846 = vmatpush.bf16.msra.mxu2 %v8527_v22  ;;  %v8565_v7 = vld [vmem:[%s11406_s23 + $0xc0] sm:$0xff]  ;;  %v8588_v13 = vld [vmem:[%s11407_s13 + $0x78] sm:$0xff]  ;;  %v8595_v14 = vld [vmem:[%s11407_s13 + $0xb0] sm:$0xff] }
  0x8b   : > { %859 = vmatpush.bf16.msra.mxu3 %v8535_v23  ;;  %v8603_v15 = vld [vmem:[%s11407_s13 + $0xf0] sm:$0xff]  ;;  %v8577_v16 = vld [vmem:[%s11407_s13 + $0x20] sm:$0xff]  ;;  %v8594_v18 = vld [vmem:[%s11407_s13 + $0xa8] sm:$0xff] }
  0x8c   : > { %821 = vmatpush.bf16.msra.mxu0 %v8510_v24  ;;  %v8587_v17 = vld [vmem:[%s11407_s13 + $0x70] sm:$0xff]  ;;  %v8602_v19 = vld [vmem:[%s11407_s13 + $0xe8] sm:$0xff]  ;;  %v8576_v20 = vld [vmem:[%s11407_s13 + $0x18] sm:$0xff] }
  0x8d   : > { %834 = vmatpush.bf16.msra.mxu1 %v8518_v25  ;;  %v8586_v21 = vld [vmem:[%s11407_s13 + $0x68] sm:$0xff]  ;;  %v8593_v22 = vld [vmem:[%s11407_s13 + $0xa0] sm:$0xff]  ;;  %v8575_v24 = vld [vmem:[%s11407_s13 + $0x10] sm:$0xff] }
  0x8e   : > { %847 = vmatpush.bf16.msra.mxu2 %v8526_v26  ;;  %v8601_v23 = vld [vmem:[%s11407_s13 + $0xe0] sm:$0xff]  ;;  %v8592_v26 = vld [vmem:[%s11407_s13 + $0x98] sm:$0xff] }
  0x8f   : > { %860 = vmatpush.bf16.msra.mxu3 %v8534_v27  ;;  %v8585_v25 = vld [vmem:[%s11407_s13 + $0x60] sm:$0xff]  ;;  %v8600_v27 = vld [vmem:[%s11407_s13 + $0xd8] sm:$0xff] }
  0x90   : > { %822 = vmatpush.bf16.msra.mxu0 %v8509_v28  ;;  %v8574_v28 = vld [vmem:[%s11407_s13 + $0x8] sm:$0xff] }
  0x91   : > { %835 = vmatpush.bf16.msra.mxu1 %v8517_v29  ;;  %v8584_v29 = vld [vmem:[%s11407_s13 + $0x58] sm:$0xff] }
  0x92   : > { %848 = vmatpush.bf16.msra.mxu2 %v8525_v30  ;;  %v8591_v30 = vld [vmem:[%s11407_s13 + $0x90] sm:$0xff] }
  0x93   : > { %861 = vmatpush.bf16.msra.mxu3 %v8533_v31  ;;  %823 = vmatmul.bf16.vlgmr.msra.gmra.mxu0 %v9966_v42  ;;  %v8599_v31 = vld [vmem:[%s11407_s13 + $0xd0] sm:$0xff] }
  0x94   : > { %1124 = vmatpush.bf16.msrb.mxu0 %v8548_v32  ;;  %836 = vmatmul.bf16.vlgmr.msra.gmra.mxu1 %v9970_v43  ;;  %v8573_v32 = vld [vmem:[%s11407_s13] sm:$0xff] }
  0x95   : > { %1137 = vmatpush.bf16.msrb.mxu1 %v8556_v35  ;;  %849 = vmatmul.bf16.vlgmr.msra.gmra.mxu2 %v9958_v40  ;;  %v8583_v35 = vld [vmem:[%s11407_s13 + $0x50] sm:$0xff] }
  0x96   : > { %1150 = vmatpush.bf16.msrb.mxu2 %v8564_v38  ;;  %862 = vmatmul.bf16.vlgmr.msra.gmra.mxu3 %v9962_v41  ;;  %v8590_v38 = vld [vmem:[%s11407_s13 + $0x88] sm:$0xff] }
  0x97   : > { %1163 = vmatpush.bf16.msrb.mxu3 %v8572_v39  ;;  %v8598_v39 = vld [vmem:[%s11407_s13 + $0xc8] sm:$0xff] }
  0x98   : > { %1125 = vmatpush.bf16.msrb.mxu0 %v8547_v44  ;;  %v8582_v44 = vld [vmem:[%s11407_s13 + $0x48] sm:$0xff] }
  0x99   : > { %1138 = vmatpush.bf16.msrb.mxu1 %v8555_v45  ;;  %v8589_v45 = vld [vmem:[%s11407_s13 + $0x80] sm:$0xff] }
  0x9a   : > { %1151 = vmatpush.bf16.msrb.mxu2 %v8563_v46  ;;  %v8597_v46 = vld [vmem:[%s11407_s13 + $0xc0] sm:$0xff] }
  0x9b   : > { %1164 = vmatpush.bf16.msrb.mxu3 %v8571_v47  ;;  %v8581_v47 = vld [vmem:[%s11407_s13 + $0x40] sm:$0xff] }
  0x9c   : > { %1126 = vmatpush.bf16.msrb.mxu0 %v8546_v48 }
  0x9d   : > { %1139 = vmatpush.bf16.msrb.mxu1 %v8554_v49 }
  0x9e   : > { %1152 = vmatpush.bf16.msrb.mxu2 %v8562_v50 }
  0x9f   : > { %1165 = vmatpush.bf16.msrb.mxu3 %v8570_v51 }
  0xa0   : > { %1127 = vmatpush.bf16.msrb.mxu0 %v8545_v52 }
  0xa1   : > { %1140 = vmatpush.bf16.msrb.mxu1 %v8553_v53 }
  0xa2   : > { %1153 = vmatpush.bf16.msrb.mxu2 %v8561_v54 }
  0xa3   : > { %1166 = vmatpush.bf16.msrb.mxu3 %v8569_v55 }
  0xa4   : > { %1128 = vmatpush.bf16.msrb.mxu0 %v8544_v56 }
  0xa5   : > { %1141 = vmatpush.bf16.msrb.mxu1 %v8552_v57 }
  0xa6   : > { %1154 = vmatpush.bf16.msrb.mxu2 %v8560_v58 }
  0xa7   : > { %1167 = vmatpush.bf16.msrb.mxu3 %v8568_v59 }
  0xa8   : > { %1129 = vmatpush.bf16.msrb.mxu0 %v8543_v60 }
  0xa9   : > { %1142 = vmatpush.bf16.msrb.mxu1 %v8551_v61 }
  0xaa   : > { %1155 = vmatpush.bf16.msrb.mxu2 %v8559_v62 }
  0xab   : > { %1168 = vmatpush.bf16.msrb.mxu3 %v8567_v63 }
  0xac   : > { %1130 = vmatpush.bf16.msrb.mxu0 %v8542_v0 }
  0xad   : > { %1143 = vmatpush.bf16.msrb.mxu1 %v8550_v1 }
  0xae   : > { %1156 = vmatpush.bf16.msrb.mxu2 %v8558_v2 }
  0xaf   : > { %1169 = vmatpush.bf16.msrb.mxu3 %v8566_v3 }
  0xb0   : > { %1131 = vmatpush.bf16.msrb.mxu0 %v8541_v4 }
  0xb1   : > { %1144 = vmatpush.bf16.msrb.mxu1 %v8549_v5 }
  0xb2   : > { %1157 = vmatpush.bf16.msrb.mxu2 %v8557_v6 }
  0xb3   : > { %1170 = vmatpush.bf16.msrb.mxu3 %v8565_v7  ;;  %1132 = vmatmul.bf16.vlgmr.msrb.gmra.mxu0 %v9966_v42 }
  0xb4   : > { %1432 = vmatpush.bf16.msra.mxu0 %v8580_v8  ;;  %1145 = vmatmul.bf16.vlgmr.msrb.gmra.mxu1 %v9970_v43 }
  0xb5   : > { %1158 = vmatmul.bf16.vlgmr.msrb.gmra.mxu2 %v9958_v40  ;;  %1445 = vmatpush.bf16.msra.mxu1 %v8588_v13 }
  0xb6   : > { %1458 = vmatpush.bf16.msra.mxu2 %v8596_v9  ;;  %1171 = vmatmul.bf16.vlgmr.msrb.gmra.mxu3 %v9962_v41 }
  0xb7   : > { %1471 = vmatpush.bf16.msra.mxu3 %v8604_v11 }
  0xb8   : > { %1433 = vmatpush.bf16.msra.mxu0 %v8579_v10 }
  0xb9   : > { %1446 = vmatpush.bf16.msra.mxu1 %v8587_v17 }
  0xba   : > { %1459 = vmatpush.bf16.msra.mxu2 %v8595_v14 }
  0xbb   : > { %1472 = vmatpush.bf16.msra.mxu3 %v8603_v15 }
  0xbc   : > { %1434 = vmatpush.bf16.msra.mxu0 %v8578_v12 }
  0xbd   : > { %1447 = vmatpush.bf16.msra.mxu1 %v8586_v21 }
  0xbe   : > { %1460 = vmatpush.bf16.msra.mxu2 %v8594_v18 }
  0xbf   : > { %1473 = vmatpush.bf16.msra.mxu3 %v8602_v19 }
  0xc0   : > { %1435 = vmatpush.bf16.msra.mxu0 %v8577_v16 }
  0xc1   : > { %1448 = vmatpush.bf16.msra.mxu1 %v8585_v25 }
  0xc2   : > { %1461 = vmatpush.bf16.msra.mxu2 %v8593_v22 }
  0xc3   : > { %1474 = vmatpush.bf16.msra.mxu3 %v8601_v23 }
  0xc4   : > { %1436 = vmatpush.bf16.msra.mxu0 %v8576_v20 }
  0xc5   : > { %1449 = vmatpush.bf16.msra.mxu1 %v8584_v29  ;;  %v8617_v29 = vld [vmem:[#allocation7 + $0x64] sm:$0xf] }
  0xc6   : > { %1462 = vmatpush.bf16.msra.mxu2 %v8592_v26 }
  0xc7   : > { %1475 = vmatpush.bf16.msra.mxu3 %v8600_v27  ;;  %v6435_v27 = vld [vmem:[#allocation7 + $0x60] sm:$0xf] }
  0xc8   : > { %1437 = vmatpush.bf16.msra.mxu0 %v8575_v24 }
  0xc9   : > { %1450 = vmatpush.bf16.msra.mxu1 %v8583_v35  ;;  %v8620_v35 = vld [vmem:[#allocation7 + $0x74] sm:$0xf0] }
  0xca   : > { %1463 = vmatpush.bf16.msra.mxu2 %v8591_v30 }
  0xcb   : > { %1476 = vmatpush.bf16.msra.mxu3 %v8599_v31  ;;  %v6437_v31 = vld [vmem:[#allocation7 + $0x70] sm:$0xf0] }
  0xcc   : > { %1438 = vmatpush.bf16.msra.mxu0 %v8574_v28  ;;  %v8619_v28 = vld [vmem:[#allocation7 + $0x6c] sm:$0xf0] }
  0xcd   : > { %1451 = vmatpush.bf16.msra.mxu1 %v8582_v44  ;;  %v6436_v30 = vor.u32 %v8619_v28, %v6435_v27  ;;  %v8618_v44 = vld [vmem:[#allocation7 + $0x6c] sm:$0xf] }
  0xce   : > { %1464 = vmatpush.bf16.msra.mxu2 %v8590_v38  ;;  %v6440_v38 = vor.u32 %v8617_v29, %v6437_v31 }
  0xcf   : > { %1477 = vmatpush.bf16.msra.mxu3 %v8598_v39 }
  0xd0   : > { %1439 = vmatpush.bf16.msra.mxu0 %v8573_v32  ;;  %v6443_v32 = vld [vmem:[#allocation7 + $0x68] sm:$0xf] }
  0xd1   : > { %1452 = vmatpush.bf16.msra.mxu1 %v8581_v47  ;;  %v6444_v39 = vor.u32 %v8620_v35, %v6443_v32 }
  0xd2   : > { %1465 = vmatpush.bf16.msra.mxu2 %v8589_v45  ;;  %v6445_v45 = vld [vmem:[#allocation7 + $0x78] sm:$0xf0] }
  0xd3   : > { %1440 = vmatmul.bf16.vlgmr.msra.gmra.mxu0 %v9966_v42  ;;  %1478 = vmatpush.bf16.msra.mxu3 %v8597_v46  ;;  %v6419_v46 = vld [vmem:[#allocation7 + $0x40] sm:$0xf]  ;;  %v6448_v47 = vor.u32 %v8618_v44, %v6445_v45 }
  0xd4   : > { %1453 = vmatmul.bf16.vlgmr.msra.gmra.mxu1 %v9970_v43 }
  0xd5   : > { %1466 = vmatmul.bf16.vlgmr.msra.gmra.mxu2 %v9958_v40 }
  0xd6   : > { %1479 = vmatmul.bf16.vlgmr.msra.gmra.mxu3 %v9962_v41  ;;  %1644 = vmatpush.bf16.msrb.mxu2 %v6436_v30 }
  0xd7   : > { %1657 = vmatpush.bf16.msrb.mxu3 %v6440_v38 }
 0x110   : > { %v824_v48 = vpop.f32.mrf.mxu0 }
 0x111   : > { %v837_v49 = vpop.f32.mrf.mxu1 }
 0x112   : > { %v838_v57 = vadd.f32 %v837_v49, %v824_v48  ;;  %v8615_v48 = vld [vmem:[#allocation7 + $0x4c] sm:$0xf0]  ;;  %v8613_v49 = vld [vmem:[#allocation7 + $0x44] sm:$0xf] }
 0x118   : > { %v850_v42 = vpop.f32.mrf.mxu2  ;;  %v826_v51 = vpop.f32.mrf.mxu0 }
 0x119   : > { %v863_v50 = vpop.f32.mrf.mxu3  ;;  %v839_v52 = vpop.f32.mrf.mxu1  ;;  %v851_v40 = vadd.f32 %v850_v42, %v838_v57  ;;  %v6421_v42 = vld [vmem:[#allocation7 + $0x50] sm:$0xf0]  ;;  %v6403_v57 = vld [vmem:[#allocation7 + $0x20] sm:$0xf] }
 0x11a   : > { %v6424_v51 = vor.u32 %v8613_v49, %v6421_v42  ;;  %v6427_v52 = vld [vmem:[#allocation7 + $0x48] sm:$0xf] }
 0x11b   : > { %v864_v41 = vadd.f32 %v863_v50, %v851_v40  ;;  %v6420_v50 = vor.u32 %v8615_v48, %v6419_v46  ;;  %v6405_v40 = vld [vmem:[#allocation7 + $0x30] sm:$0xf0] }
 0x11c   : > { %1658 = vmatpush.bf16.msrb.mxu3 %v6424_v51 }
 0x11d   : > { %v867_v4 = vmul.f32 0.125, %v864_v41  ;;  %1645 = vmatpush.bf16.msrb.mxu2 %v6420_v50  ;;  %v6413_v41 = vld [vmem:[#allocation7 + $0x38] sm:$0xf0] }
 0x11f   : > { %v1484_v5 = vpack.c.bf16 %v867_v4, %v867_v4 }
 0x120   : > { %v852_v53 = vpop.f32.mrf.mxu2 }
 0x121   : > { %v865_v54 = vpop.f32.mrf.mxu3  ;;  %v8616_v53 = vld [vmem:[#allocation7 + $0x54] sm:$0xf0] }
 0x122   : > { %v8614_v54 = vld [vmem:[#allocation7 + $0x4c] sm:$0xf] }
 0x130   : > { %v1133_v55 = vpop.f32.mrf.mxu0 }
 0x131   : > { %v1146_v56 = vpop.f32.mrf.mxu1 }
 0x132   : > { %v1147_v58 = vadd.f32 %v1146_v56, %v1133_v55  ;;  %v6428_v55 = vor.u32 %v8616_v53, %v6427_v52  ;;  %v6429_v56 = vld [vmem:[#allocation7 + $0x58] sm:$0xf0] }
 0x138   : > { %v1159_v59 = vpop.f32.mrf.mxu2  ;;  %v1135_v62 = vpop.f32.mrf.mxu0 }
 0x139   : > { %v1172_v60 = vpop.f32.mrf.mxu3  ;;  %v1160_v61 = vadd.f32 %v1159_v59, %v1147_v58  ;;  %v1148_v63 = vpop.f32.mrf.mxu1  ;;  %v8611_v58 = vld [vmem:[#allocation7 + $0x2c] sm:$0xf0]  ;;  %v6432_v59 = vor.u32 %v8614_v54, %v6429_v56  ;;  %v9589_v54 = vmov 0.0  }
 0x13a   : > { %v6404_v62 = vor.u32 %v8611_v58, %v6403_v57  ;;  %v8612_v63 = vld [vmem:[#allocation7 + $0x34] sm:$0xf0]  ;;  %1759 = vst [vmem:[#allocation3] sm:$0xff] %v9589_v54 }
 0x13b   : > { %v1173_v0 = vadd.f32 %v1172_v60, %v1160_v61  ;;  %v8609_v60 = vld [vmem:[#allocation7 + $0x24] sm:$0xf]  ;;  %v6411_v61 = vld [vmem:[#allocation7 + $0x28] sm:$0xf]  ;;  %1760 = vst [vmem:[#allocation3 + $0x18] sm:$0xff] %v9589_v54 }
 0x13c   : > { %1646 = vmatpush.bf16.msrb.mxu2 %v6404_v62  ;;  %1761 = vst [vmem:[#allocation3 + $0x8] sm:$0xff] %v9589_v54  ;;  %v1693_v62 = vld [vmem:[#allocation15] sm:$0xf] }
 0x13d   : > { %v1485_v43 = vpack.c.bf16 %v1173_v0, %v1173_v0  ;;  %v8610_v0 = vld [vmem:[#allocation7 + $0x2c] sm:$0xf]  ;;  %1762 = vst [vmem:[#allocation3 + $0x10] sm:$0xff] %v9589_v54 }
 0x13f   : > { %v1491_v1 = vsel %vm1486_vm0, %v1485_v43, 0  ;;  %v6408_v43 = vor.u32 %v8609_v60, %v6405_v40  ;;  %v1692_v40 = vld [vmem:[#allocation13] sm:$0xf] }
 0x140   : > { %v1161_v2 = vpop.f32.mrf.mxu2  ;;  %1500 = vmatpush.bf16.xpose.msrb.mxu0 %v1491_v1  ;;  %v6412_v1 = vor.u32 %v8612_v63, %v6411_v61 }
 0x141   : > { %v1174_v3 = vpop.f32.mrf.mxu3  ;;  %v6416_v2 = vor.u32 %v8610_v0, %v6413_v41  ;;  %1659 = vmatpush.bf16.msrb.mxu3 %v6408_v43  ;;  %v1730_v0 = vperm.slane %v1692_v40, 0  ;;  %v1731_v41 = vperm.slane %v1692_v40, 1  ;;  %v1732_v43 = vperm.slane %v1692_v40, 2 }
 0x147   : > { %6383 = vmatmul.msk.bf16.vlgmr.msrb.gmra.mxu0 %vm1486_vm0, %v1484_v5 }
 0x148   : > { %1670 = vmatpush.bf16.msra.mxu0 %v6444_v39 }
 0x14c   : > { %1671 = vmatpush.bf16.msra.mxu0 %v6428_v55 }
 0x150   : > { %v1441_v6 = vpop.f32.mrf.mxu0  ;;  %1672 = vmatpush.bf16.msra.mxu0 %v6412_v1  ;;  %v1733_v1 = vperm.slane %v1692_v40, 3 }
 0x151   : > { %v1454_v8 = vpop.f32.mrf.mxu1 }
 0x152   : > { %v1455_v9 = vadd.f32 %v1454_v8, %v1441_v6  ;;  %v8607_v8 = vld [vmem:[#allocation7 + $0xc] sm:$0xf0] }
 0x158   : > { %v1443_v7 = vpop.f32.mrf.mxu0  ;;  %v1467_v10 = vpop.f32.mrf.mxu2 }
 0x159   : > { %v1468_v11 = vadd.f32 %v1467_v10, %v1455_v9  ;;  %v1480_v12 = vpop.f32.mrf.mxu3  ;;  %v1456_v15 = vpop.f32.mrf.mxu1  ;;  %v6387_v7 = vld [vmem:[#allocation7] sm:$0xf]  ;;  %v8605_v9 = vld [vmem:[#allocation7 + $0x4] sm:$0xf] }
 0x15a   : > { %v6388_v10 = vor.u32 %v8607_v8, %v6387_v7 }
 0x15b   : > { %v1481_v13 = vadd.f32 %v1480_v12, %v1468_v11  ;;  %v6389_v11 = vld [vmem:[#allocation7 + $0x10] sm:$0xf0]  ;;  %v6395_v12 = vld [vmem:[#allocation7 + $0x8] sm:$0xf] }
 0x15c   : > { %1647 = vmatpush.bf16.msrb.mxu2 %v6388_v10  ;;  %v1746_v10 = vperm.slane %v1693_v62, 3 }
 0x15d   : > { %v1519_v14 = vpack.c.bf16 %v1481_v13, %v1481_v13  ;;  %v8608_v13 = vld [vmem:[#allocation7 + $0x14] sm:$0xf0] }
 0x15e   : > { %v6396_v15 = vor.u32 %v8608_v13, %v6395_v12 }
 0x15f   : > { %v1525_v16 = vsel %vm1523_vm1, %v1519_v14, 0  ;;  %v6392_v14 = vor.u32 %v8605_v9, %v6389_v11 }
 0x160   : > { %1534 = vmatpush.bf16.msrb.mxu1 %v1525_v16  ;;  %v1469_v17 = vpop.f32.mrf.mxu2  ;;  %v8606_v16 = vld [vmem:[#allocation7 + $0xc] sm:$0xf]  ;;  %1673 = vmatpush.bf16.msra.mxu0 %v6396_v15 }
 0x161   : > { %v1482_v18 = vpop.f32.mrf.mxu3  ;;  %v6397_v17 = vld [vmem:[#allocation7 + $0x18] sm:$0xf0]  ;;  %1660 = vmatpush.bf16.msrb.mxu3 %v6392_v14 }
 0x162   : > { %v6400_v18 = vor.u32 %v8606_v16, %v6397_v17 }
 0x164   : > { %1683 = vmatpush.bf16.msra.mxu1 %v6448_v47 }
 0x168   : > { %1684 = vmatpush.bf16.msra.mxu1 %v6432_v59 }
 0x16c   : > { %1685 = vmatpush.bf16.msra.mxu1 %v6416_v2  ;;  %v1743_v2 = vperm.slane %v1693_v62, 0 }
 0x170   : > { %1686 = vmatpush.bf16.msra.mxu1 %v6400_v18 }
 0x1c4   : > { %v1502_v19 = vpop.f32.mrf.mxu0 }
 0x1c5   : > { %v1507_v20 = vsel %vm1506_vm2, %v1502_v19, -inf }
 0x1c6   : > { %1508 = vmax.xlane.f32.xlu0 %v1507_v20 }
 0x1cc   : > { %v1504_v21 = vpop.f32.mrf.mxu0 }
 0x239   : > { %v1509_v22 = vpop.xlane.xlu0 %1508 }
 0x23a   : > { %v1510_v23 = vsub.f32 %v1502_v19, %v1509_v22 }
 0x23c   : > { %v1511_v24 = vmul.f32 1.442695, %v1510_v23 }
 0x23e   : > { %9246 = vpow2.f32 %v1511_v24 }
 0x244   : > { %v9247_v25 = vpop.eup %9246 }
 0x245   : > { %v1513_v26 = vsel %vm1506_vm2, %v9247_v25, 0.0 }
 0x246   : > { %1514 = vadd.xlane.f32.xlu0 %v1513_v26 }
 0x2b9   : > { %v1515_v3 = vpop.xlane.xlu0 %1514 }
 0x2ba   : > { %9248 = vrcp.f32 %v1515_v3  ;;  %v1744_v3 = vperm.slane %v1693_v62, 1 }
 0x2c0   : > { %v9249_v4 = vpop.eup %9248 }
 0x2c1   : > { %v1517_v5 = vmul.f32 %v9249_v4, %v9247_v25  ;;  %v1745_v4 = vperm.slane %v1693_v62, 2 }
 0x2c3   : > { %v1518_v6 = vpack.c.bf16 %v1517_v5, %v1517_v5 }
 0x2c5   : > { %6384 = vmatmul.msk.bf16.vlgmr.msrb.gmra.mxu1 %vm1506_vm2, %v1518_v6 }
 0x342   : > { %v1536_v19 = vpop.f32.mrf.mxu1 }
 0x343   : > { %v1540_v20 = vpack.c.bf16 %v1536_v19, %v1536_v19 }
 0x345   : > { %6449 = vmatmul.msk.bf16.vlgmr.msrb.gmra.mxu2 %vm1486_vm0, %v1540_v20  ;;  %6450 = vmatmul.msk.bf16.vlgmr.msrb.gmra.mxu3 %vm1486_vm0, %v1540_v20 }
 0x346   : > { %6451 = vmatmul.msk.bf16.vlgmr.msra.gmra.mxu0 %vm1486_vm0, %v1540_v20  ;;  %6452 = vmatmul.msk.bf16.vlgmr.msra.gmra.mxu1 %vm1486_vm0, %v1540_v20 }
 0x34a   : > { %v1538_v21 = vpop.f32.mrf.mxu1 }
 0x3c3   : > { %v1675_v22 = vpop.f32.mrf.mxu0  ;;  %v1688_v23 = vpop.f32.mrf.mxu1 }
 0x3c4   : > { %v1676_v28 = vadd.f32 %v1675_v22, %v9939_v33  ;;  %v1689_v32 = vadd.f32 %v1688_v23, %v9941_v34 }
 0x3c8   : > { %v1649_v24 = vpop.f32.mrf.mxu2  ;;  %v1662_v25 = vpop.f32.mrf.mxu3 }
 0x3c9   : > { %v1650_v26 = vadd.f32 %v1649_v24, %v9946_v36  ;;  %v1663_v27 = vadd.f32 %v1662_v25, %v9948_v37 }
 0x3cb   : > { %v1694_v29 = vadd.f32 %v1663_v27, %v1650_v26  ;;  %v1677_v30 = vpop.f32.mrf.mxu0  ;;  %v1690_v31 = vpop.f32.mrf.mxu1 }
 0x3cd   : > { %v1695_v35 = vadd.f32 %v1694_v29, %v1676_v28 }
 0x3cf   : > { %v1696_v38 = vadd.f32 %v1695_v35, %v1689_v32 }
 0x3d0   : > { %v1651_v39 = vpop.f32.mrf.mxu2  ;;  %v1664_v44 = vpop.f32.mrf.mxu3 }
 0x3d1   : > { %1697 = vadd.xlane.f32.xlu1 %v1696_v38 }
 0x444   : > { %v1698_v45 = vpop.xlane.xlu1 %1697 }
 0x445   : > { %v1699_v46 = vmul.f32 0.001953125, %v1698_v45 }
 0x447   : > { %v1700_v47 = vsub.f32 %v1650_v26, %v1699_v46  ;;  %v1701_v48 = vsub.f32 %v1663_v27, %v1699_v46  ;;  %v1702_v49 = vsub.f32 %v1676_v28, %v1699_v46  ;;  %v1703_v36 = vsub.f32 %v1689_v32, %v1699_v46 }
 0x449   : > { %v1704_v42 = vmul.f32 %v1700_v47, %v1700_v47  ;;  %v1705_v37 = vmul.f32 %v1701_v48, %v1701_v48  ;;  %v1706_v50 = vmul.f32 %v1702_v49, %v1702_v49  ;;  %v1707_v51 = vmul.f32 %v1703_v36, %v1703_v36 }
 0x44b   : > { %v1708_v33 = vadd.f32 %v1705_v37, %v1704_v42 }
 0x44d   : > { %v1709_v52 = vadd.f32 %v1708_v33, %v1706_v50 }
 0x44f   : > { %v1710_v53 = vadd.f32 %v1709_v52, %v1707_v51 }
 0x451   : > { %1711 = vadd.xlane.f32.xlu1 %v1710_v53 }
 0x4c4   : > { %v1712_v34 = vpop.xlane.xlu1 %1711 }
 0x4c5   : > { %v1713_v55 = vmul.f32 0.001953125, %v1712_v34 }
 0x4c7   : > { %v1714_v56 = vadd.f32 1e-05, %v1713_v55 }
 0x4c9   : > { %9250 = vrsqrt.f32 %v1714_v56  ;;  %vm1721_vm4 = vweird.f32 %v1714_v56 }
 0x4cf   : > { %v9251_v57 = vpop.eup %9250 }
 0x4d0   : > { %v1716_v58 = vmul.f32 %v9251_v57, %v1714_v56  ;;  %vm1722_vm3 = vweird.f32 %v9251_v57 }
 0x4d1   : > { %vm1723_vm5 = vmor %vm1721_vm4, %vm1722_vm3 }
 0x4d2   : > { %v1717_v59 = vmul.f32 %v9251_v57, %v1716_v58 }
 0x4d4   : > { %v1718_v60 = vmul.f32 0.5, %v1717_v59 }
 0x4d6   : > { %v1719_v61 = vsub.f32 1.5, %v1718_v60 }
 0x4d8   : > { %v1720_v63 = vmul.f32 %v9251_v57, %v1719_v61 }
 0x4da   : > { %v1724_v5 = vsel %vm1723_vm5, %v9251_v57, %v1720_v63 }
 0x4db   : > { %v1725_v6 = vmul.f32 %v1724_v5, %v1700_v47  ;;  %v1726_v7 = vmul.f32 %v1724_v5, %v1701_v48  ;;  %v1727_v8 = vmul.f32 %v1724_v5, %v1702_v49  ;;  %v1728_v9 = vmul.f32 %v1724_v5, %v1703_v36 }
 0x4dd   : > { %v1738_v11 = vmul.f32 %v1730_v0, %v1725_v6  ;;  %v1739_v12 = vmul.f32 %v1731_v41, %v1726_v7  ;;  %v1740_v13 = vmul.f32 %v1732_v43, %v1727_v8  ;;  %v1741_v14 = vmul.f32 %v1733_v1, %v1728_v9 }
 0x4df   : > { %v1751_v15 = vadd.f32 %v1743_v2, %v1738_v11  ;;  %v1752_v16 = vadd.f32 %v1744_v3, %v1739_v12  ;;  %v1753_v17 = vadd.f32 %v1745_v4, %v1740_v13  ;;  %v1754_v18 = vadd.f32 %v1746_v10, %v1741_v14 }
 0x4e1   : > { %1755 = vst [vmem:[#allocation2 + $0x10] sm:$0xff] %v1751_v15 }
 0x4e2   : > { %1756 = vst [vmem:[#allocation2] sm:$0xff] %v1752_v16 }
 0x4e3   : > { %1757 = vst [vmem:[#allocation2 + $0x18] sm:$0xff] %v1753_v17 }
 0x4e4   : > { %1758 = vst [vmem:[#allocation2 + $0x8] sm:$0xff] %v1754_v18 }
 0x4e5 PF: > { %v6679_v19 = vld [vmem:[%s9819_s24 + $0x1c0] sm:$0xf]  ;;  %p8501_p1 = scmp.ne.s32.totalorder %s9670_s21, 1 }
 0x4e6   : > { %v8681_v20 = vld [vmem:[%s9819_s24 + $0x1dc] sm:$0xf0] }
 0x4e7   : > { %v6935_v21 = vld [vmem:[%s9819_s24 + $0x3c0] sm:$0xf]  ;;  %v6680_v22 = vor.u32 %v8681_v20, %v6679_v19 }
 0x4e8   : > { %v8745_v23 = vld [vmem:[%s9819_s24 + $0x3dc] sm:$0xf0] }
 0x4e9   : > { %v7191_v24 = vld [vmem:[%s9819_s24 + $0x5c0] sm:$0xf]  ;;  %v6936_v26 = vor.u32 %v8745_v23, %v6935_v21  ;;  %3325 = vmatpush.bf16.msra.mxu0 %v6680_v22 }
 0x4ea   : > { %v8809_v25 = vld [vmem:[%s9819_s24 + $0x5dc] sm:$0xf0] }
 0x4eb   : > { %v7192_v27 = vor.u32 %v8809_v25, %v7191_v24  ;;  %v7447_v28 = vld [vmem:[%s9819_s24 + $0x7c0] sm:$0xf]  ;;  %3338 = vmatpush.bf16.msra.mxu1 %v6936_v26 }
 0x4ec   : > { %v8873_v29 = vld [vmem:[%s9819_s24 + $0x7dc] sm:$0xf0] }
 0x4ed   : > { %v6647_v30 = vld [vmem:[%s9819_s24 + $0x180] sm:$0xf]  ;;  %v7448_v31 = vor.u32 %v8873_v29, %v7447_v28  ;;  %3351 = vmatpush.bf16.msra.mxu2 %v7192_v27 }
 0x4ee   : > { %v8673_v32 = vld [vmem:[%s9819_s24 + $0x19c] sm:$0xf0] }
 0x4ef   : > { %v6903_v35 = vld [vmem:[%s9819_s24 + $0x380] sm:$0xf]  ;;  %v6648_v39 = vor.u32 %v8673_v32, %v6647_v30  ;;  %3364 = vmatpush.bf16.msra.mxu3 %v7448_v31 }
 0x4f0   : > { %v8737_v38 = vld [vmem:[%s9819_s24 + $0x39c] sm:$0xf0] }
 0x4f1   : > { %v6904_v44 = vor.u32 %v8737_v38, %v6903_v35  ;;  %v7159_v45 = vld [vmem:[%s9819_s24 + $0x580] sm:$0xf]  ;;  %3326 = vmatpush.bf16.msra.mxu0 %v6648_v39 }
 0x4f2   : > { %v8801_v46 = vld [vmem:[%s9819_s24 + $0x59c] sm:$0xf0] }
 0x4f3   : > { %v7415_v47 = vld [vmem:[%s9819_s24 + $0x780] sm:$0xf]  ;;  %v7160_v48 = vor.u32 %v8801_v46, %v7159_v45  ;;  %3339 = vmatpush.bf16.msra.mxu1 %v6904_v44 }
 0x4f4   : > { %v8865_v49 = vld [vmem:[%s9819_s24 + $0x79c] sm:$0xf0] }
 0x4f5   : > { %v6615_v36 = vld [vmem:[%s9819_s24 + $0x140] sm:$0xf]  ;;  %v7416_v37 = vor.u32 %v8865_v49, %v7415_v47  ;;  %3352 = vmatpush.bf16.msra.mxu2 %v7160_v48 }
 0x4f6   : > { %v8665_v42 = vld [vmem:[%s9819_s24 + $0x15c] sm:$0xf0] }
 0x4f7   : > { %v6871_v50 = vld [vmem:[%s9819_s24 + $0x340] sm:$0xf]  ;;  %v6616_v52 = vor.u32 %v8665_v42, %v6615_v36  ;;  %3365 = vmatpush.bf16.msra.mxu3 %v7416_v37 }
 0x4f8   : > { %v8729_v33 = vld [vmem:[%s9819_s24 + $0x35c] sm:$0xf0] }
 0x4f9   : > { %v7127_v51 = vld [vmem:[%s9819_s24 + $0x540] sm:$0xf]  ;;  %v6872_v55 = vor.u32 %v8729_v33, %v6871_v50  ;;  %3327 = vmatpush.bf16.msra.mxu0 %v6616_v52  ;;  %v6681_v52 = vld [vmem:[%s9819_s24 + $0x1e0] sm:$0xf0] }
 0x4fa   : > { %v8793_v53 = vld [vmem:[%s9819_s24 + $0x55c] sm:$0xf0] }
 0x4fb   : > { %v7383_v34 = vld [vmem:[%s9819_s24 + $0x740] sm:$0xf]  ;;  %v7128_v56 = vor.u32 %v8793_v53, %v7127_v51  ;;  %3340 = vmatpush.bf16.msra.mxu1 %v6872_v55  ;;  %v8677_v51 = vld [vmem:[%s9819_s24 + $0x1c4] sm:$0xf] }
 0x4fc   : > { %v8857_v54 = vld [vmem:[%s9819_s24 + $0x75c] sm:$0xf0]  ;;  %v8741_v53 = vld [vmem:[%s9819_s24 + $0x3c4] sm:$0xf] }
 0x4fd   : > { %v6583_v57 = vld [vmem:[%s9819_s24 + $0x100] sm:$0xf]  ;;  %v7384_v60 = vor.u32 %v8857_v54, %v7383_v34  ;;  %3353 = vmatpush.bf16.msra.mxu2 %v7128_v56  ;;  %v6937_v54 = vld [vmem:[%s9819_s24 + $0x3e0] sm:$0xf0] }
 0x4fe   : > { %v8657_v58 = vld [vmem:[%s9819_s24 + $0x11c] sm:$0xf0]  ;;  %v8805_v55 = vld [vmem:[%s9819_s24 + $0x5c4] sm:$0xf] }
 0x4ff   : > { %v6839_v59 = vld [vmem:[%s9819_s24 + $0x300] sm:$0xf]  ;;  %v6584_v41 = vor.u32 %v8657_v58, %v6583_v57  ;;  %3366 = vmatpush.bf16.msra.mxu3 %v7384_v60  ;;  %v7193_v56 = vld [vmem:[%s9819_s24 + $0x5e0] sm:$0xf0] }
 0x500   : > { %v8721_v40 = vld [vmem:[%s9819_s24 + $0x31c] sm:$0xf0]  ;;  %v7449_v60 = vld [vmem:[%s9819_s24 + $0x7e0] sm:$0xf0] }
 0x501   : > { %v7095_v61 = vld [vmem:[%s9819_s24 + $0x500] sm:$0xf]  ;;  %v6840_v43 = vor.u32 %v8721_v40, %v6839_v59  ;;  %3328 = vmatpush.bf16.msra.mxu0 %v6584_v41  ;;  %v8869_v59 = vld [vmem:[%s9819_s24 + $0x7c4] sm:$0xf] }
 0x502   : > { %v8785_v62 = vld [vmem:[%s9819_s24 + $0x51c] sm:$0xf0]  ;;  %v6649_v41 = vld [vmem:[%s9819_s24 + $0x1a0] sm:$0xf0] }
 0x503   : > { %v7351_v63 = vld [vmem:[%s9819_s24 + $0x700] sm:$0xf]  ;;  %v7096_v1 = vor.u32 %v8785_v62, %v7095_v61  ;;  %3341 = vmatpush.bf16.msra.mxu1 %v6840_v43  ;;  %v6684_v61 = vor.u32 %v8677_v51, %v6681_v52  ;;  %v6940_v62 = vor.u32 %v8741_v53, %v6937_v54  ;;  %v8733_v43 = vld [vmem:[%s9819_s24 + $0x384] sm:$0xf] }
 0x504   : > { %v8849_v0 = vld [vmem:[%s9819_s24 + $0x71c] sm:$0xf0]  ;;  %v8773_v51 = vld [vmem:[%s9819_s24 + $0x4c4] sm:$0xf] }
 0x505   : > { %v6551_v2 = vld [vmem:[%s9819_s24 + $0xc0] sm:$0xf]  ;;  %v7352_v5 = vor.u32 %v8849_v0, %v7351_v63  ;;  %3354 = vmatpush.bf16.msra.mxu2 %v7096_v1  ;;  %v7196_v63 = vor.u32 %v8805_v55, %v7193_v56  ;;  %v8669_v0 = vld [vmem:[%s9819_s24 + $0x184] sm:$0xf]  ;;  %v7452_v1 = vor.u32 %v8869_v59, %v7449_v60 }
 0x506   : > { %v8649_v3 = vld [vmem:[%s9819_s24 + $0xdc] sm:$0xf0]  ;;  %v7065_v52 = vld [vmem:[%s9819_s24 + $0x4e0] sm:$0xf0] }
 0x507   : > { %v6807_v4 = vld [vmem:[%s9819_s24 + $0x2c0] sm:$0xf]  ;;  %v6552_v11 = vor.u32 %v8649_v3, %v6551_v2  ;;  %3367 = vmatpush.bf16.msra.mxu3 %v7352_v5  ;;  %v6905_v2 = vld [vmem:[%s9819_s24 + $0x3a0] sm:$0xf0]  ;;  %v7068_v56 = vor.u32 %v8773_v51, %v7065_v52  ;;  %v7167_v51 = vld [vmem:[%s9819_s24 + $0x588] sm:$0xf] }
 0x508   : > { %v8713_v6 = vld [vmem:[%s9819_s24 + $0x2dc] sm:$0xf0]  ;;  %v8797_v3 = vld [vmem:[%s9819_s24 + $0x584] sm:$0xf]  ;;  %v8802_v52 = vld [vmem:[%s9819_s24 + $0x5a4] sm:$0xf0] }
 0x509   : > { %v7063_v7 = vld [vmem:[%s9819_s24 + $0x4c0] sm:$0xf]  ;;  %v6808_v12 = vor.u32 %v8713_v6, %v6807_v4  ;;  %3329 = vmatpush.bf16.msra.mxu0 %v6552_v11  ;;  %v7161_v4 = vld [vmem:[%s9819_s24 + $0x5a0] sm:$0xf0] }
 0x50a   : > { %v8777_v8 = vld [vmem:[%s9819_s24 + $0x4dc] sm:$0xf0]  ;;  %v8861_v5 = vld [vmem:[%s9819_s24 + $0x784] sm:$0xf] }
 0x50b   : > { %v7319_v9 = vld [vmem:[%s9819_s24 + $0x6c0] sm:$0xf]  ;;  %v7064_v13 = vor.u32 %v8777_v8, %v7063_v7  ;;  %3342 = vmatpush.bf16.msra.mxu1 %v6808_v12  ;;  %v7417_v6 = vld [vmem:[%s9819_s24 + $0x7a0] sm:$0xf0]  ;;  %v6652_v7 = vor.u32 %v8669_v0, %v6649_v41 }
 0x50c   : > { %v8841_v10 = vld [vmem:[%s9819_s24 + $0x6dc] sm:$0xf0]  ;;  %v8661_v8 = vld [vmem:[%s9819_s24 + $0x144] sm:$0xf] }
 0x50d   : > { %v6519_v14 = vld [vmem:[%s9819_s24 + $0x80] sm:$0xf]  ;;  %v7320_v17 = vor.u32 %v8841_v10, %v7319_v9  ;;  %3355 = vmatpush.bf16.msra.mxu2 %v7064_v13  ;;  %v6908_v9 = vor.u32 %v8733_v43, %v6905_v2  ;;  %v7164_v10 = vor.u32 %v8797_v3, %v7161_v4  ;;  %v6617_v11 = vld [vmem:[%s9819_s24 + $0x160] sm:$0xf0] }
 0x50e   : > { %v8641_v15 = vld [vmem:[%s9819_s24 + $0x9c] sm:$0xf0]  ;;  %v8725_v12 = vld [vmem:[%s9819_s24 + $0x344] sm:$0xf] }
 0x50f   : > { %v6775_v16 = vld [vmem:[%s9819_s24 + $0x280] sm:$0xf]  ;;  %v6520_v23 = vor.u32 %v8641_v15, %v6519_v14  ;;  %3368 = vmatpush.bf16.msra.mxu3 %v7320_v17  ;;  %v6873_v13 = vld [vmem:[%s9819_s24 + $0x360] sm:$0xf0]  ;;  %v7420_v14 = vor.u32 %v8861_v5, %v7417_v6 }
 0x510   : > { %v8705_v18 = vld [vmem:[%s9819_s24 + $0x29c] sm:$0xf0]  ;;  %v8789_v15 = vld [vmem:[%s9819_s24 + $0x544] sm:$0xf] }
 0x511   : > { %v7031_v19 = vld [vmem:[%s9819_s24 + $0x480] sm:$0xf]  ;;  %v6776_v24 = vor.u32 %v8705_v18, %v6775_v16  ;;  %3330 = vmatpush.bf16.msra.mxu0 %v6520_v23  ;;  %v7129_v16 = vld [vmem:[%s9819_s24 + $0x560] sm:$0xf0]  ;;  %v1763_v23 = vld [vmem:[#allocation2 + $0x10] sm:$0xff] }
 0x512   : > { %v8769_v20 = vld [vmem:[%s9819_s24 + $0x49c] sm:$0xf0]  ;;  %v8853_v17 = vld [vmem:[%s9819_s24 + $0x744] sm:$0xf] }
 0x513   : > { %v7287_v21 = vld [vmem:[%s9819_s24 + $0x680] sm:$0xf]  ;;  %v7032_v25 = vor.u32 %v8769_v20, %v7031_v19  ;;  %3343 = vmatpush.bf16.msra.mxu1 %v6776_v24  ;;  %v7385_v18 = vld [vmem:[%s9819_s24 + $0x760] sm:$0xf0]  ;;  %v6620_v19 = vor.u32 %v8661_v8, %v6617_v11  ;;  %v6876_v20 = vor.u32 %v8725_v12, %v6873_v13  ;;  %v7132_v24 = vor.u32 %v8789_v15, %v7129_v16 }
 0x514   : > { %v8833_v22 = vld [vmem:[%s9819_s24 + $0x69c] sm:$0xf0]  ;;  %v8837_v53 = vld [vmem:[%s9819_s24 + $0x6c4] sm:$0xf] }
 0x515   : > { %v6487_v26 = vld [vmem:[%s9819_s24 + $0x40] sm:$0xf]  ;;  %v7288_v29 = vor.u32 %v8833_v22, %v7287_v21  ;;  %3356 = vmatpush.bf16.msra.mxu2 %v7032_v25  ;;  %v8653_v21 = vld [vmem:[%s9819_s24 + $0x104] sm:$0xf]  ;;  %v1765_v22 = vld [vmem:[#allocation2 + $0x18] sm:$0xff] }
 0x516   : > { %v8633_v27 = vld [vmem:[%s9819_s24 + $0x5c] sm:$0xf0]  ;;  %v6585_v25 = vld [vmem:[%s9819_s24 + $0x120] sm:$0xf0] }
 0x517   : > { %v6743_v28 = vld [vmem:[%s9819_s24 + $0x240] sm:$0xf]  ;;  %v6488_v39 = vor.u32 %v8633_v27, %v6487_v26  ;;  %3369 = vmatpush.bf16.msra.mxu3 %v7288_v29  ;;  %v8717_v26 = vld [vmem:[%s9819_s24 + $0x304] sm:$0xf]  ;;  %v10268_v27 = vpack.c.bf16 %v1765_v22, %v1765_v22  ;;  %v1766_v29 = vld [vmem:[#allocation2 + $0x8] sm:$0xff] }
 0x518   : > { %v8697_v30 = vld [vmem:[%s9819_s24 + $0x25c] sm:$0xf0]  ;;  %v8701_v59 = vld [vmem:[%s9819_s24 + $0x284] sm:$0xf] }
 0x519   : > { %v6999_v31 = vld [vmem:[%s9819_s24 + $0x440] sm:$0xf]  ;;  %v6744_v46 = vor.u32 %v8697_v30, %v6743_v28  ;;  %3331 = vmatpush.bf16.msra.mxu0 %v6488_v39  ;;  %v10270_v28 = vpack.c.bf16 %v1763_v23, %v1763_v23  ;;  %v7388_v30 = vor.u32 %v8853_v17, %v7385_v18  ;;  %v8845_v39 = vld [vmem:[%s9819_s24 + $0x704] sm:$0xf]  ;;  %v6687_v23 = vld [vmem:[%s9819_s24 + $0x1c8] sm:$0xf] }
 0x51a   : > { %v8761_v32 = vld [vmem:[%s9819_s24 + $0x45c] sm:$0xf0]  ;;  %v7289_v0 = vld [vmem:[%s9819_s24 + $0x6a0] sm:$0xf0] }
 0x51b   : > { %v7255_v35 = vld [vmem:[%s9819_s24 + $0x640] sm:$0xf]  ;;  %v7000_v47 = vor.u32 %v8761_v32, %v6999_v31  ;;  %3344 = vmatpush.bf16.msra.mxu1 %v6744_v46  ;;  %v6841_v31 = vld [vmem:[%s9819_s24 + $0x320] sm:$0xf0] }
 0x51c   : > { %v8825_v38 = vld [vmem:[%s9819_s24 + $0x65c] sm:$0xf0]  ;;  %v8781_v32 = vld [vmem:[%s9819_s24 + $0x504] sm:$0xf] }
 0x51d   : > { %v6455_v44 = vld [vmem:[%s9819_s24] sm:$0xf]  ;;  %v7256_v42 = vor.u32 %v8825_v38, %v7255_v35  ;;  %3357 = vmatpush.bf16.msra.mxu2 %v7000_v47  ;;  %v7097_v35 = vld [vmem:[%s9819_s24 + $0x520] sm:$0xf0]  ;;  %v10275_v38 = vpack.c.bf16 %v1766_v29, %v1766_v29  ;;  %v6844_v47 = vor.u32 %v8717_v26, %v6841_v31  ;;  %v8746_v29 = vld [vmem:[%s9819_s24 + $0x3e4] sm:$0xf0] }
 0x51e   : > { %v8625_v45 = vld [vmem:[%s9819_s24 + $0x1c] sm:$0xf0]  ;;  %v8629_v2 = vld [vmem:[%s9819_s24 + $0x44] sm:$0xf]  ;;  %v8810_v31 = vld [vmem:[%s9819_s24 + $0x5e4] sm:$0xf0] }
 0x51f   : > { %v6711_v48 = vld [vmem:[%s9819_s24 + $0x200] sm:$0xf]  ;;  %v6456_v34 = vor.u32 %v8625_v45, %v6455_v44  ;;  %3370 = vmatpush.bf16.msra.mxu3 %v7256_v42  ;;  %v7353_v44 = vld [vmem:[%s9819_s24 + $0x720] sm:$0xf0]  ;;  %v6588_v45 = vor.u32 %v8653_v21, %v6585_v25  ;;  %v6943_v25 = vld [vmem:[%s9819_s24 + $0x3c8] sm:$0xf] }
 0x520   : > { %v8689_v49 = vld [vmem:[%s9819_s24 + $0x21c] sm:$0xf0]  ;;  %v8709_v42 = vld [vmem:[%s9819_s24 + $0x2c4] sm:$0xf] }
 0x521   : > { %v6967_v36 = vld [vmem:[%s9819_s24 + $0x400] sm:$0xf]  ;;  %v6712_v57 = vor.u32 %v8689_v49, %v6711_v48  ;;  %3332 = vmatpush.bf16.msra.mxu0 %v6456_v34  ;;  %v7100_v48 = vor.u32 %v8781_v32, %v7097_v35  ;;  %v8645_v49 = vld [vmem:[%s9819_s24 + $0xc4] sm:$0xf] }
 0x522   : > { %v8753_v37 = vld [vmem:[%s9819_s24 + $0x41c] sm:$0xf0]  ;;  %v7321_v34 = vld [vmem:[%s9819_s24 + $0x6e0] sm:$0xf0] }
 0x523   : > { %v7223_v50 = vld [vmem:[%s9819_s24 + $0x600] sm:$0xf]  ;;  %v6968_v58 = vor.u32 %v8753_v37, %v6967_v36  ;;  %3345 = vmatpush.bf16.msra.mxu1 %v6712_v57  ;;  %v6553_v36 = vld [vmem:[%s9819_s24 + $0xe0] sm:$0xf0]  ;;  %v7324_v60 = vor.u32 %v8837_v53, %v7321_v34  ;;  %v7423_v53 = vld [vmem:[%s9819_s24 + $0x788] sm:$0xf] }
 0x524   : > { %v8817_v33 = vld [vmem:[%s9819_s24 + $0x61c] sm:$0xf0]  ;;  %3333 = vmatmul.bf16.vlgmr.msra.gmra.mxu0 %v10270_v28  ;;  %v6556_v54 = vor.u32 %v8645_v49, %v6553_v36  ;;  %v8637_v57 = vld [vmem:[%s9819_s24 + $0x84] sm:$0xf]  ;;  %v6655_v49 = vld [vmem:[%s9819_s24 + $0x188] sm:$0xf] }
 0x525   : > { %v7224_v40 = vor.u32 %v8817_v33, %v7223_v50  ;;  %3358 = vmatpush.bf16.msra.mxu2 %v6968_v58  ;;  %3377 = vmatpush.bf16.msrb.mxu0 %v6684_v61  ;;  %v1764_v46 = vld [vmem:[#allocation2] sm:$0xff]  ;;  %v7356_v50 = vor.u32 %v8845_v39, %v7353_v44  ;;  %v7455_v39 = vld [vmem:[%s9819_s24 + $0x7c8] sm:$0xf] }
 0x526   : > { %v10285_v37 = vpack.c.bf16 %v1764_v46, %v1764_v46  ;;  %v6809_v33 = vld [vmem:[%s9819_s24 + $0x2e0] sm:$0xf0]  ;;  %v8874_v44 = vld [vmem:[%s9819_s24 + $0x7e4] sm:$0xf0] }
 0x527   : > { %3371 = vmatpush.bf16.msra.mxu3 %v7224_v40  ;;  %3390 = vmatpush.bf16.msrb.mxu1 %v6940_v62  ;;  %v6812_v55 = vor.u32 %v8709_v42, %v6809_v33  ;;  %v6521_v58 = vld [vmem:[%s9819_s24 + $0xa0] sm:$0xf0]  ;;  %v8674_v36 = vld [vmem:[%s9819_s24 + $0x1a4] sm:$0xf0] }
 0x528   : > { %3359 = vmatmul.bf16.vlgmr.msra.gmra.mxu2 %v10268_v27  ;;  %3346 = vmatmul.bf16.vlgmr.msra.gmra.mxu1 %v10285_v37  ;;  %v6777_v40 = vld [vmem:[%s9819_s24 + $0x2a0] sm:$0xf0]  ;;  %v6524_v41 = vor.u32 %v8637_v57, %v6521_v58  ;;  %v6911_v42 = vld [vmem:[%s9819_s24 + $0x388] sm:$0xf] }
 0x529   : > { %3403 = vmatpush.bf16.msrb.mxu2 %v7196_v63  ;;  %3378 = vmatpush.bf16.msrb.mxu0 %v6652_v7  ;;  %v8765_v61 = vld [vmem:[%s9819_s24 + $0x484] sm:$0xf]  ;;  %v6780_v43 = vor.u32 %v8701_v59, %v6777_v40  ;;  %v8738_v33 = vld [vmem:[%s9819_s24 + $0x3a4] sm:$0xf0] }
 0x52a   : > { %3372 = vmatmul.bf16.vlgmr.msra.gmra.mxu3 %v10275_v38  ;;  %v7033_v62 = vld [vmem:[%s9819_s24 + $0x4a0] sm:$0xf0]  ;;  %v8866_v34 = vld [vmem:[%s9819_s24 + $0x7a4] sm:$0xf0] }
 0x52b   : > { %3416 = vmatpush.bf16.msrb.mxu3 %v7452_v1  ;;  %3391 = vmatpush.bf16.msrb.mxu1 %v6908_v9  ;;  %v8829_v63 = vld [vmem:[%s9819_s24 + $0x684] sm:$0xf]  ;;  %v7036_v1 = vor.u32 %v8765_v61, %v7033_v62  ;;  %v6623_v57 = vld [vmem:[%s9819_s24 + $0x148] sm:$0xf] }
 0x52c   : > { %v6489_v3 = vld [vmem:[%s9819_s24 + $0x60] sm:$0xf0]  ;;  %v7292_v5 = vor.u32 %v8829_v63, %v7289_v0  ;;  %v8666_v58 = vld [vmem:[%s9819_s24 + $0x164] sm:$0xf0] }
 0x52d   : > { %3404 = vmatpush.bf16.msrb.mxu2 %v7164_v10  ;;  %3379 = vmatpush.bf16.msrb.mxu0 %v6620_v19  ;;  %v8693_v4 = vld [vmem:[%s9819_s24 + $0x244] sm:$0xf]  ;;  %v6492_v11 = vor.u32 %v8629_v2, %v6489_v3  ;;  %v6879_v59 = vld [vmem:[%s9819_s24 + $0x348] sm:$0xf] }
 0x52e   : > { %v6745_v6 = vld [vmem:[%s9819_s24 + $0x260] sm:$0xf0]  ;;  %v8730_v40 = vld [vmem:[%s9819_s24 + $0x364] sm:$0xf0] }
 0x52f   : > { %3417 = vmatpush.bf16.msrb.mxu3 %v7420_v14  ;;  %3392 = vmatpush.bf16.msrb.mxu1 %v6876_v20  ;;  %v8757_v7 = vld [vmem:[%s9819_s24 + $0x444] sm:$0xf]  ;;  %v6748_v14 = vor.u32 %v8693_v4, %v6745_v6  ;;  %v7135_v61 = vld [vmem:[%s9819_s24 + $0x548] sm:$0xf] }
 0x530   : > { %v7001_v8 = vld [vmem:[%s9819_s24 + $0x460] sm:$0xf0]  ;;  %v8794_v62 = vld [vmem:[%s9819_s24 + $0x564] sm:$0xf0] }
 0x531   : > { %3405 = vmatpush.bf16.msrb.mxu2 %v7132_v24  ;;  %3380 = vmatpush.bf16.msrb.mxu0 %v6588_v45  ;;  %v8821_v9 = vld [vmem:[%s9819_s24 + $0x644] sm:$0xf]  ;;  %v7004_v15 = vor.u32 %v8757_v7, %v7001_v8  ;;  %v8682_v24 = vld [vmem:[%s9819_s24 + $0x1e4] sm:$0xf0] }
 0x532   : > { %v7257_v10 = vld [vmem:[%s9819_s24 + $0x660] sm:$0xf0]  ;;  %v6688_v46 = vor.u32 %v8682_v24, %v6687_v23  ;;  %v7391_v63 = vld [vmem:[%s9819_s24 + $0x748] sm:$0xf] }
 0x533   : > { %3418 = vmatpush.bf16.msrb.mxu3 %v7388_v30  ;;  %3393 = vmatpush.bf16.msrb.mxu1 %v6844_v47  ;;  %v8621_v12 = vld [vmem:[%s9819_s24 + $0x4] sm:$0xf]  ;;  %v7260_v19 = vor.u32 %v8821_v9, %v7257_v10  ;;  %v7199_v30 = vld [vmem:[%s9819_s24 + $0x5c8] sm:$0xf]  ;;  %v6944_v47 = vor.u32 %v8746_v29, %v6943_v25 }
 0x534   : > { %v6457_v13 = vld [vmem:[%s9819_s24 + $0x20] sm:$0xf0]  ;;  %v8858_v0 = vld [vmem:[%s9819_s24 + $0x764] sm:$0xf0] }
 0x535   : > { %3406 = vmatpush.bf16.msrb.mxu2 %v7100_v48  ;;  %3381 = vmatpush.bf16.msrb.mxu0 %v6556_v54  ;;  %v8685_v16 = vld [vmem:[%s9819_s24 + $0x204] sm:$0xf]  ;;  %v6460_v26 = vor.u32 %v8621_v12, %v6457_v13  ;;  %v7200_v48 = vor.u32 %v8810_v31, %v7199_v30  ;;  %v6656_v54 = vor.u32 %v8674_v36, %v6655_v49  ;;  %v6591_v2 = vld [vmem:[%s9819_s24 + $0x108] sm:$0xf] }
 0x536   : > { %v6713_v17 = vld [vmem:[%s9819_s24 + $0x220] sm:$0xf0]  ;;  %v8658_v3 = vld [vmem:[%s9819_s24 + $0x124] sm:$0xf0] }
 0x537   : > { %3419 = vmatpush.bf16.msrb.mxu3 %v7356_v50  ;;  %3394 = vmatpush.bf16.msrb.mxu1 %v6812_v55  ;;  %v8749_v18 = vld [vmem:[%s9819_s24 + $0x404] sm:$0xf]  ;;  %v6716_v32 = vor.u32 %v8685_v16, %v6713_v17  ;;  %v7456_v50 = vor.u32 %v8874_v44, %v7455_v39  ;;  %v6912_v55 = vor.u32 %v8738_v33, %v6911_v42  ;;  %v6847_v4 = vld [vmem:[%s9819_s24 + $0x308] sm:$0xf] }
 0x538   : > { %v6969_v20 = vld [vmem:[%s9819_s24 + $0x420] sm:$0xf0]  ;;  %v8722_v6 = vld [vmem:[%s9819_s24 + $0x324] sm:$0xf0] }
 0x539   : > { %3407 = vmatpush.bf16.msrb.mxu2 %v7068_v56  ;;  %3382 = vmatpush.bf16.msrb.mxu0 %v6524_v41  ;;  %v8813_v21 = vld [vmem:[%s9819_s24 + $0x604] sm:$0xf]  ;;  %v6972_v35 = vor.u32 %v8749_v18, %v6969_v20  ;;  %v7168_v56 = vor.u32 %v8802_v52, %v7167_v51  ;;  %v6624_v41 = vor.u32 %v8666_v58, %v6623_v57  ;;  %v7103_v7 = vld [vmem:[%s9819_s24 + $0x508] sm:$0xf] }
 0x53a   : > { %v7225_v22 = vld [vmem:[%s9819_s24 + $0x620] sm:$0xf0]  ;;  %v8786_v8 = vld [vmem:[%s9819_s24 + $0x524] sm:$0xf0]  ;;  %v6848_v12 = vor.u32 %v8722_v6, %v6847_v4  ;;  %v8806_v4 = vld [vmem:[%s9819_s24 + $0x5cc] sm:$0xf] }
 0x53b   : > { %3420 = vmatpush.bf16.msrb.mxu3 %v7324_v60  ;;  %3395 = vmatpush.bf16.msrb.mxu1 %v6780_v43  ;;  %v7228_v45 = vor.u32 %v8813_v21, %v7225_v22  ;;  %v7424_v60 = vor.u32 %v8866_v34, %v7423_v53  ;;  %v6880_v43 = vor.u32 %v8730_v40, %v6879_v59  ;;  %v7359_v9 = vld [vmem:[%s9819_s24 + $0x708] sm:$0xf] }
 0x53c   : > { %v8850_v10 = vld [vmem:[%s9819_s24 + $0x724] sm:$0xf0]  ;;  %v7104_v13 = vor.u32 %v8786_v8, %v7103_v7  ;;  %v8870_v8 = vld [vmem:[%s9819_s24 + $0x7cc] sm:$0xf] }
 0x53d   : > { %3408 = vmatpush.bf16.msrb.mxu2 %v7036_v1  ;;  %3383 = vmatpush.bf16.msrb.mxu0 %v6492_v11  ;;  %v7136_v1 = vor.u32 %v8794_v62, %v7135_v61  ;;  %v6592_v11 = vor.u32 %v8658_v3, %v6591_v2  ;;  %v6815_v16 = vld [vmem:[%s9819_s24 + $0x2c8] sm:$0xf]  ;;  %v7360_v17 = vor.u32 %v8850_v10, %v7359_v9  ;;  %v6945_v3 = vld [vmem:[%s9819_s24 + $0x3e8] sm:$0xf0] }
 0x53e   : > { %v8714_v18 = vld [vmem:[%s9819_s24 + $0x2e4] sm:$0xf0]  ;;  %v7457_v9 = vld [vmem:[%s9819_s24 + $0x7e8] sm:$0xf0] }
 0x53f   : > { %3421 = vmatpush.bf16.msrb.mxu3 %v7292_v5  ;;  %3396 = vmatpush.bf16.msrb.mxu1 %v6748_v14  ;;  %v7392_v5 = vor.u32 %v8858_v0, %v7391_v63  ;;  %v6559_v14 = vld [vmem:[%s9819_s24 + $0xc8] sm:$0xf]  ;;  %v6816_v24 = vor.u32 %v8714_v18, %v6815_v16  ;;  %v8734_v16 = vld [vmem:[%s9819_s24 + $0x38c] sm:$0xf] }
 0x540   : > { %v8778_v20 = vld [vmem:[%s9819_s24 + $0x4e4] sm:$0xf0]  ;;  %v6913_v18 = vld [vmem:[%s9819_s24 + $0x3a8] sm:$0xf0] }
 0x541   : > { %3409 = vmatpush.bf16.msrb.mxu2 %v7004_v15  ;;  %3384 = vmatpush.bf16.msrb.mxu0 %v6460_v26  ;;  %v8650_v15 = vld [vmem:[%s9819_s24 + $0xe4] sm:$0xf0] }
 0x542   : > { %v7327_v21 = vld [vmem:[%s9819_s24 + $0x6c8] sm:$0xf]  ;;  %v6560_v23 = vor.u32 %v8650_v15, %v6559_v14  ;;  %v8670_v14 = vld [vmem:[%s9819_s24 + $0x18c] sm:$0xf] }
 0x543   : > { %3422 = vmatpush.bf16.msrb.mxu3 %v7260_v19  ;;  %3397 = vmatpush.bf16.msrb.mxu1 %v6716_v32  ;;  %v7071_v19 = vld [vmem:[%s9819_s24 + $0x4c8] sm:$0xf]  ;;  %v6657_v15 = vld [vmem:[%s9819_s24 + $0x1a8] sm:$0xf0] }
 0x544   : > { %3385 = vmatmul.bf16.vlgmr.msrb.gmra.mxu0 %v10270_v28  ;;  %v8842_v22 = vld [vmem:[%s9819_s24 + $0x6e4] sm:$0xf0]  ;;  %v7072_v25 = vor.u32 %v8778_v20, %v7071_v19  ;;  %v8798_v19 = vld [vmem:[%s9819_s24 + $0x58c] sm:$0xf] }
 0x545   : > { %3410 = vmatpush.bf16.msrb.mxu2 %v6972_v35  ;;  %3429 = vmatpush.bf16.msra.mxu0 %v6688_v46  ;;  %v6527_v26 = vld [vmem:[%s9819_s24 + $0x88] sm:$0xf]  ;;  %v7328_v31 = vor.u32 %v8842_v22, %v7327_v21  ;;  %v7169_v20 = vld [vmem:[%s9819_s24 + $0x5a8] sm:$0xf0] }
 0x546   : > { %3398 = vmatmul.bf16.vlgmr.msrb.gmra.mxu1 %v10285_v37  ;;  %v8642_v29 = vld [vmem:[%s9819_s24 + $0xa4] sm:$0xf0]  ;;  %v8862_v21 = vld [vmem:[%s9819_s24 + $0x78c] sm:$0xf] }
 0x547   : > { %3423 = vmatpush.bf16.msrb.mxu3 %v7228_v45  ;;  %3442 = vmatpush.bf16.msra.mxu1 %v6944_v47  ;;  %v6783_v30 = vld [vmem:[%s9819_s24 + $0x288] sm:$0xf]  ;;  %v6528_v46 = vor.u32 %v8642_v29, %v6527_v26  ;;  %v7425_v22 = vld [vmem:[%s9819_s24 + $0x7a8] sm:$0xf0] }
 0x548   : > { %3411 = vmatmul.bf16.vlgmr.msrb.gmra.mxu2 %v10268_v27  ;;  %v8706_v32 = vld [vmem:[%s9819_s24 + $0x2a4] sm:$0xf0]  ;;  %v8662_v26 = vld [vmem:[%s9819_s24 + $0x14c] sm:$0xf] }
 0x549   : > { %3455 = vmatpush.bf16.msra.mxu2 %v7200_v48  ;;  %3430 = vmatpush.bf16.msra.mxu0 %v6656_v54  ;;  %v7039_v35 = vld [vmem:[%s9819_s24 + $0x488] sm:$0xf]  ;;  %v6784_v47 = vor.u32 %v8706_v32, %v6783_v30  ;;  %v6625_v29 = vld [vmem:[%s9819_s24 + $0x168] sm:$0xf0] }
 0x54a   : > { %3424 = vmatmul.bf16.vlgmr.msrb.gmra.mxu3 %v10275_v38  ;;  %v8770_v39 = vld [vmem:[%s9819_s24 + $0x4a4] sm:$0xf0]  ;;  %v8726_v30 = vld [vmem:[%s9819_s24 + $0x34c] sm:$0xf] }
 0x54b   : > { %3468 = vmatpush.bf16.msra.mxu3 %v7456_v50  ;;  %3443 = vmatpush.bf16.msra.mxu1 %v6912_v55  ;;  %v7295_v44 = vld [vmem:[%s9819_s24 + $0x688] sm:$0xf]  ;;  %v7040_v48 = vor.u32 %v8770_v39, %v7039_v35  ;;  %v6881_v32 = vld [vmem:[%s9819_s24 + $0x368] sm:$0xf0] }
 0x54c   : > { %v8834_v45 = vld [vmem:[%s9819_s24 + $0x6a4] sm:$0xf0]  ;;  %v8790_v35 = vld [vmem:[%s9819_s24 + $0x54c] sm:$0xf] }
 0x54d   : > { %3456 = vmatpush.bf16.msra.mxu2 %v7168_v56  ;;  %3431 = vmatpush.bf16.msra.mxu0 %v6624_v41  ;;  %v6495_v49 = vld [vmem:[%s9819_s24 + $0x48] sm:$0xf]  ;;  %v7296_v50 = vor.u32 %v8834_v45, %v7295_v44  ;;  %v8678_v41 = vld [vmem:[%s9819_s24 + $0x1cc] sm:$0xf] }
 0x54e   : > { %v8634_v36 = vld [vmem:[%s9819_s24 + $0x64] sm:$0xf0]  ;;  %v7137_v39 = vld [vmem:[%s9819_s24 + $0x568] sm:$0xf0] }
 0x54f   : > { %3469 = vmatpush.bf16.msra.mxu3 %v7424_v60  ;;  %3444 = vmatpush.bf16.msra.mxu1 %v6880_v43  ;;  %v6751_v42 = vld [vmem:[%s9819_s24 + $0x248] sm:$0xf]  ;;  %v6496_v54 = vor.u32 %v8634_v36, %v6495_v49  ;;  %v6689_v43 = vld [vmem:[%s9819_s24 + $0x1e8] sm:$0xf0] }
 0x550   : > { %v8698_v33 = vld [vmem:[%s9819_s24 + $0x264] sm:$0xf0]  ;;  %v8854_v44 = vld [vmem:[%s9819_s24 + $0x74c] sm:$0xf] }
 0x551   : > { %3457 = vmatpush.bf16.msra.mxu2 %v7136_v1  ;;  %3432 = vmatpush.bf16.msra.mxu0 %v6592_v11  ;;  %v7007_v51 = vld [vmem:[%s9819_s24 + $0x448] sm:$0xf]  ;;  %v6752_v57 = vor.u32 %v8698_v33, %v6751_v42  ;;  %v8742_v1 = vld [vmem:[%s9819_s24 + $0x3cc] sm:$0xf]  ;;  %v6692_v11 = vor.u32 %v8678_v41, %v6689_v43 }
 0x552   : > { %v8762_v52 = vld [vmem:[%s9819_s24 + $0x464] sm:$0xf0]  ;;  %v7393_v45 = vld [vmem:[%s9819_s24 + $0x768] sm:$0xf0] }
 0x553   : > { %3470 = vmatpush.bf16.msra.mxu3 %v7392_v5  ;;  %3445 = vmatpush.bf16.msra.mxu1 %v6848_v12  ;;  %v7263_v53 = vld [vmem:[%s9819_s24 + $0x648] sm:$0xf]  ;;  %v7008_v58 = vor.u32 %v8762_v52, %v7007_v51  ;;  %v7201_v5 = vld [vmem:[%s9819_s24 + $0x5e8] sm:$0xf0]  ;;  %v6948_v12 = vor.u32 %v8742_v1, %v6945_v3 }
 0x554   : > { %v8826_v34 = vld [vmem:[%s9819_s24 + $0x664] sm:$0xf0]  ;;  %v8654_v49 = vld [vmem:[%s9819_s24 + $0x10c] sm:$0xf] }
 0x555   : > { %3458 = vmatpush.bf16.msra.mxu2 %v7104_v13  ;;  %3433 = vmatpush.bf16.msra.mxu0 %v6560_v23  ;;  %v6463_v55 = vld [vmem:[%s9819_s24 + $0x8] sm:$0xf]  ;;  %v7264_v61 = vor.u32 %v8826_v34, %v7263_v53  ;;  %v7204_v13 = vor.u32 %v8806_v4, %v7201_v5  ;;  %v6660_v23 = vor.u32 %v8670_v14, %v6657_v15  ;;  %v6593_v36 = vld [vmem:[%s9819_s24 + $0x128] sm:$0xf0] }
 0x556   : > { %v8626_v56 = vld [vmem:[%s9819_s24 + $0x24] sm:$0xf0]  ;;  %v8718_v42 = vld [vmem:[%s9819_s24 + $0x30c] sm:$0xf] }
 0x557   : > { %3471 = vmatpush.bf16.msra.mxu3 %v7360_v17  ;;  %3446 = vmatpush.bf16.msra.mxu1 %v6816_v24  ;;  %v6719_v59 = vld [vmem:[%s9819_s24 + $0x208] sm:$0xf]  ;;  %v6464_v2 = vor.u32 %v8626_v56, %v6463_v55  ;;  %v7460_v17 = vor.u32 %v8870_v8, %v7457_v9  ;;  %v6916_v24 = vor.u32 %v8734_v16, %v6913_v18  ;;  %v6849_v33 = vld [vmem:[%s9819_s24 + $0x328] sm:$0xf0] }
 0x558   : > { %v8690_v60 = vld [vmem:[%s9819_s24 + $0x224] sm:$0xf0]  ;;  %v8782_v51 = vld [vmem:[%s9819_s24 + $0x50c] sm:$0xf]  ;;  %v6852_v55 = vor.u32 %v8718_v42, %v6849_v33  ;;  %v7207_v42 = vld [vmem:[%s9819_s24 + $0x5d0] sm:$0xf] }
 0x559   : > { %3459 = vmatpush.bf16.msra.mxu2 %v7072_v25  ;;  %3434 = vmatpush.bf16.msra.mxu0 %v6528_v46  ;;  %v6975_v40 = vld [vmem:[%s9819_s24 + $0x408] sm:$0xf]  ;;  %v6720_v6 = vor.u32 %v8690_v60, %v6719_v59  ;;  %v7172_v25 = vor.u32 %v8798_v19, %v7169_v20  ;;  %v6628_v46 = vor.u32 %v8662_v26, %v6625_v29  ;;  %v7105_v52 = vld [vmem:[%s9819_s24 + $0x528] sm:$0xf0] }
 0x55a   : > { %v8754_v62 = vld [vmem:[%s9819_s24 + $0x424] sm:$0xf0]  ;;  %v8846_v53 = vld [vmem:[%s9819_s24 + $0x70c] sm:$0xf]  ;;  %v7108_v56 = vor.u32 %v8782_v51, %v7105_v52  ;;  %v7463_v52 = vld [vmem:[%s9819_s24 + $0x7d0] sm:$0xf] }
 0x55b   : > { %3472 = vmatpush.bf16.msra.mxu3 %v7328_v31  ;;  %3447 = vmatpush.bf16.msra.mxu1 %v6784_v47  ;;  %v7231_v63 = vld [vmem:[%s9819_s24 + $0x608] sm:$0xf]  ;;  %v6976_v7 = vor.u32 %v8754_v62, %v6975_v40  ;;  %v7428_v31 = vor.u32 %v8862_v21, %v7425_v22  ;;  %v6884_v47 = vor.u32 %v8726_v30, %v6881_v32  ;;  %v7361_v34 = vld [vmem:[%s9819_s24 + $0x728] sm:$0xf0] }
 0x55c   : > { %v8818_v0 = vld [vmem:[%s9819_s24 + $0x624] sm:$0xf0]  ;;  %v8710_v59 = vld [vmem:[%s9819_s24 + $0x2cc] sm:$0xf]  ;;  %v7364_v60 = vor.u32 %v8846_v53, %v7361_v34  ;;  %v8875_v53 = vld [vmem:[%s9819_s24 + $0x7ec] sm:$0xf0] }
 0x55d   : > { %3460 = vmatpush.bf16.msra.mxu2 %v7040_v48  ;;  %3435 = vmatpush.bf16.msra.mxu0 %v6496_v54  ;;  %v7232_v10 = vor.u32 %v8818_v0, %v7231_v63  ;;  %v7140_v48 = vor.u32 %v8790_v35, %v7137_v39  ;;  %v6596_v54 = vor.u32 %v8654_v49, %v6593_v36  ;;  %v6817_v40 = vld [vmem:[%s9819_s24 + $0x2e8] sm:$0xf0]  ;;  %v8747_v36 = vld [vmem:[%s9819_s24 + $0x3ec] sm:$0xf0] }
 0x55e   : > { %v7073_v62 = vld [vmem:[%s9819_s24 + $0x4e8] sm:$0xf0]  ;;  %v6820_v43 = vor.u32 %v8710_v59, %v6817_v40  ;;  %v6919_v59 = vld [vmem:[%s9819_s24 + $0x390] sm:$0xf] }
 0x55f   : > { %3473 = vmatpush.bf16.msra.mxu3 %v7296_v50  ;;  %3448 = vmatpush.bf16.msra.mxu1 %v6752_v57  ;;  %v7396_v50 = vor.u32 %v8854_v44, %v7393_v45  ;;  %v8646_v57 = vld [vmem:[%s9819_s24 + $0xcc] sm:$0xf]  ;;  %v8739_v40 = vld [vmem:[%s9819_s24 + $0x3ac] sm:$0xf0] }
 0x560   : > { %v8838_v63 = vld [vmem:[%s9819_s24 + $0x6cc] sm:$0xf] }
 0x561   : > { %3461 = vmatpush.bf16.msra.mxu2 %v7008_v58  ;;  %3436 = vmatpush.bf16.msra.mxu0 %v6464_v2  ;;  %v6561_v58 = vld [vmem:[%s9819_s24 + $0xe8] sm:$0xf0] }
 0x562   : > { %v7329_v0 = vld [vmem:[%s9819_s24 + $0x6e8] sm:$0xf0]  ;;  %v6564_v41 = vor.u32 %v8646_v57, %v6561_v58  ;;  %v6663_v57 = vld [vmem:[%s9819_s24 + $0x190] sm:$0xf] }
 0x563   : > { %3474 = vmatpush.bf16.msra.mxu3 %v7264_v61  ;;  %3449 = vmatpush.bf16.msra.mxu1 %v6720_v6  ;;  %v8774_v61 = vld [vmem:[%s9819_s24 + $0x4cc] sm:$0xf]  ;;  %v7332_v5 = vor.u32 %v8838_v63, %v7329_v0  ;;  %v8675_v58 = vld [vmem:[%s9819_s24 + $0x1ac] sm:$0xf0] }
 0x564   : > { %3437 = vmatmul.bf16.vlgmr.msra.gmra.mxu0 %v10270_v28  ;;  %v7076_v1 = vor.u32 %v8774_v61, %v7073_v62  ;;  %v8638_v2 = vld [vmem:[%s9819_s24 + $0x8c] sm:$0xf]  ;;  %v7175_v61 = vld [vmem:[%s9819_s24 + $0x590] sm:$0xf] }
 0x565   : > { %3462 = vmatpush.bf16.msra.mxu2 %v6976_v7  ;;  %3481 = vmatpush.bf16.msrb.mxu0 %v6692_v11  ;;  %v6529_v3 = vld [vmem:[%s9819_s24 + $0xa8] sm:$0xf0]  ;;  %v8803_v62 = vld [vmem:[%s9819_s24 + $0x5ac] sm:$0xf0] }
 0x566   : > { %3450 = vmatmul.bf16.vlgmr.msra.gmra.mxu1 %v10285_v37  ;;  %v8702_v4 = vld [vmem:[%s9819_s24 + $0x28c] sm:$0xf]  ;;  %v6532_v11 = vor.u32 %v8638_v2, %v6529_v3  ;;  %v7431_v63 = vld [vmem:[%s9819_s24 + $0x790] sm:$0xf] }
 0x567   : > { %3475 = vmatpush.bf16.msra.mxu3 %v7232_v10  ;;  %3494 = vmatpush.bf16.msrb.mxu1 %v6948_v12  ;;  %v6785_v6 = vld [vmem:[%s9819_s24 + $0x2a8] sm:$0xf0]  ;;  %v8867_v0 = vld [vmem:[%s9819_s24 + $0x7ac] sm:$0xf0] }
 0x568   : > { %3463 = vmatmul.bf16.vlgmr.msra.gmra.mxu2 %v10268_v27  ;;  %v8766_v7 = vld [vmem:[%s9819_s24 + $0x48c] sm:$0xf]  ;;  %v6788_v12 = vor.u32 %v8702_v4, %v6785_v6  ;;  %v6631_v2 = vld [vmem:[%s9819_s24 + $0x150] sm:$0xf] }
 0x569   : > { %3507 = vmatpush.bf16.msrb.mxu2 %v7204_v13  ;;  %3482 = vmatpush.bf16.msrb.mxu0 %v6660_v23  ;;  %v7041_v8 = vld [vmem:[%s9819_s24 + $0x4a8] sm:$0xf0]  ;;  %v8667_v3 = vld [vmem:[%s9819_s24 + $0x16c] sm:$0xf0] }
 0x56a   : > { %3476 = vmatmul.bf16.vlgmr.msra.gmra.mxu3 %v10275_v38  ;;  %v8830_v9 = vld [vmem:[%s9819_s24 + $0x68c] sm:$0xf]  ;;  %v7044_v13 = vor.u32 %v8766_v7, %v7041_v8  ;;  %v6887_v4 = vld [vmem:[%s9819_s24 + $0x350] sm:$0xf] }
 0x56b   : > { %3520 = vmatpush.bf16.msrb.mxu3 %v7460_v17  ;;  %3495 = vmatpush.bf16.msrb.mxu1 %v6916_v24  ;;  %v7297_v10 = vld [vmem:[%s9819_s24 + $0x6a8] sm:$0xf0]  ;;  %v8731_v6 = vld [vmem:[%s9819_s24 + $0x36c] sm:$0xf0] }
 0x56c   : > { %v8630_v14 = vld [vmem:[%s9819_s24 + $0x4c] sm:$0xf]  ;;  %v7300_v17 = vor.u32 %v8830_v9, %v7297_v10  ;;  %v7143_v7 = vld [vmem:[%s9819_s24 + $0x550] sm:$0xf] }
 0x56d   : > { %3508 = vmatpush.bf16.msrb.mxu2 %v7172_v25  ;;  %3483 = vmatpush.bf16.msrb.mxu0 %v6628_v46  ;;  %v6497_v15 = vld [vmem:[%s9819_s24 + $0x68] sm:$0xf0]  ;;  %v6695_v46 = vld [vmem:[%s9819_s24 + $0x1d0] sm:$0xf] }
 0x56e   : > { %v8694_v16 = vld [vmem:[%s9819_s24 + $0x24c] sm:$0xf]  ;;  %v6500_v23 = vor.u32 %v8630_v14, %v6497_v15  ;;  %v8795_v8 = vld [vmem:[%s9819_s24 + $0x56c] sm:$0xf0] }
 0x56f   : > { %3521 = vmatpush.bf16.msrb.mxu3 %v7428_v31  ;;  %3496 = vmatpush.bf16.msrb.mxu1 %v6884_v47  ;;  %v6753_v18 = vld [vmem:[%s9819_s24 + $0x268] sm:$0xf0]  ;;  %v8683_v47 = vld [vmem:[%s9819_s24 + $0x1ec] sm:$0xf0] }
 0x570   : > { %v8758_v19 = vld [vmem:[%s9819_s24 + $0x44c] sm:$0xf]  ;;  %v6756_v26 = vor.u32 %v8694_v16, %v6753_v18  ;;  %v7399_v9 = vld [vmem:[%s9819_s24 + $0x750] sm:$0xf] }
 0x571   : > { %3509 = vmatpush.bf16.msrb.mxu2 %v7140_v48  ;;  %3484 = vmatpush.bf16.msrb.mxu0 %v6596_v54  ;;  %v7009_v20 = vld [vmem:[%s9819_s24 + $0x468] sm:$0xf0]  ;;  %v6951_v48 = vld [vmem:[%s9819_s24 + $0x3d0] sm:$0xf]  ;;  %v6696_v54 = vor.u32 %v8683_v47, %v6695_v46 }
 0x572   : > { %v8822_v21 = vld [vmem:[%s9819_s24 + $0x64c] sm:$0xf]  ;;  %v7012_v29 = vor.u32 %v8758_v19, %v7009_v20  ;;  %v8859_v10 = vld [vmem:[%s9819_s24 + $0x76c] sm:$0xf0] }
 0x573   : > { %3522 = vmatpush.bf16.msrb.mxu3 %v7396_v50  ;;  %3497 = vmatpush.bf16.msrb.mxu1 %v6852_v55  ;;  %v7265_v22 = vld [vmem:[%s9819_s24 + $0x668] sm:$0xf0]  ;;  %v8811_v50 = vld [vmem:[%s9819_s24 + $0x5ec] sm:$0xf0]  ;;  %v6952_v55 = vor.u32 %v8747_v36, %v6951_v48 }
 0x574   : > { %v8622_v24 = vld [vmem:[%s9819_s24 + $0xc] sm:$0xf]  ;;  %v7268_v35 = vor.u32 %v8822_v21, %v7265_v22  ;;  %v6599_v14 = vld [vmem:[%s9819_s24 + $0x110] sm:$0xf] }
 0x575   : > { %3510 = vmatpush.bf16.msrb.mxu2 %v7108_v56  ;;  %3485 = vmatpush.bf16.msrb.mxu0 %v6564_v41  ;;  %v6465_v25 = vld [vmem:[%s9819_s24 + $0x28] sm:$0xf0]  ;;  %v7208_v56 = vor.u32 %v8811_v50, %v7207_v42  ;;  %v6664_v41 = vor.u32 %v8675_v58, %v6663_v57  ;;  %v8659_v15 = vld [vmem:[%s9819_s24 + $0x12c] sm:$0xf0] }
 0x576   : > { %v8686_v30 = vld [vmem:[%s9819_s24 + $0x20c] sm:$0xf]  ;;  %v6468_v49 = vor.u32 %v8622_v24, %v6465_v25  ;;  %v6855_v16 = vld [vmem:[%s9819_s24 + $0x310] sm:$0xf] }
 0x577   : > { %3523 = vmatpush.bf16.msrb.mxu3 %v7364_v60  ;;  %3498 = vmatpush.bf16.msrb.mxu1 %v6820_v43  ;;  %v6721_v31 = vld [vmem:[%s9819_s24 + $0x228] sm:$0xf0]  ;;  %v7464_v60 = vor.u32 %v8875_v53, %v7463_v52  ;;  %v6920_v43 = vor.u32 %v8739_v40, %v6919_v59  ;;  %v8723_v18 = vld [vmem:[%s9819_s24 + $0x32c] sm:$0xf0] }
 0x578   : > { %v8750_v32 = vld [vmem:[%s9819_s24 + $0x40c] sm:$0xf]  ;;  %v6724_v33 = vor.u32 %v8686_v30, %v6721_v31  ;;  %v7111_v19 = vld [vmem:[%s9819_s24 + $0x510] sm:$0xf]  ;;  %v6856_v24 = vor.u32 %v8723_v18, %v6855_v16  ;;  %v8807_v16 = vld [vmem:[%s9819_s24 + $0x5d4] sm:$0xf] }
 0x579   : > { %3511 = vmatpush.bf16.msrb.mxu2 %v7076_v1  ;;  %3486 = vmatpush.bf16.msrb.mxu0 %v6532_v11  ;;  %v6977_v39 = vld [vmem:[%s9819_s24 + $0x428] sm:$0xf0]  ;;  %v7176_v1 = vor.u32 %v8803_v62, %v7175_v61  ;;  %v6632_v11 = vor.u32 %v8667_v3, %v6631_v2  ;;  %v8787_v20 = vld [vmem:[%s9819_s24 + $0x52c] sm:$0xf0] }
 0x57a   : > { %v8814_v44 = vld [vmem:[%s9819_s24 + $0x60c] sm:$0xf]  ;;  %v6980_v51 = vor.u32 %v8750_v32, %v6977_v39  ;;  %v7367_v21 = vld [vmem:[%s9819_s24 + $0x710] sm:$0xf]  ;;  %v7112_v25 = vor.u32 %v8787_v20, %v7111_v19  ;;  %v8871_v20 = vld [vmem:[%s9819_s24 + $0x7d4] sm:$0xf] }
 0x57b   : > { %3524 = vmatpush.bf16.msrb.mxu3 %v7332_v5  ;;  %3499 = vmatpush.bf16.msrb.mxu1 %v6788_v12  ;;  %v7233_v45 = vld [vmem:[%s9819_s24 + $0x628] sm:$0xf0]  ;;  %v7432_v5 = vor.u32 %v8867_v0, %v7431_v63  ;;  %v6888_v12 = vor.u32 %v8731_v6, %v6887_v4  ;;  %v8851_v22 = vld [vmem:[%s9819_s24 + $0x72c] sm:$0xf0] }
 0x57c   : > { %v7236_v34 = vor.u32 %v8814_v44, %v7233_v45  ;;  %v6823_v30 = vld [vmem:[%s9819_s24 + $0x2d0] sm:$0xf]  ;;  %v7368_v31 = vor.u32 %v8851_v22, %v7367_v21  ;;  %v7465_v21 = vld [vmem:[%s9819_s24 + $0x7f0] sm:$0xf0] }
 0x57d   : > { %3512 = vmatpush.bf16.msrb.mxu2 %v7044_v13  ;;  %3487 = vmatpush.bf16.msrb.mxu0 %v6500_v23  ;;  %v7144_v13 = vor.u32 %v8795_v8, %v7143_v7  ;;  %v6600_v23 = vor.u32 %v8659_v15, %v6599_v14  ;;  %v8715_v32 = vld [vmem:[%s9819_s24 + $0x2ec] sm:$0xf0]  ;;  %v6953_v15 = vld [vmem:[%s9819_s24 + $0x3f0] sm:$0xf0] }
 0x57e   : > { %v8779_v39 = vld [vmem:[%s9819_s24 + $0x4ec] sm:$0xf0]  ;;  %v6824_v47 = vor.u32 %v8715_v32, %v6823_v30  ;;  %v8735_v30 = vld [vmem:[%s9819_s24 + $0x394] sm:$0xf] }
 0x57f   : > { %3525 = vmatpush.bf16.msrb.mxu3 %v7300_v17  ;;  %3500 = vmatpush.bf16.msrb.mxu1 %v6756_v26  ;;  %v7400_v17 = vor.u32 %v8859_v10, %v7399_v9  ;;  %v6567_v26 = vld [vmem:[%s9819_s24 + $0xd0] sm:$0xf]  ;;  %v6921_v32 = vld [vmem:[%s9819_s24 + $0x3b0] sm:$0xf0] }
 0x580   : > { %v7335_v44 = vld [vmem:[%s9819_s24 + $0x6d0] sm:$0xf] }
 0x581   : > { %3513 = vmatpush.bf16.msrb.mxu2 %v7012_v29  ;;  %3488 = vmatpush.bf16.msrb.mxu0 %v6468_v49  ;;  %v8651_v29 = vld [vmem:[%s9819_s24 + $0xec] sm:$0xf0] }
 0x582   : > { %v8843_v45 = vld [vmem:[%s9819_s24 + $0x6ec] sm:$0xf0]  ;;  %v6568_v46 = vor.u32 %v8651_v29, %v6567_v26  ;;  %v8671_v26 = vld [vmem:[%s9819_s24 + $0x194] sm:$0xf] }
 0x583   : > { %3526 = vmatpush.bf16.msrb.mxu3 %v7268_v35  ;;  %3501 = vmatpush.bf16.msrb.mxu1 %v6724_v33  ;;  %v7079_v35 = vld [vmem:[%s9819_s24 + $0x4d0] sm:$0xf]  ;;  %v7336_v50 = vor.u32 %v8843_v45, %v7335_v44  ;;  %v6665_v29 = vld [vmem:[%s9819_s24 + $0x1b0] sm:$0xf0] }
 0x584   : > { %3489 = vmatmul.bf16.vlgmr.msrb.gmra.mxu0 %v10270_v28  ;;  %v7080_v48 = vor.u32 %v8779_v39, %v7079_v35  ;;  %v6535_v49 = vld [vmem:[%s9819_s24 + $0x90] sm:$0xf]  ;;  %v8799_v35 = vld [vmem:[%s9819_s24 + $0x594] sm:$0xf] }
 0x585   : > { %3514 = vmatpush.bf16.msrb.mxu2 %v6980_v51  ;;  %3533 = vmatpush.bf16.msra.mxu0 %v6696_v54  ;;  %v8643_v36 = vld [vmem:[%s9819_s24 + $0xac] sm:$0xf0]  ;;  %v7177_v39 = vld [vmem:[%s9819_s24 + $0x5b0] sm:$0xf0] }
 0x586   : > { %3502 = vmatmul.bf16.vlgmr.msrb.gmra.mxu1 %v10285_v37  ;;  %v6791_v42 = vld [vmem:[%s9819_s24 + $0x290] sm:$0xf]  ;;  %v6536_v54 = vor.u32 %v8643_v36, %v6535_v49  ;;  %v8863_v44 = vld [vmem:[%s9819_s24 + $0x794] sm:$0xf] }
 0x587   : > { %3527 = vmatpush.bf16.msrb.mxu3 %v7236_v34  ;;  %3546 = vmatpush.bf16.msra.mxu1 %v6952_v55  ;;  %v8707_v33 = vld [vmem:[%s9819_s24 + $0x2ac] sm:$0xf0]  ;;  %v7433_v45 = vld [vmem:[%s9819_s24 + $0x7b0] sm:$0xf0] }
 0x588   : > { %3515 = vmatmul.bf16.vlgmr.msrb.gmra.mxu2 %v10268_v27  ;;  %v7047_v51 = vld [vmem:[%s9819_s24 + $0x490] sm:$0xf]  ;;  %v6792_v55 = vor.u32 %v8707_v33, %v6791_v42  ;;  %v8663_v49 = vld [vmem:[%s9819_s24 + $0x154] sm:$0xf] }
 0x589   : > { %3559 = vmatpush.bf16.msra.mxu2 %v7208_v56  ;;  %3534 = vmatpush.bf16.msra.mxu0 %v6664_v41  ;;  %v8771_v52 = vld [vmem:[%s9819_s24 + $0x4ac] sm:$0xf0]  ;;  %v6633_v36 = vld [vmem:[%s9819_s24 + $0x170] sm:$0xf0] }
 0x58a   : > { %3528 = vmatmul.bf16.vlgmr.msrb.gmra.mxu3 %v10275_v38  ;;  %v7303_v53 = vld [vmem:[%s9819_s24 + $0x690] sm:$0xf]  ;;  %v7048_v56 = vor.u32 %v8771_v52, %v7047_v51  ;;  %v8727_v42 = vld [vmem:[%s9819_s24 + $0x354] sm:$0xf] }
 0x58b   : > { %3572 = vmatpush.bf16.msra.mxu3 %v7464_v60  ;;  %3547 = vmatpush.bf16.msra.mxu1 %v6920_v43  ;;  %v8835_v34 = vld [vmem:[%s9819_s24 + $0x6ac] sm:$0xf0]  ;;  %v6889_v33 = vld [vmem:[%s9819_s24 + $0x370] sm:$0xf0] }
 0x58c   : > { %v6503_v57 = vld [vmem:[%s9819_s24 + $0x50] sm:$0xf]  ;;  %v7304_v60 = vor.u32 %v8835_v34, %v7303_v53  ;;  %v8791_v51 = vld [vmem:[%s9819_s24 + $0x554] sm:$0xf] }
 0x58d   : > { %3560 = vmatpush.bf16.msra.mxu2 %v7176_v1  ;;  %3535 = vmatpush.bf16.msra.mxu0 %v6632_v11  ;;  %v8635_v58 = vld [vmem:[%s9819_s24 + $0x6c] sm:$0xf0]  ;;  %v8679_v11 = vld [vmem:[%s9819_s24 + $0x1d4] sm:$0xf] }
 0x58e   : > { %v6759_v59 = vld [vmem:[%s9819_s24 + $0x250] sm:$0xf]  ;;  %v6504_v41 = vor.u32 %v8635_v58, %v6503_v57  ;;  %v7145_v52 = vld [vmem:[%s9819_s24 + $0x570] sm:$0xf0] }
 0x58f   : > { %3573 = vmatpush.bf16.msra.mxu3 %v7432_v5  ;;  %3548 = vmatpush.bf16.msra.mxu1 %v6888_v12  ;;  %v8699_v40 = vld [vmem:[%s9819_s24 + $0x26c] sm:$0xf0]  ;;  %v6697_v12 = vld [vmem:[%s9819_s24 + $0x1f0] sm:$0xf0]  ;;  %v7148_v57 = vor.u32 %v8791_v51, %v7145_v52 }
 0x590   : > { %v7015_v61 = vld [vmem:[%s9819_s24 + $0x450] sm:$0xf]  ;;  %v6760_v2 = vor.u32 %v8699_v40, %v6759_v59  ;;  %v8855_v53 = vld [vmem:[%s9819_s24 + $0x754] sm:$0xf] }
 0x591   : > { %3561 = vmatpush.bf16.msra.mxu2 %v7144_v13  ;;  %3536 = vmatpush.bf16.msra.mxu0 %v6600_v23  ;;  %v8763_v62 = vld [vmem:[%s9819_s24 + $0x46c] sm:$0xf0]  ;;  %v8743_v13 = vld [vmem:[%s9819_s24 + $0x3d4] sm:$0xf]  ;;  %v6700_v23 = vor.u32 %v8679_v11, %v6697_v12 }
 0x592   : > { %v7271_v63 = vld [vmem:[%s9819_s24 + $0x650] sm:$0xf]  ;;  %v7016_v3 = vor.u32 %v8763_v62, %v7015_v61  ;;  %v7401_v34 = vld [vmem:[%s9819_s24 + $0x770] sm:$0xf0] }
 0x593   : > { %3574 = vmatpush.bf16.msra.mxu3 %v7400_v17  ;;  %3549 = vmatpush.bf16.msra.mxu1 %v6856_v24  ;;  %v8827_v0 = vld [vmem:[%s9819_s24 + $0x66c] sm:$0xf0]  ;;  %v7209_v17 = vld [vmem:[%s9819_s24 + $0x5f0] sm:$0xf0]  ;;  %v6956_v24 = vor.u32 %v8743_v13, %v6953_v15  ;;  %v7404_v40 = vor.u32 %v8855_v53, %v7401_v34 }
 0x594   : > { %v6471_v43 = vld [vmem:[%s9819_s24 + $0x10] sm:$0xf]  ;;  %v7272_v7 = vor.u32 %v8827_v0, %v7271_v63  ;;  %v6601_v58 = vld [vmem:[%s9819_s24 + $0x130] sm:$0xf0]  ;;  %v10557_v63 = vld [vmem:[%s473_s30] sm:$0xff] }
 0x595   : > { %3562 = vmatpush.bf16.msra.mxu2 %v7112_v25  ;;  %3537 = vmatpush.bf16.msra.mxu0 %v6568_v46  ;;  %v8627_v1 = vld [vmem:[%s9819_s24 + $0x2c] sm:$0xf0]  ;;  %v7212_v25 = vor.u32 %v8807_v16, %v7209_v17  ;;  %v6668_v46 = vor.u32 %v8671_v26, %v6665_v29  ;;  %v8719_v59 = vld [vmem:[%s9819_s24 + $0x314] sm:$0xf] }
 0x596   : > { %v6727_v4 = vld [vmem:[%s9819_s24 + $0x210] sm:$0xf]  ;;  %v6472_v14 = vor.u32 %v8627_v1, %v6471_v43  ;;  %v8783_v61 = vld [vmem:[%s9819_s24 + $0x514] sm:$0xf] }
 0x597   : > { %3575 = vmatpush.bf16.msra.mxu3 %v7368_v31  ;;  %3550 = vmatpush.bf16.msra.mxu1 %v6824_v47  ;;  %v8691_v5 = vld [vmem:[%s9819_s24 + $0x22c] sm:$0xf0]  ;;  %v7468_v31 = vor.u32 %v8871_v20, %v7465_v21  ;;  %v6924_v47 = vor.u32 %v8735_v30, %v6921_v32  ;;  %v7113_v62 = vld [vmem:[%s9819_s24 + $0x530] sm:$0xf0] }
 0x598   : > { %v6983_v6 = vld [vmem:[%s9819_s24 + $0x410] sm:$0xf]  ;;  %v6728_v18 = vor.u32 %v8691_v5, %v6727_v4  ;;  %v8847_v0 = vld [vmem:[%s9819_s24 + $0x714] sm:$0xf] }
 0x599   : > { %3563 = vmatpush.bf16.msra.mxu2 %v7080_v48  ;;  %3538 = vmatpush.bf16.msra.mxu0 %v6536_v54  ;;  %v8755_v8 = vld [vmem:[%s9819_s24 + $0x42c] sm:$0xf0]  ;;  %v7180_v48 = vor.u32 %v8799_v35, %v7177_v39  ;;  %v6636_v54 = vor.u32 %v8663_v49, %v6633_v36  ;;  %v8647_v1 = vld [vmem:[%s9819_s24 + $0xd4] sm:$0xf] }
 0x59a   : > { %v7239_v9 = vld [vmem:[%s9819_s24 + $0x610] sm:$0xf]  ;;  %v6984_v19 = vor.u32 %v8755_v8, %v6983_v6  ;;  %v6569_v4 = vld [vmem:[%s9819_s24 + $0xf0] sm:$0xf0]  ;;  %v2029_v6 = vperm.slane %v10557_v63, 0 }
 0x59b   : > { %3576 = vmatpush.bf16.msra.mxu3 %v7336_v50  ;;  %3551 = vmatpush.bf16.msra.mxu1 %v6792_v55  ;;  %v8819_v10 = vld [vmem:[%s9819_s24 + $0x62c] sm:$0xf0]  ;;  %v7436_v50 = vor.u32 %v8863_v44, %v7433_v45  ;;  %v8655_v55 = vld [vmem:[%s9819_s24 + $0x114] sm:$0xf]  ;;  %v6572_v13 = vor.u32 %v8647_v1, %v6569_v4  ;;  %v6959_v1 = vld [vmem:[%s9819_s24 + $0x3d8] sm:$0xf] }
 0x59c   : > { %v7240_v22 = vor.u32 %v8819_v10, %v7239_v9  ;;  %v6604_v43 = vor.u32 %v8655_v55, %v6601_v58  ;;  %v8711_v5 = vld [vmem:[%s9819_s24 + $0x2d4] sm:$0xf]  ;;  %v7215_v4 = vld [vmem:[%s9819_s24 + $0x5d8] sm:$0xf] }
 0x59d   : > { %3564 = vmatpush.bf16.msra.mxu2 %v7048_v56  ;;  %3539 = vmatpush.bf16.msra.mxu0 %v6504_v41  ;;  %v6892_v56 = vor.u32 %v8727_v42, %v6889_v33  ;;  %v7369_v41 = vld [vmem:[%s9819_s24 + $0x730] sm:$0xf0] }
 0x59e   : > { %v6825_v8 = vld [vmem:[%s9819_s24 + $0x2f0] sm:$0xf0] }
 0x59f   : > { %3577 = vmatpush.bf16.msra.mxu3 %v7304_v60  ;;  %3552 = vmatpush.bf16.msra.mxu1 %v6760_v2  ;;  %v6857_v60 = vld [vmem:[%s9819_s24 + $0x330] sm:$0xf0]  ;;  %v6828_v15 = vor.u32 %v8711_v5, %v6825_v8  ;;  %v8812_v5 = vld [vmem:[%s9819_s24 + $0x5f4] sm:$0xf0] }
 0x5a0   : > { %v6860_v2 = vor.u32 %v8719_v59, %v6857_v60  ;;  %v8775_v9 = vld [vmem:[%s9819_s24 + $0x4d4] sm:$0xf] }
 0x5a1   : > { %3565 = vmatpush.bf16.msra.mxu2 %v7016_v3  ;;  %3540 = vmatpush.bf16.msra.mxu0 %v6472_v14  ;;  %v7116_v3 = vor.u32 %v8783_v61, %v7113_v62  ;;  %v7081_v10 = vld [vmem:[%s9819_s24 + $0x4f0] sm:$0xf0]  ;;  %v3334_v14 = vpop.f32.mrf.mxu0 }
 0x5a2   : > { %v8839_v11 = vld [vmem:[%s9819_s24 + $0x6d4] sm:$0xf]  ;;  %v7084_v16 = vor.u32 %v8775_v9, %v7081_v10  ;;  %v3335_v20 = vadd.f32 %v3334_v14, %v2029_v6  ;;  %v7471_v9 = vld [vmem:[%s9819_s24 + $0x7d8] sm:$0xf] }
 0x5a3   : > { %3578 = vmatpush.bf16.msra.mxu3 %v7272_v7  ;;  %3553 = vmatpush.bf16.msra.mxu1 %v6728_v18  ;;  %v7372_v7 = vor.u32 %v8847_v0, %v7369_v41  ;;  %v7337_v12 = vld [vmem:[%s9819_s24 + $0x6f0] sm:$0xf0]  ;;  %v6703_v41 = vld [vmem:[%s9819_s24 + $0x1d8] sm:$0xf] }
 0x5a4   : > { %3541 = vmatmul.bf16.vlgmr.msra.gmra.mxu0 %v10270_v28  ;;  %v8639_v17 = vld [vmem:[%s9819_s24 + $0x94] sm:$0xf]  ;;  %v7340_v21 = vor.u32 %v8839_v11, %v7337_v12  ;;  %v8876_v10 = vld [vmem:[%s9819_s24 + $0x7f4] sm:$0xf0] }
 0x5a5   : > { %3566 = vmatpush.bf16.msra.mxu2 %v6984_v19  ;;  %3585 = vmatpush.bf16.msrb.mxu0 %v6700_v23  ;;  %v6537_v18 = vld [vmem:[%s9819_s24 + $0xb0] sm:$0xf0]  ;;  %v3347_v30 = vpop.f32.mrf.mxu1 }
 0x5a6   : > { %3554 = vmatmul.bf16.vlgmr.msra.gmra.mxu1 %v10285_v37  ;;  %v8703_v19 = vld [vmem:[%s9819_s24 + $0x294] sm:$0xf]  ;;  %v6540_v29 = vor.u32 %v8639_v17, %v6537_v18  ;;  %v3348_v45 = vadd.f32 %v3347_v30, %v3335_v20  ;;  %v8676_v17 = vld [vmem:[%s9819_s24 + $0x1b4] sm:$0xf0]  ;;  %v7472_v20 = vor.u32 %v8876_v10, %v7471_v9 }
 0x5a7   : > { %3579 = vmatpush.bf16.msra.mxu3 %v7240_v22  ;;  %3598 = vmatpush.bf16.msrb.mxu1 %v6956_v24  ;;  %v6793_v22 = vld [vmem:[%s9819_s24 + $0x2b0] sm:$0xf0]  ;;  %v6927_v18 = vld [vmem:[%s9819_s24 + $0x398] sm:$0xf] }
 0x5a8   : > { %3567 = vmatmul.bf16.vlgmr.msra.gmra.mxu2 %v10268_v27  ;;  %v8767_v23 = vld [vmem:[%s9819_s24 + $0x494] sm:$0xf] }
 0x5a9   : > { %3611 = vmatpush.bf16.msrb.mxu2 %v7212_v25  ;;  %3586 = vmatpush.bf16.msrb.mxu0 %v6668_v46  ;;  %v7049_v24 = vld [vmem:[%s9819_s24 + $0x4b0] sm:$0xf0] }
 0x5aa   : > { %3580 = vmatmul.bf16.vlgmr.msra.gmra.mxu3 %v10275_v38  ;;  %v8831_v25 = vld [vmem:[%s9819_s24 + $0x694] sm:$0xf]  ;;  %v7052_v32 = vor.u32 %v8767_v23, %v7049_v24  ;;  %v8804_v23 = vld [vmem:[%s9819_s24 + $0x5b4] sm:$0xf0] }
 0x5ab   : > { %3624 = vmatpush.bf16.msrb.mxu3 %v7468_v31  ;;  %3599 = vmatpush.bf16.msrb.mxu1 %v6924_v47  ;;  %v7305_v26 = vld [vmem:[%s9819_s24 + $0x6b0] sm:$0xf0]  ;;  %v6796_v31 = vor.u32 %v8703_v19, %v6793_v22  ;;  %v3360_v36 = vpop.f32.mrf.mxu2  ;;  %v7183_v22 = vld [vmem:[%s9819_s24 + $0x598] sm:$0xf] }
 0x5ac   : > { %v8631_v35 = vld [vmem:[%s9819_s24 + $0x54] sm:$0xf]  ;;  %v7308_v46 = vor.u32 %v8831_v25, %v7305_v26  ;;  %v3361_v33 = vadd.f32 %v3360_v36, %v3348_v45  ;;  %v7439_v24 = vld [vmem:[%s9819_s24 + $0x798] sm:$0xf]  ;;  %v7184_v30 = vor.u32 %v8804_v23, %v7183_v22 }
 0x5ad   : > { %3612 = vmatpush.bf16.msrb.mxu2 %v7180_v48  ;;  %3587 = vmatpush.bf16.msrb.mxu0 %v6636_v54  ;;  %v6505_v39 = vld [vmem:[%s9819_s24 + $0x70] sm:$0xf0]  ;;  %v3373_v51 = vpop.f32.mrf.mxu3  ;;  %v3336_v54 = vpop.f32.mrf.mxu0  ;;  %v8868_v25 = vld [vmem:[%s9819_s24 + $0x7b4] sm:$0xf0] }
 0x5ae   : > { %v8695_v44 = vld [vmem:[%s9819_s24 + $0x254] sm:$0xf]  ;;  %v6508_v52 = vor.u32 %v8631_v35, %v6505_v39  ;;  %v10591_v60 = vadd.f32 %v3373_v51, %v3361_v33  ;;  %v3349_v6 = vpop.f32.mrf.mxu1  ;;  %v6895_v35 = vld [vmem:[%s9819_s24 + $0x358] sm:$0xf]  ;;  %v7440_v39 = vor.u32 %v8868_v25, %v7439_v24 }
 0x5af   : > { %3625 = vmatpush.bf16.msrb.mxu3 %v7436_v50  ;;  %3600 = vmatpush.bf16.msrb.mxu1 %v6892_v56  ;;  %v6761_v47 = vld [vmem:[%s9819_s24 + $0x270] sm:$0xf0]  ;;  %v7151_v45 = vld [vmem:[%s9819_s24 + $0x558] sm:$0xf] }
 0x5b0   : > { %v8759_v48 = vld [vmem:[%s9819_s24 + $0x454] sm:$0xf]  ;;  %v6764_v55 = vor.u32 %v8695_v44, %v6761_v47  ;;  %v8732_v44 = vld [vmem:[%s9819_s24 + $0x374] sm:$0xf0] }
 0x5b1   : > { %3613 = vmatpush.bf16.msrb.mxu2 %v7148_v57  ;;  %3588 = vmatpush.bf16.msrb.mxu0 %v6604_v43  ;;  %v7017_v49 = vld [vmem:[%s9819_s24 + $0x470] sm:$0xf0]  ;;  %v8684_v43 = vld [vmem:[%s9819_s24 + $0x1f4] sm:$0xf0] }
 0x5b2   : > { %v8823_v42 = vld [vmem:[%s9819_s24 + $0x654] sm:$0xf]  ;;  %v7020_v56 = vor.u32 %v8759_v48, %v7017_v49  ;;  %v6704_v12 = vor.u32 %v8684_v43, %v6703_v41  ;;  %v7407_v47 = vld [vmem:[%s9819_s24 + $0x758] sm:$0xf] }
 0x5b3   : > { %3626 = vmatpush.bf16.msrb.mxu3 %v7404_v40  ;;  %3601 = vmatpush.bf16.msrb.mxu1 %v6860_v2  ;;  %v7273_v50 = vld [vmem:[%s9819_s24 + $0x670] sm:$0xf0]  ;;  %v8860_v48 = vld [vmem:[%s9819_s24 + $0x774] sm:$0xf0] }
 0x5b4   : > { %v8623_v53 = vld [vmem:[%s9819_s24 + $0x14] sm:$0xf]  ;;  %v7276_v40 = vor.u32 %v8823_v42, %v7273_v50  ;;  %v6607_v36 = vld [vmem:[%s9819_s24 + $0x118] sm:$0xf]  ;;  %v6896_v42 = vor.u32 %v8732_v44, %v6895_v35 }
 0x5b5   : > { %3614 = vmatpush.bf16.msrb.mxu2 %v7116_v3  ;;  %3589 = vmatpush.bf16.msrb.mxu0 %v6572_v13  ;;  %v6473_v34 = vld [vmem:[%s9819_s24 + $0x30] sm:$0xf0]  ;;  %v8748_v3 = vld [vmem:[%s9819_s24 + $0x3f4] sm:$0xf0]  ;;  %v3362_v13 = vpop.f32.mrf.mxu2  ;;  %v3375_v19 = vpop.f32.mrf.mxu3 }
 0x5b6   : > { %v8687_v57 = vld [vmem:[%s9819_s24 + $0x214] sm:$0xf]  ;;  %v6476_v2 = vor.u32 %v8623_v53, %v6473_v34  ;;  %v6960_v14 = vor.u32 %v8748_v3, %v6959_v1  ;;  %v8660_v33 = vld [vmem:[%s9819_s24 + $0x134] sm:$0xf0]  ;;  %v7408_v53 = vor.u32 %v8860_v48, %v7407_v47 }
 0x5b7   : > { %3627 = vmatpush.bf16.msrb.mxu3 %v7372_v7  ;;  %3602 = vmatpush.bf16.msrb.mxu1 %v6828_v15  ;;  %v6729_v58 = vld [vmem:[%s9819_s24 + $0x230] sm:$0xf0]  ;;  %v7216_v15 = vor.u32 %v8812_v5, %v7215_v4  ;;  %v6863_v51 = vld [vmem:[%s9819_s24 + $0x318] sm:$0xf] }
 0x5b8   : > { %v8751_v59 = vld [vmem:[%s9819_s24 + $0x414] sm:$0xf]  ;;  %v6732_v7 = vor.u32 %v8687_v57, %v6729_v58  ;;  %v8724_v34 = vld [vmem:[%s9819_s24 + $0x334] sm:$0xf0]  ;;  %v6608_v58 = vor.u32 %v8660_v33, %v6607_v36 }
 0x5b9   : > { %3615 = vmatpush.bf16.msrb.mxu2 %v7084_v16  ;;  %3590 = vmatpush.bf16.msrb.mxu0 %v6540_v29  ;;  %v6985_v61 = vld [vmem:[%s9819_s24 + $0x430] sm:$0xf0]  ;;  %v6671_v16 = vld [vmem:[%s9819_s24 + $0x198] sm:$0xf] }
 0x5ba   : > { %v8815_v62 = vld [vmem:[%s9819_s24 + $0x614] sm:$0xf]  ;;  %v6988_v8 = vor.u32 %v8751_v59, %v6985_v61  ;;  %v6672_v26 = vor.u32 %v8676_v17, %v6671_v16  ;;  %v7119_v54 = vld [vmem:[%s9819_s24 + $0x518] sm:$0xf] }
 0x5bb   : > { %3628 = vmatpush.bf16.msrb.mxu3 %v7340_v21  ;;  %3603 = vmatpush.bf16.msrb.mxu1 %v6796_v31  ;;  %v7241_v0 = vld [vmem:[%s9819_s24 + $0x630] sm:$0xf0]  ;;  %v8740_v21 = vld [vmem:[%s9819_s24 + $0x3b4] sm:$0xf0] }
 0x5bc   : > { %v7244_v11 = vor.u32 %v8815_v62, %v7241_v0  ;;  %v6928_v29 = vor.u32 %v8740_v21, %v6927_v18  ;;  %v6639_v31 = vld [vmem:[%s9819_s24 + $0x158] sm:$0xf] }
 0x5bd   : > { %3616 = vmatpush.bf16.msrb.mxu2 %v7052_v32  ;;  %3591 = vmatpush.bf16.msrb.mxu0 %v6508_v52  ;;  %v8668_v32 = vld [vmem:[%s9819_s24 + $0x174] sm:$0xf0]  ;;  %v2030_v52 = vperm.slane %v10557_v63, 1 }
 0x5be   : > { %v6640_v49 = vor.u32 %v8668_v32, %v6639_v31  ;;  %v8852_v57 = vld [vmem:[%s9819_s24 + $0x734] sm:$0xf0] }
 0x5bf   : > { %3629 = vmatpush.bf16.msrb.mxu3 %v7308_v46  ;;  %3604 = vmatpush.bf16.msrb.mxu1 %v6764_v55  ;;  %v8796_v46 = vld [vmem:[%s9819_s24 + $0x574] sm:$0xf0] }
 0x5c0   : > { %v7152_v50 = vor.u32 %v8796_v46, %v7151_v45  ;;  %v8788_v55 = vld [vmem:[%s9819_s24 + $0x534] sm:$0xf0] }
 0x5c1   : > { %3617 = vmatpush.bf16.msrb.mxu2 %v7020_v56  ;;  %3592 = vmatpush.bf16.msrb.mxu0 %v6476_v2  ;;  %v7375_v56 = vld [vmem:[%s9819_s24 + $0x718] sm:$0xf]  ;;  %v3386_v59 = vpop.f32.mrf.mxu0  ;;  %v7120_v61 = vor.u32 %v8788_v55, %v7119_v54 }
 0x5c2   : > { %v6575_v62 = vld [vmem:[%s9819_s24 + $0xd8] sm:$0xf]  ;;  %v3387_v43 = vadd.f32 %v3386_v59, %v2030_v52  ;;  %v7376_v2 = vor.u32 %v8852_v57, %v7375_v56 }
 0x5c3   : > { %3630 = vmatpush.bf16.msrb.mxu3 %v7276_v40  ;;  %3605 = vmatpush.bf16.msrb.mxu1 %v6732_v7  ;;  %v6864_v40 = vor.u32 %v8724_v34, %v6863_v51  ;;  %v8652_v0 = vld [vmem:[%s9819_s24 + $0xf4] sm:$0xf0]  ;;  %v3399_v1 = vpop.f32.mrf.mxu1 }
 0x5c4   : > { %3593 = vmatmul.bf16.vlgmr.msrb.gmra.mxu0 %v10270_v28  ;;  %v6831_v41 = vld [vmem:[%s9819_s24 + $0x2d8] sm:$0xf]  ;;  %v6576_v9 = vor.u32 %v8652_v0, %v6575_v62  ;;  %v8744_v62 = vld [vmem:[%s9819_s24 + $0x3dc] sm:$0xf] }
 0x5c5   : > { %3618 = vmatpush.bf16.msrb.mxu2 %v6988_v8  ;;  %3637 = vmatpush.bf16.msra.mxu0 %v6704_v12  ;;  %v8716_v3 = vld [vmem:[%s9819_s24 + $0x2f4] sm:$0xf0]  ;;  %v3400_v8 = vadd.f32 %v3399_v1, %v3387_v43  ;;  %v8808_v43 = vld [vmem:[%s9819_s24 + $0x5dc] sm:$0xf] }
 0x5c6   : > { %3606 = vmatmul.bf16.vlgmr.msrb.gmra.mxu1 %v10285_v37  ;;  %v7087_v4 = vld [vmem:[%s9819_s24 + $0x4d8] sm:$0xf]  ;;  %v6832_v10 = vor.u32 %v8716_v3, %v6831_v41  ;;  %v6961_v41 = vld [vmem:[%s9819_s24 + $0x3f8] sm:$0xf0] }
 0x5c7   : > { %3631 = vmatpush.bf16.msrb.mxu3 %v7244_v11  ;;  %3650 = vmatpush.bf16.msra.mxu1 %v6960_v14  ;;  %v8780_v5 = vld [vmem:[%s9819_s24 + $0x4f4] sm:$0xf0]  ;;  %v7217_v1 = vld [vmem:[%s9819_s24 + $0x5f8] sm:$0xf0] }
 0x5c8   : > { %3619 = vmatmul.bf16.vlgmr.msrb.gmra.mxu2 %v10268_v27  ;;  %v7343_v6 = vld [vmem:[%s9819_s24 + $0x6d8] sm:$0xf]  ;;  %v7088_v11 = vor.u32 %v8780_v5, %v7087_v4  ;;  %v8872_v4 = vld [vmem:[%s9819_s24 + $0x7dc] sm:$0xf] }
 0x5c9   : > { %3663 = vmatpush.bf16.msra.mxu2 %v7216_v15  ;;  %3638 = vmatpush.bf16.msra.mxu0 %v6672_v26  ;;  %v8844_v7 = vld [vmem:[%s9819_s24 + $0x6f4] sm:$0xf0]  ;;  %v3388_v26 = vpop.f32.mrf.mxu0  ;;  %v7473_v5 = vld [vmem:[%s9819_s24 + $0x7f8] sm:$0xf0] }
 0x5ca   : > { %3632 = vmatmul.bf16.vlgmr.msrb.gmra.mxu3 %v10275_v38  ;;  %v6543_v12 = vld [vmem:[%s9819_s24 + $0x98] sm:$0xf]  ;;  %v7344_v16 = vor.u32 %v8844_v7, %v7343_v6 }
 0x5cb   : > { %3676 = vmatpush.bf16.msra.mxu3 %v7472_v20  ;;  %3651 = vmatpush.bf16.msra.mxu1 %v6928_v29  ;;  %v8644_v13 = vld [vmem:[%s9819_s24 + $0xb4] sm:$0xf0]  ;;  %v3412_v15 = vpop.f32.mrf.mxu2 }
 0x5cc   : > { %v6799_v14 = vld [vmem:[%s9819_s24 + $0x298] sm:$0xf]  ;;  %v3413_v20 = vadd.f32 %v3412_v15, %v3400_v8  ;;  %v6544_v24 = vor.u32 %v8644_v13, %v6543_v12  ;;  %v6964_v8 = vor.u32 %v8744_v62, %v6961_v41  ;;  %v8736_v12 = vld [vmem:[%s9819_s24 + $0x39c] sm:$0xf]  ;;  %v7476_v13 = vor.u32 %v8872_v4, %v7473_v5 }
 0x5cd   : > { %3664 = vmatpush.bf16.msra.mxu2 %v7184_v30  ;;  %3639 = vmatpush.bf16.msra.mxu0 %v6640_v49  ;;  %v8708_v17 = vld [vmem:[%s9819_s24 + $0x2b4] sm:$0xf0]  ;;  %v3425_v21 = vpop.f32.mrf.mxu3  ;;  %v8800_v15 = vld [vmem:[%s9819_s24 + $0x59c] sm:$0xf] }
 0x5ce   : > { %v7055_v18 = vld [vmem:[%s9819_s24 + $0x498] sm:$0xf]  ;;  %v10649_v25 = vadd.f32 %v3425_v21, %v3413_v20  ;;  %v6800_v29 = vor.u32 %v8708_v17, %v6799_v14  ;;  %v6929_v14 = vld [vmem:[%s9819_s24 + $0x3b8] sm:$0xf0] }
 0x5cf   : > { %3677 = vmatpush.bf16.msra.mxu3 %v7440_v39  ;;  %3652 = vmatpush.bf16.msra.mxu1 %v6896_v42  ;;  %v8772_v19 = vld [vmem:[%s9819_s24 + $0x4b4] sm:$0xf0]  ;;  %v3401_v39 = vpop.f32.mrf.mxu1  ;;  %v8864_v17 = vld [vmem:[%s9819_s24 + $0x79c] sm:$0xf]  ;;  %v6932_v20 = vor.u32 %v8736_v12, %v6929_v14 }
 0x5d0   : > { %v7311_v22 = vld [vmem:[%s9819_s24 + $0x698] sm:$0xf]  ;;  %v7056_v30 = vor.u32 %v8772_v19, %v7055_v18  ;;  %v7441_v18 = vld [vmem:[%s9819_s24 + $0x7b8] sm:$0xf0] }
 0x5d1   : > { %3665 = vmatpush.bf16.msra.mxu2 %v7152_v50  ;;  %3640 = vmatpush.bf16.msra.mxu0 %v6608_v58  ;;  %v8836_v23 = vld [vmem:[%s9819_s24 + $0x6b4] sm:$0xf0]  ;;  %v7444_v26 = vor.u32 %v8864_v17, %v7441_v18  ;;  %v7089_v62 = vld [vmem:[%s9819_s24 + $0x4f8] sm:$0xf0] }
 0x5d2   : > { %v6511_v31 = vld [vmem:[%s9819_s24 + $0x58] sm:$0xf]  ;;  %v7312_v44 = vor.u32 %v8836_v23, %v7311_v22  ;;  %v8664_v22 = vld [vmem:[%s9819_s24 + $0x15c] sm:$0xf] }
 0x5d3   : > { %3678 = vmatpush.bf16.msra.mxu3 %v7408_v53  ;;  %3653 = vmatpush.bf16.msra.mxu1 %v6864_v40  ;;  %v8636_v32 = vld [vmem:[%s9819_s24 + $0x74] sm:$0xf0]  ;;  %v3414_v54 = vpop.f32.mrf.mxu2  ;;  %v8680_v40 = vld [vmem:[%s9819_s24 + $0x1dc] sm:$0xf] }
 0x5d4   : > { %v6767_v35 = vld [vmem:[%s9819_s24 + $0x258] sm:$0xf]  ;;  %v6512_v36 = vor.u32 %v8636_v32, %v6511_v31  ;;  %v6641_v23 = vld [vmem:[%s9819_s24 + $0x178] sm:$0xf0] }
 0x5d5   : > { %3666 = vmatpush.bf16.msra.mxu2 %v7120_v61  ;;  %3641 = vmatpush.bf16.msra.mxu0 %v6576_v9  ;;  %v8700_v45 = vld [vmem:[%s9819_s24 + $0x274] sm:$0xf0]  ;;  %v3427_v59 = vpop.f32.mrf.mxu3  ;;  %v6705_v61 = vld [vmem:[%s9819_s24 + $0x1f8] sm:$0xf0]  ;;  %v7220_v9 = vor.u32 %v8808_v43, %v7217_v1  ;;  %v6644_v39 = vor.u32 %v8664_v22, %v6641_v23 }
 0x5d6   : > { %v7023_v46 = vld [vmem:[%s9819_s24 + $0x458] sm:$0xf]  ;;  %v6768_v33 = vor.u32 %v8700_v45, %v6767_v35  ;;  %v6708_v7 = vor.u32 %v8680_v40, %v6705_v61  ;;  %v7153_v31 = vld [vmem:[%s9819_s24 + $0x578] sm:$0xf0] }
 0x5d7   : > { %3679 = vmatpush.bf16.msra.mxu3 %v7376_v2  ;;  %3654 = vmatpush.bf16.msra.mxu1 %v6832_v10  ;;  %v8764_v47 = vld [vmem:[%s9819_s24 + $0x474] sm:$0xf0]  ;;  %v8672_v10 = vld [vmem:[%s9819_s24 + $0x19c] sm:$0xf] }
 0x5d8   : > { %v7279_v48 = vld [vmem:[%s9819_s24 + $0x658] sm:$0xf]  ;;  %v7024_v51 = vor.u32 %v8764_v47, %v7023_v46  ;;  %v8856_v32 = vld [vmem:[%s9819_s24 + $0x75c] sm:$0xf] }
 0x5d9   : > { %3667 = vmatpush.bf16.msra.mxu2 %v7088_v11  ;;  %v8828_v49 = vld [vmem:[%s9819_s24 + $0x674] sm:$0xf0]  ;;  %3642 = vmatpush.bf16.msra.mxu0 %v6544_v24  ;;  %v6673_v11 = vld [vmem:[%s9819_s24 + $0x1b8] sm:$0xf0] }
 0x5da   : > { %v6479_v42 = vld [vmem:[%s9819_s24 + $0x18] sm:$0xf]  ;;  %v7280_v55 = vor.u32 %v8828_v49, %v7279_v48  ;;  %v6676_v19 = vor.u32 %v8672_v10, %v6673_v11  ;;  %v8728_v24 = vld [vmem:[%s9819_s24 + $0x35c] sm:$0xf] }
 0x5db   : > { %3680 = vmatpush.bf16.msra.mxu3 %v7344_v16  ;;  %v8628_v50 = vld [vmem:[%s9819_s24 + $0x34] sm:$0xf0]  ;;  %3655 = vmatpush.bf16.msra.mxu1 %v6800_v29  ;;  %v7185_v16 = vld [vmem:[%s9819_s24 + $0x5b8] sm:$0xf0] }
 0x5dc   : > { %v6735_v52 = vld [vmem:[%s9819_s24 + $0x218] sm:$0xf]  ;;  %v6480_v0 = vor.u32 %v8628_v50, %v6479_v42  ;;  %v7188_v21 = vor.u32 %v8800_v15, %v7185_v16  ;;  %v6897_v29 = vld [vmem:[%s9819_s24 + $0x378] sm:$0xf0] }
 0x5dd   : > { %3668 = vmatpush.bf16.msra.mxu2 %v7056_v30  ;;  %v8692_v53 = vld [vmem:[%s9819_s24 + $0x234] sm:$0xf0]  ;;  %3643 = vmatpush.bf16.msra.mxu0 %v6512_v36  ;;  %v8792_v30 = vld [vmem:[%s9819_s24 + $0x55c] sm:$0xf] }
 0x5de   : > { %v6991_v34 = vld [vmem:[%s9819_s24 + $0x418] sm:$0xf]  ;;  %v6736_v2 = vor.u32 %v8692_v53, %v6735_v52  ;;  %v7409_v35 = vld [vmem:[%s9819_s24 + $0x778] sm:$0xf0]  ;;  %v7156_v45 = vor.u32 %v8792_v30, %v7153_v31 }
 0x5df   : > { %3681 = vmatpush.bf16.msra.mxu3 %v7312_v44  ;;  %v8756_v56 = vld [vmem:[%s9819_s24 + $0x434] sm:$0xf0]  ;;  %3656 = vmatpush.bf16.msra.mxu1 %v6768_v33  ;;  %v6900_v44 = vor.u32 %v8728_v24, %v6897_v29  ;;  %v8656_v46 = vld [vmem:[%s9819_s24 + $0x11c] sm:$0xf]  ;;  %v7412_v49 = vor.u32 %v8856_v32, %v7409_v35 }
 0x5e0   : > { %v7247_v57 = vld [vmem:[%s9819_s24 + $0x618] sm:$0xf]  ;;  %v6992_v3 = vor.u32 %v8756_v56, %v6991_v34  ;;  %v6609_v47 = vld [vmem:[%s9819_s24 + $0x138] sm:$0xf0] }
 0x5e1   : > { %v8820_v58 = vld [vmem:[%s9819_s24 + $0x634] sm:$0xf0]  ;;  %3669 = vmatpush.bf16.msra.mxu2 %v7024_v51  ;;  %3644 = vmatpush.bf16.msra.mxu0 %v6480_v0  ;;  %v8720_v48 = vld [vmem:[%s9819_s24 + $0x31c] sm:$0xf]  ;;  %v6612_v52 = vor.u32 %v8656_v46, %v6609_v47  ;;  %v10703_v53 = vpop.f32.mrf.mxu0 }
 0x5e2   : > { %v7248_v6 = vor.u32 %v8820_v58, %v7247_v57  ;;  %v6865_v36 = vld [vmem:[%s9819_s24 + $0x338] sm:$0xf0] }
 0x5e3   : > { %3682 = vmatpush.bf16.msra.mxu3 %v7280_v55  ;;  %3657 = vmatpush.bf16.msra.mxu1 %v6736_v2  ;;  %v8784_v42 = vld [vmem:[%s9819_s24 + $0x51c] sm:$0xf]  ;;  %v6868_v34 = vor.u32 %v8720_v48, %v6865_v36  ;;  %v10708_v58 = vpop.f32.mrf.mxu1 }
 0x5e4   : > { %3645 = vmatmul.bf16.vlgmr.msra.gmra.mxu0 %v10270_v28  ;;  %v7121_v50 = vld [vmem:[%s9819_s24 + $0x538] sm:$0xf0] }
 0x5e5   : > { %3670 = vmatpush.bf16.msra.mxu2 %v6992_v3  ;;  %3689 = vmatpush.bf16.msrb.mxu0 %v6708_v7  ;;  %v8848_v33 = vld [vmem:[%s9819_s24 + $0x71c] sm:$0xf]  ;;  %v7124_v54 = vor.u32 %v8784_v42, %v7121_v50 }
 0x5e6   : > { %3658 = vmatmul.bf16.vlgmr.msra.gmra.mxu1 %v10285_v37  ;;  %v7377_v51 = vld [vmem:[%s9819_s24 + $0x738] sm:$0xf0] }
 0x5e7   : > { %3683 = vmatpush.bf16.msra.mxu3 %v7248_v6  ;;  %3702 = vmatpush.bf16.msrb.mxu1 %v6964_v8  ;;  %v8648_v55 = vld [vmem:[%s9819_s24 + $0xdc] sm:$0xf]  ;;  %v7380_v59 = vor.u32 %v8848_v33, %v7377_v51  ;;  %v7591_v51 = vld [vmem:[%s9828_s2 + $0xe0] sm:$0xf] }
 0x5e8   : > { %3671 = vmatmul.bf16.vlgmr.msra.gmra.mxu2 %v10268_v27  ;;  %v6577_v56 = vld [vmem:[%s9819_s24 + $0xf8] sm:$0xf0] }
 0x5e9   : > { %3715 = vmatpush.bf16.msrb.mxu2 %v7220_v9  ;;  %3690 = vmatpush.bf16.msrb.mxu0 %v6676_v19  ;;  %v8712_v57 = vld [vmem:[%s9819_s24 + $0x2dc] sm:$0xf]  ;;  %v6580_v43 = vor.u32 %v8648_v55, %v6577_v56  ;;  %v3440_v15 = vpop.f32.mrf.mxu0  ;;  %v8939_v55 = vld [vmem:[%s9828_s2 + $0x1ec] sm:$0xf0]  ;;  %v7847_v56 = vld [vmem:[%s9828_s2 + $0x2e0] sm:$0xf] }
 0x5ea   : > { %3684 = vmatmul.bf16.vlgmr.msra.gmra.mxu3 %v10275_v38  ;;  %v6833_v40 = vld [vmem:[%s9819_s24 + $0x2f8] sm:$0xf0] }
 0x5eb   : > { %3728 = vmatpush.bf16.msrb.mxu3 %v7476_v13  ;;  %3703 = vmatpush.bf16.msrb.mxu1 %v6932_v20  ;;  %v8776_v61 = vld [vmem:[%s9819_s24 + $0x4dc] sm:$0xf]  ;;  %v6836_v1 = vor.u32 %v8712_v57, %v6833_v40  ;;  %v10718_v6 = vpop.f32.mrf.mxu2  ;;  %v8971_v57 = vld [vmem:[%s9828_s2 + $0x2ec] sm:$0xf0] }
 0x5ec   : > { %v8840_v0 = vld [vmem:[%s9819_s24 + $0x6dc] sm:$0xf]  ;;  %v7092_v2 = vor.u32 %v8776_v61, %v7089_v62 }
 0x5ed   : > { %3716 = vmatpush.bf16.msrb.mxu2 %v7188_v21  ;;  %3691 = vmatpush.bf16.msrb.mxu0 %v6644_v39  ;;  %v7345_v41 = vld [vmem:[%s9819_s24 + $0x6f8] sm:$0xf0]  ;;  %v10723_v11 = vpop.f32.mrf.mxu3  ;;  %v3453_v21 = vpop.f32.mrf.mxu1 }
 0x5ee   : > { %v8640_v3 = vld [vmem:[%s9819_s24 + $0x9c] sm:$0xf]  ;;  %v7348_v7 = vor.u32 %v8840_v0, %v7345_v41  ;;  %v7975_v0 = vld [vmem:[%s9828_s2 + $0x3e0] sm:$0xf]  ;;  %v9003_v41 = vld [vmem:[%s9828_s2 + $0x3ec] sm:$0xf0] }
 0x5ef   : > { %3729 = vmatpush.bf16.msrb.mxu3 %v7444_v26  ;;  %3704 = vmatpush.bf16.msrb.mxu1 %v6900_v44  ;;  %v6545_v4 = vld [vmem:[%s9819_s24 + $0xb8] sm:$0xf0]  ;;  %v7815_v21 = vld [vmem:[%s9828_s2 + $0x2a0] sm:$0xf] }
 0x5f0   : > { %v8704_v5 = vld [vmem:[%s9819_s24 + $0x29c] sm:$0xf]  ;;  %v6548_v14 = vor.u32 %v8640_v3, %v6545_v4  ;;  %v8903_v3 = vld [vmem:[%s9828_s2 + $0xcc] sm:$0xf0]  ;;  %v7703_v4 = vld [vmem:[%s9828_s2 + $0x1c0] sm:$0xf] }
 0x5f1   : > { %3717 = vmatpush.bf16.msrb.mxu2 %v7156_v45  ;;  %3692 = vmatpush.bf16.msrb.mxu0 %v6612_v52  ;;  %v6801_v8 = vld [vmem:[%s9819_s24 + $0x2b8] sm:$0xf0]  ;;  %v8907_v52 = vld [vmem:[%s9828_s2 + $0xec] sm:$0xf0] }
 0x5f2   : > { %v8768_v9 = vld [vmem:[%s9819_s24 + $0x49c] sm:$0xf]  ;;  %v6804_v16 = vor.u32 %v8704_v5, %v6801_v8  ;;  %v7592_v62 = vor.u32 %v8907_v52, %v7591_v51  ;;  %v8935_v5 = vld [vmem:[%s9828_s2 + $0x1cc] sm:$0xf0] }
 0x5f3   : > { %3730 = vmatpush.bf16.msrb.mxu3 %v7412_v49  ;;  %3705 = vmatpush.bf16.msrb.mxu1 %v6868_v34  ;;  %v7057_v10 = vld [vmem:[%s9819_s24 + $0x4b8] sm:$0xf0]  ;;  %v3466_v48 = vpop.f32.mrf.mxu2  ;;  %v7719_v34 = vld [vmem:[%s9828_s2 + $0x1e0] sm:$0xf]  ;;  %v8967_v8 = vld [vmem:[%s9828_s2 + $0x2cc] sm:$0xf0]  ;;  %v7704_v15 = vor.u32 %v8935_v5, %v7703_v4 }
 0x5f4   : > { %v8832_v12 = vld [vmem:[%s9819_s24 + $0x69c] sm:$0xf]  ;;  %v7060_v17 = vor.u32 %v8768_v9, %v7057_v10  ;;  %v2031_v9 = vperm.slane %v10557_v63, 2  ;;  %v7976_v10 = vor.u32 %v9003_v41, %v7975_v0  ;;  %v8991_v48 = vld [vmem:[%s9828_s2 + $0x38c] sm:$0xf0] }
 0x5f5   : > { %3718 = vmatpush.bf16.msrb.mxu2 %v7124_v54  ;;  %v7313_v13 = vld [vmem:[%s9819_s24 + $0x6b8] sm:$0xf0]  ;;  %3693 = vmatpush.bf16.msrb.mxu0 %v6580_v43  ;;  %v3479_v33 = vpop.f32.mrf.mxu3  ;;  %v7720_v43 = vor.u32 %v8939_v55, %v7719_v34  ;;  %v8923_v52 = vld [vmem:[%s9828_s2 + $0x16c] sm:$0xf0]  ;;  %v7783_v34 = vld [vmem:[%s9828_s2 + $0x260] sm:$0xf] }
 0x5f6   : > { %v8632_v18 = vld [vmem:[%s9819_s24 + $0x5c] sm:$0xf]  ;;  %v7316_v22 = vor.u32 %v8832_v12, %v7313_v13  ;;  %v7959_v13 = vld [vmem:[%s9828_s2 + $0x3c0] sm:$0xf]  ;;  %v8951_v4 = vld [vmem:[%s9828_s2 + $0x24c] sm:$0xf0] }
 0x5f7   : > { %3731 = vmatpush.bf16.msrb.mxu3 %v7380_v59  ;;  %3706 = vmatpush.bf16.msrb.mxu1 %v6836_v1  ;;  %v6513_v19 = vld [vmem:[%s9819_s24 + $0x78] sm:$0xf0]  ;;  %v7848_v1 = vor.u32 %v8971_v57, %v7847_v56  ;;  %v7655_v33 = vld [vmem:[%s9828_s2 + $0x160] sm:$0xf] }
 0x5f8   : > { %v8696_v20 = vld [vmem:[%s9819_s24 + $0x25c] sm:$0xf]  ;;  %v6516_v31 = vor.u32 %v8632_v18, %v6513_v19  ;;  %v8899_v18 = vld [vmem:[%s9828_s2 + $0xac] sm:$0xf0]  ;;  %v7687_v19 = vld [vmem:[%s9828_s2 + $0x1a0] sm:$0xf] }
 0x5f9   : > { %3719 = vmatpush.bf16.msrb.mxu2 %v7092_v2  ;;  %v6769_v23 = vld [vmem:[%s9819_s24 + $0x278] sm:$0xf0]  ;;  %3694 = vmatpush.bf16.msrb.mxu0 %v6548_v14  ;;  %v7575_v2 = vld [vmem:[%s9828_s2 + $0xc0] sm:$0xf]  ;;  %v8999_v14 = vld [vmem:[%s9828_s2 + $0x3cc] sm:$0xf0] }
 0x5fa   : > { %v8760_v24 = vld [vmem:[%s9819_s24 + $0x45c] sm:$0xf]  ;;  %v6772_v39 = vor.u32 %v8696_v20, %v6769_v23  ;;  %v7576_v12 = vor.u32 %v8903_v3, %v7575_v2  ;;  %v8931_v20 = vld [vmem:[%s9828_s2 + $0x1ac] sm:$0xf0]  ;;  %v3439_v23 = vadd.f32 %v10703_v53, %v2031_v9  ;;  %v7511_v41 = vld [vmem:[%s9828_s2 + $0x40] sm:$0xf] }
 0x5fb   : > { %3732 = vmatpush.bf16.msrb.mxu3 %v7348_v7  ;;  %v7025_v26 = vld [vmem:[%s9819_s24 + $0x478] sm:$0xf0]  ;;  %3707 = vmatpush.bf16.msrb.mxu1 %v6804_v16  ;;  %v7831_v7 = vld [vmem:[%s9828_s2 + $0x2c0] sm:$0xf]  ;;  %v8919_v2 = vld [vmem:[%s9828_s2 + $0x14c] sm:$0xf0] }
 0x5fc   : > { %v8824_v29 = vld [vmem:[%s9819_s24 + $0x65c] sm:$0xf]  ;;  %v7028_v44 = vor.u32 %v8760_v24, %v7025_v26  ;;  %v7832_v16 = vor.u32 %v8967_v8, %v7831_v7  ;;  %v7960_v24 = vor.u32 %v8999_v14, %v7959_v13  ;;  %v7943_v26 = vld [vmem:[%s9828_s2 + $0x3a0] sm:$0xf]  ;;  %v3741_v9 = vmul.f32 0.01, %v10591_v60 }
 0x5fd   : > { %v7281_v30 = vld [vmem:[%s9819_s24 + $0x678] sm:$0xf0]  ;;  %3720 = vmatpush.bf16.msrb.mxu2 %v7060_v17  ;;  %3695 = vmatpush.bf16.msrb.mxu0 %v6516_v31  ;;  %v7559_v17 = vld [vmem:[%s9828_s2 + $0xa0] sm:$0xf]  ;;  %v8895_v31 = vld [vmem:[%s9828_s2 + $0x8c] sm:$0xf0] }
 0x5fe   : > { %v8624_v32 = vld [vmem:[%s9819_s24 + $0x1c] sm:$0xf]  ;;  %v7284_v49 = vor.u32 %v8824_v29, %v7281_v30  ;;  %v7543_v29 = vld [vmem:[%s9828_s2 + $0x80] sm:$0xf]  ;;  %v7688_v30 = vor.u32 %v8931_v20, %v7687_v19  ;;  %v8983_v14 = vld [vmem:[%s9828_s2 + $0x34c] sm:$0xf0] }
 0x5ff   : > { %v6481_v35 = vld [vmem:[%s9819_s24 + $0x38] sm:$0xf0]  ;;  %3733 = vmatpush.bf16.msrb.mxu3 %v7316_v22  ;;  %3708 = vmatpush.bf16.msrb.mxu1 %v6772_v39  ;;  %v8963_v22 = vld [vmem:[%s9828_s2 + $0x2ac] sm:$0xf0]  ;;  %v7767_v3 = vld [vmem:[%s9828_s2 + $0x240] sm:$0xf] }
 0x600   : > { %v8688_v45 = vld [vmem:[%s9819_s24 + $0x21c] sm:$0xf]  ;;  %v6484_v54 = vor.u32 %v8624_v32, %v6481_v35  ;;  %v7816_v53 = vor.u32 %v8963_v22, %v7815_v21  ;;  %v2032_v32 = vperm.slane %v10557_v63, 3  ;;  %v7799_v35 = vld [vmem:[%s9828_s2 + $0x280] sm:$0xf] }
 0x601   : > { %v6737_v46 = vld [vmem:[%s9819_s24 + $0x238] sm:$0xf0]  ;;  %3721 = vmatpush.bf16.msrb.mxu2 %v7028_v44  ;;  %v8959_v39 = vld [vmem:[%s9828_s2 + $0x28c] sm:$0xf0]  ;;  %v3452_v44 = vadd.f32 %v10708_v58, %v3439_v23  ;;  %v7895_v13 = vld [vmem:[%s9828_s2 + $0x340] sm:$0xf] }
 0x602   : > { %v8752_v47 = vld [vmem:[%s9819_s24 + $0x41c] sm:$0xf]  ;;  %v6740_v59 = vor.u32 %v8688_v45, %v6737_v46  ;;  %3696 = vmatpush.bf16.msrb.mxu0 %v6484_v54  ;;  %v7544_v46 = vor.u32 %v8895_v31, %v7543_v29  ;;  %v8955_v54 = vld [vmem:[%s9828_s2 + $0x26c] sm:$0xf0]  ;;  %v7623_v19 = vld [vmem:[%s9828_s2 + $0x120] sm:$0xf]  ;;  %v7896_v29 = vor.u32 %v8983_v14, %v7895_v13 }
 0x603   : > { %v6993_v36 = vld [vmem:[%s9819_s24 + $0x438] sm:$0xf0]  ;;  %3734 = vmatpush.bf16.msrb.mxu3 %v7284_v49  ;;  %v3490_v49 = vpop.f32.mrf.mxu0  ;;  %v3503_v51 = vpop.f32.mrf.mxu1  ;;  %v3465_v55 = vadd.f32 %v10718_v6, %v3452_v44  ;;  %v7784_v0 = vor.u32 %v8955_v54, %v7783_v34  ;;  %v8915_v21 = vld [vmem:[%s9828_s2 + $0x12c] sm:$0xf0]  ;;  %v7751_v22 = vld [vmem:[%s9828_s2 + $0x220] sm:$0xf] }
 0x604   : > { %v8816_v42 = vld [vmem:[%s9819_s24 + $0x61c] sm:$0xf]  ;;  %v6996_v40 = vor.u32 %v8752_v47, %v6993_v36  ;;  %3709 = vmatpush.bf16.msrb.mxu1 %v6740_v59  ;;  %v7927_v47 = vld [vmem:[%s9828_s2 + $0x380] sm:$0xf]  ;;  %v7800_v36 = vor.u32 %v8959_v39, %v7799_v35  ;;  %v3491_v58 = vadd.f32 %v3490_v49, %v2032_v32  ;;  %v8947_v23 = vld [vmem:[%s9828_s2 + $0x22c] sm:$0xf0]  ;;  %v7624_v32 = vor.u32 %v8915_v21, %v7623_v19 }
 0x605   : > { %v7249_v50 = vld [vmem:[%s9819_s24 + $0x638] sm:$0xf0]  ;;  %3697 = vmatmul.bf16.vlgmr.msrb.gmra.mxu0 %v10270_v28  ;;  %v7560_v28 = vor.u32 %v8899_v18, %v7559_v17  ;;  %v7928_v57 = vor.u32 %v8991_v48, %v7927_v47  ;;  %v10799_v7 = vadd.f32 %v10723_v11, %v3465_v55  ;;  %v7768_v11 = vor.u32 %v8951_v4, %v7767_v3  ;;  %v7495_v17 = vld [vmem:[%s9828_s2 + $0x20] sm:$0xf]  ;;  %v8883_v18 = vld [vmem:[%s9828_s2 + $0x2c] sm:$0xf0] }
 0x606   : > { %v7252_v61 = vor.u32 %v8816_v42, %v7249_v50  ;;  %3722 = vmatpush.bf16.msrb.mxu2 %v6996_v40  ;;  %5305 = vmatpush.bf16.msra.mxu0 %v7592_v62  ;;  %v7527_v42 = vld [vmem:[%s9828_s2 + $0x60] sm:$0xf]  ;;  %v8891_v50 = vld [vmem:[%s9828_s2 + $0x6c] sm:$0xf0]  ;;  %v3504_v56 = vadd.f32 %v3503_v51, %v3491_v58  ;;  %v7656_v62 = vor.u32 %v8923_v52, %v7655_v33 }
 0x607   : > { %3710 = vmatmul.bf16.vlgmr.msrb.gmra.mxu1 %v10285_v37  ;;  %v8995_v37 = vld [vmem:[%s9828_s2 + $0x3ac] sm:$0xf0]  ;;  %v7528_v59 = vor.u32 %v8891_v50, %v7527_v42  ;;  %v7911_v40 = vld [vmem:[%s9828_s2 + $0x360] sm:$0xf]  ;;  %v3749_v51 = vmax.f32 %v10591_v60, %v3741_v9 }
 0x608   : > { %3735 = vmatpush.bf16.msrb.mxu3 %v7252_v61  ;;  %5318 = vmatpush.bf16.msra.mxu1 %v7720_v43  ;;  %v7944_v45 = vor.u32 %v8995_v37, %v7943_v26  ;;  %v8987_v61 = vld [vmem:[%s9828_s2 + $0x36c] sm:$0xf0]  ;;  %v7879_v37 = vld [vmem:[%s9828_s2 + $0x320] sm:$0xf] }
 0x609   : > { %3723 = vmatmul.bf16.vlgmr.msrb.gmra.mxu2 %v10268_v27  ;;  %v7671_v27 = vld [vmem:[%s9828_s2 + $0x180] sm:$0xf]  ;;  %v8887_v43 = vld [vmem:[%s9828_s2 + $0x4c] sm:$0xf0] }
 0x60a   : > { %5331 = vmatpush.bf16.msra.mxu2 %v7848_v1  ;;  %5306 = vmatpush.bf16.msra.mxu0 %v7576_v12  ;;  %v7639_v1 = vld [vmem:[%s9828_s2 + $0x140] sm:$0xf]  ;;  %v7512_v12 = vor.u32 %v8887_v43, %v7511_v41  ;;  %v8911_v39 = vld [vmem:[%s9828_s2 + $0x10c] sm:$0xf0] }
 0x60b   : > { %3736 = vmatmul.bf16.vlgmr.msrb.gmra.mxu3 %v10275_v38  ;;  %v8927_v38 = vld [vmem:[%s9828_s2 + $0x18c] sm:$0xf0]  ;;  %v3516_v6 = vpop.f32.mrf.mxu2  ;;  %v3505_v20 = vpop.f32.mrf.mxu1  ;;  %v7479_v31 = vld [vmem:[%s9828_s2] sm:$0xf] }
 0x60c   : > { %5344 = vmatpush.bf16.msra.mxu3 %v7976_v10  ;;  %5319 = vmatpush.bf16.msra.mxu1 %v7704_v15  ;;  %v7672_v63 = vor.u32 %v8927_v38, %v7671_v27  ;;  %v3517_v8 = vadd.f32 %v3516_v6, %v3504_v56  ;;  %v7912_v10 = vor.u32 %v8987_v61, %v7911_v40  ;;  %v3492_v15 = vpop.f32.mrf.mxu0  ;;  %v8879_v27 = vld [vmem:[%s9828_s2 + $0xc] sm:$0xf0]  ;;  %v7607_v35 = vld [vmem:[%s9828_s2 + $0x100] sm:$0xf] }
 0x60d   : > { %v3529_v5 = vpop.f32.mrf.mxu3  ;;  %v7752_v38 = vor.u32 %v8947_v23, %v7751_v22  ;;  %v7735_v44 = vld [vmem:[%s9828_s2 + $0x200] sm:$0xf]  ;;  %v9035_v48 = vld [vmem:[%s9828_s2 + $0x4ec] sm:$0xf0]  ;;  %v7480_v33 = vor.u32 %v8879_v27, %v7479_v31  ;;  %v7608_v52 = vor.u32 %v8911_v39, %v7607_v35 }
 0x60e   : > { %5332 = vmatpush.bf16.msra.mxu2 %v7832_v16  ;;  %5307 = vmatpush.bf16.msra.mxu0 %v7560_v28  ;;  %v7640_v16 = vor.u32 %v8919_v2, %v7639_v1  ;;  %v3743_v28 = vmul.f32 0.01, %v10799_v7  ;;  %v3530_v26 = vadd.f32 %v3529_v5, %v3517_v8  ;;  %v8103_v47 = vld [vmem:[%s9828_s2 + $0x4e0] sm:$0xf]  ;;  %v9067_v42 = vld [vmem:[%s9828_s2 + $0x5ec] sm:$0xf0] }
 0x60f   : > { %v8359_v58 = vld [vmem:[%s9828_s2 + $0x6e0] sm:$0xf]  ;;  %v8975_v55 = vld [vmem:[%s9828_s2 + $0x30c] sm:$0xf0] }
 0x610   : > { %5345 = vmatpush.bf16.msra.mxu3 %v7960_v24  ;;  %5320 = vmatpush.bf16.msra.mxu1 %v7688_v30  ;;  %v3742_v24 = vmul.f32 0.01, %v10649_v25  ;;  %v7496_v30 = vor.u32 %v8883_v18, %v7495_v17  ;;  %v7863_v54 = vld [vmem:[%s9828_s2 + $0x300] sm:$0xf]  ;;  %v9099_v56 = vld [vmem:[%s9828_s2 + $0x6ec] sm:$0xf0] }
 0x611   : > { %v8087_v61 = vld [vmem:[%s9828_s2 + $0x4c0] sm:$0xf]  ;;  %v9031_v41 = vld [vmem:[%s9828_s2 + $0x4cc] sm:$0xf0]  ;;  %v8360_v1 = vor.u32 %v9099_v56, %v8359_v58  ;;  %v7864_v6 = vor.u32 %v8975_v55, %v7863_v54 }
 0x612   : > { %5333 = vmatpush.bf16.msra.mxu2 %v7816_v53  ;;  %5308 = vmatpush.bf16.msra.mxu0 %v7544_v46  ;;  %v8979_v53 = vld [vmem:[%s9828_s2 + $0x32c] sm:$0xf0]  ;;  %v8215_v60 = vld [vmem:[%s9828_s2 + $0x5c0] sm:$0xf]  ;;  %v8088_v5 = vor.u32 %v9031_v41, %v8087_v61 }
 0x613   : > { %v8943_v46 = vld [vmem:[%s9828_s2 + $0x20c] sm:$0xf0]  ;;  %v7880_v50 = vor.u32 %v8979_v53, %v7879_v37  ;;  %v8343_v2 = vld [vmem:[%s9828_s2 + $0x6c0] sm:$0xf] }
 0x614   : > { %5346 = vmatpush.bf16.msra.mxu3 %v7944_v45  ;;  %5321 = vmatpush.bf16.msra.mxu1 %v7672_v63  ;;  %v3518_v45 = vpop.f32.mrf.mxu2  ;;  %v3744_v63 = vmul.f32 0.01, %v3530_v26  ;;  %v7736_v34 = vor.u32 %v8943_v46, %v7735_v44  ;;  %v9063_v43 = vld [vmem:[%s9828_s2 + $0x5cc] sm:$0xf0]  ;;  %v8071_v8 = vld [vmem:[%s9828_s2 + $0x4a0] sm:$0xf] }
 0x615   : > { %v3531_v49 = vpop.f32.mrf.mxu3  ;;  %v9095_v3 = vld [vmem:[%s9828_s2 + $0x6cc] sm:$0xf0]  ;;  %v8199_v13 = vld [vmem:[%s9828_s2 + $0x5a0] sm:$0xf] }
 0x616   : > { %5334 = vmatpush.bf16.msra.mxu2 %v7800_v36  ;;  %5309 = vmatpush.bf16.msra.mxu0 %v7528_v59  ;;  %v8231_v36 = vld [vmem:[%s9828_s2 + $0x5e0] sm:$0xf]  ;;  %v8104_v59 = vor.u32 %v9035_v48, %v8103_v47  ;;  %v9059_v14 = vld [vmem:[%s9828_s2 + $0x5ac] sm:$0xf0]  ;;  %v8344_v15 = vor.u32 %v9095_v3, %v8343_v2 }
 0x617   : > { %v8232_v40 = vor.u32 %v9067_v42, %v8231_v36  ;;  %v8200_v18 = vor.u32 %v9059_v14, %v8199_v13  ;;  %v8055_v19 = vld [vmem:[%s9828_s2 + $0x480] sm:$0xf]  ;;  %v9023_v20 = vld [vmem:[%s9828_s2 + $0x48c] sm:$0xf0]  ;;  %v8905_v13 = vld [vmem:[%s9828_s2 + $0xe4] sm:$0xf] }
 0x618   : > { %5347 = vmatpush.bf16.msra.mxu3 %v7928_v57  ;;  %5322 = vmatpush.bf16.msra.mxu1 %v7656_v62  ;;  %v3750_v57 = vmax.f32 %v10649_v25, %v3742_v24  ;;  %v3751_v62 = vmax.f32 %v10799_v7, %v3743_v28  ;;  %v10837_v25 = vpack.c.bf16 %v3749_v51, %v3749_v51  ;;  %v8183_v21 = vld [vmem:[%s9828_s2 + $0x580] sm:$0xf]  ;;  %v9055_v22 = vld [vmem:[%s9828_s2 + $0x58c] sm:$0xf0]  ;;  %v7593_v14 = vld [vmem:[%s9828_s2 + $0xf0] sm:$0xf0] }
 0x619   : > { %v8216_v7 = vor.u32 %v9063_v43, %v8215_v60  ;;  %v10861_v23 = vld [vmem:[%s473_s30] sm:$0xff]  ;;  %v8039_v31 = vld [vmem:[%s9828_s2 + $0x460] sm:$0xf] }
 0x61a   : > { %5335 = vmatpush.bf16.msra.mxu2 %v7784_v0  ;;  %5310 = vmatpush.bf16.msra.mxu0 %v7512_v12  ;;  %v3752_v0 = vmax.f32 %v3530_v26, %v3744_v63  ;;  %v10839_v4 = vpack.c.bf16 %v3750_v57, %v3750_v57  ;;  %v10842_v9 = vpack.c.bf16 %v3751_v62, %v3751_v62  ;;  %v9027_v12 = vld [vmem:[%s9828_s2 + $0x4ac] sm:$0xf0]  ;;  %v2033_v24 = vperm.slane %v10861_v23, 4  ;;  %v8311_v26 = vld [vmem:[%s9828_s2 + $0x680] sm:$0xf] }
 0x61b   : > { %v8072_v17 = vor.u32 %v9027_v12, %v8071_v8  ;;  %v9087_v37 = vld [vmem:[%s9828_s2 + $0x68c] sm:$0xf0]  ;;  %v8295_v45 = vld [vmem:[%s9828_s2 + $0x660] sm:$0xf] }
 0x61c   : > { %5348 = vmatpush.bf16.msra.mxu3 %v7912_v10  ;;  %5323 = vmatpush.bf16.msra.mxu1 %v7640_v16  ;;  %v10844_v10 = vpack.c.bf16 %v3752_v0, %v3752_v0  ;;  %v8327_v16 = vld [vmem:[%s9828_s2 + $0x6a0] sm:$0xf]  ;;  %v9051_v35 = vld [vmem:[%s9828_s2 + $0x56c] sm:$0xf0]  ;;  %v8312_v44 = vor.u32 %v9087_v37, %v8311_v26 }
 0x61d   : > { %v9083_v46 = vld [vmem:[%s9828_s2 + $0x66c] sm:$0xf0]  ;;  %v8023_v63 = vld [vmem:[%s9828_s2 + $0x440] sm:$0xf] }
 0x61e   : > { %5336 = vmatpush.bf16.msra.mxu2 %v7768_v11  ;;  %5311 = vmatpush.bf16.msra.mxu0 %v7496_v30  ;;  %v9091_v11 = vld [vmem:[%s9828_s2 + $0x6ac] sm:$0xf0]  ;;  %v8184_v30 = vor.u32 %v9055_v22, %v8183_v21  ;;  %v8296_v58 = vor.u32 %v9083_v46, %v8295_v45  ;;  %v8135_v62 = vld [vmem:[%s9828_s2 + $0x520] sm:$0xf] }
 0x61f   : > { %v8328_v28 = vor.u32 %v9091_v11, %v8327_v16  ;;  %v9015_v42 = vld [vmem:[%s9828_s2 + $0x44c] sm:$0xf0]  ;;  %v8263_v43 = vld [vmem:[%s9828_s2 + $0x620] sm:$0xf] }
 0x620   : > { %5349 = vmatpush.bf16.msra.mxu3 %v7896_v29  ;;  %5324 = vmatpush.bf16.msra.mxu1 %v7624_v32  ;;  %v8056_v29 = vor.u32 %v9023_v20, %v8055_v19  ;;  %v9019_v32 = vld [vmem:[%s9828_s2 + $0x46c] sm:$0xf0]  ;;  %v8024_v55 = vor.u32 %v9015_v42, %v8023_v63  ;;  %v7991_v2 = vld [vmem:[%s9828_s2 + $0x400] sm:$0xf]  ;;  %v7833_v63 = vld [vmem:[%s9828_s2 + $0x2d0] sm:$0xf0] }
 0x621   : > { %v3542_v53 = vpop.f32.mrf.mxu0  ;;  %v8040_v48 = vor.u32 %v9019_v32, %v8039_v31  ;;  %v9079_v54 = vld [vmem:[%s9828_s2 + $0x64c] sm:$0xf0]  ;;  %v8119_v8 = vld [vmem:[%s9828_s2 + $0x500] sm:$0xf]  ;;  %v7577_v32 = vld [vmem:[%s9828_s2 + $0xd0] sm:$0xf0] }
 0x622   : > { %5337 = vmatpush.bf16.msra.mxu2 %v7752_v38  ;;  %5312 = vmatpush.bf16.msra.mxu0 %v7480_v33  ;;  %v3543_v27 = vadd.f32 %v3542_v53, %v2033_v24  ;;  %v8167_v38 = vld [vmem:[%s9828_s2 + $0x560] sm:$0xf]  ;;  %v9047_v33 = vld [vmem:[%s9828_s2 + $0x54c] sm:$0xf0]  ;;  %v7596_v53 = vor.u32 %v8905_v13, %v7593_v14  ;;  %v7529_v14 = vld [vmem:[%s9828_s2 + $0x70] sm:$0xf0] }
 0x623   : > { %v3555_v39 = vpop.f32.mrf.mxu1  ;;  %v8168_v49 = vor.u32 %v9051_v35, %v8167_v38  ;;  %v9011_v61 = vld [vmem:[%s9828_s2 + $0x42c] sm:$0xf0]  ;;  %v8487_v19 = vld [vmem:[%s9828_s2 + $0x7e0] sm:$0xf]  ;;  %v8933_v38 = vld [vmem:[%s9828_s2 + $0x1c4] sm:$0xf] }
 0x624   : > { %5350 = vmatpush.bf16.msra.mxu3 %v7880_v50  ;;  %5325 = vmatpush.bf16.msra.mxu1 %v7608_v52  ;;  %v3556_v47 = vadd.f32 %v3555_v39, %v3543_v27  ;;  %v8151_v50 = vld [vmem:[%s9828_s2 + $0x540] sm:$0xf]  ;;  %v9043_v0 = vld [vmem:[%s9828_s2 + $0x52c] sm:$0xf0]  ;;  %v8901_v27 = vld [vmem:[%s9828_s2 + $0xc4] sm:$0xf] }
 0x625   : > { %5313 = vmatmul.bf16.vlgmr.msra.gmra.mxu0 %v10837_v25  ;;  %v8152_v56 = vor.u32 %v9047_v33, %v8151_v50  ;;  %v9039_v12 = vld [vmem:[%s9828_s2 + $0x50c] sm:$0xf0]  ;;  %v8247_v22 = vld [vmem:[%s9828_s2 + $0x600] sm:$0xf]  ;;  %v7705_v35 = vld [vmem:[%s9828_s2 + $0x1d0] sm:$0xf0] }
 0x626   : > { %5338 = vmatpush.bf16.msra.mxu2 %v7736_v34  ;;  %5357 = vmatpush.bf16.msrb.mxu0 %v8104_v59  ;;  %v8279_v34 = vld [vmem:[%s9828_s2 + $0x640] sm:$0xf]  ;;  %v9131_v20 = vld [vmem:[%s9828_s2 + $0x7ec] sm:$0xf0]  ;;  %v8120_v37 = vor.u32 %v9039_v12, %v8119_v8  ;;  %v7708_v42 = vor.u32 %v8933_v38, %v7705_v35  ;;  %v8897_v50 = vld [vmem:[%s9828_s2 + $0xa4] sm:$0xf] }
 0x627   : > { %5326 = vmatmul.bf16.vlgmr.msra.gmra.mxu1 %v10839_v4  ;;  %v8007_v59 = vld [vmem:[%s9828_s2 + $0x420] sm:$0xf]  ;;  %v8280_v60 = vor.u32 %v9079_v54, %v8279_v34  ;;  %v9071_v24 = vld [vmem:[%s9828_s2 + $0x60c] sm:$0xf0]  ;;  %v7561_v33 = vld [vmem:[%s9828_s2 + $0xb0] sm:$0xf0] }
 0x628   : > { %5370 = vmatpush.bf16.msrb.mxu1 %v8232_v40  ;;  %5351 = vmatpush.bf16.msra.mxu3 %v7864_v6  ;;  %v8008_v3 = vor.u32 %v9011_v61, %v8007_v59  ;;  %v8248_v39 = vor.u32 %v9071_v24, %v8247_v22  ;;  %v8471_v46 = vld [vmem:[%s9828_s2 + $0x7c0] sm:$0xf]  ;;  %v9123_v34 = vld [vmem:[%s9828_s2 + $0x7ac] sm:$0xf0]  ;;  %v7564_v59 = vor.u32 %v8897_v50, %v7561_v33  ;;  %v8893_v61 = vld [vmem:[%s9828_s2 + $0x84] sm:$0xf] }
 0x629   : > { %5339 = vmatmul.bf16.vlgmr.msra.gmra.mxu2 %v10842_v9  ;;  %v3544_v40 = vpop.f32.mrf.mxu0  ;;  %v8889_v12 = vld [vmem:[%s9828_s2 + $0x64] sm:$0xf]  ;;  %v7785_v24 = vld [vmem:[%s9828_s2 + $0x270] sm:$0xf0]  ;;  %v8407_v38 = vld [vmem:[%s9828_s2 + $0x740] sm:$0xf] }
 0x62a   : > { %5383 = vmatpush.bf16.msrb.mxu2 %v8360_v1  ;;  %5358 = vmatpush.bf16.msrb.mxu0 %v8088_v5  ;;  %v9075_v1 = vld [vmem:[%s9828_s2 + $0x62c] sm:$0xf0]  ;;  %v8136_v5 = vor.u32 %v9043_v0, %v8135_v62  ;;  %v7545_v62 = vld [vmem:[%s9828_s2 + $0x90] sm:$0xf0]  ;;  %v8925_v0 = vld [vmem:[%s9828_s2 + $0x184] sm:$0xf] }
 0x62b   : > { %5352 = vmatmul.bf16.vlgmr.msra.gmra.mxu3 %v10844_v10  ;;  %v3568_v36 = vpop.f32.mrf.mxu2  ;;  %v3557_v41 = vpop.f32.mrf.mxu1  ;;  %v8264_v11 = vor.u32 %v9075_v1, %v8263_v43  ;;  %v9119_v43 = vld [vmem:[%s9828_s2 + $0x78c] sm:$0xf0]  ;;  %v2034_v1 = vperm.slane %v10861_v23, 5  ;;  %v8953_v22 = vld [vmem:[%s9828_s2 + $0x264] sm:$0xf] }
 0x62c   : > { %5371 = vmatpush.bf16.msrb.mxu1 %v8216_v7  ;;  %v3569_v51 = vadd.f32 %v3568_v36, %v3556_v47  ;;  %v9007_v7 = vld [vmem:[%s9828_s2 + $0x40c] sm:$0xf0]  ;;  %v7580_v36 = vor.u32 %v8901_v27, %v7577_v32  ;;  %v7673_v41 = vld [vmem:[%s9828_s2 + $0x190] sm:$0xf0]  ;;  %v7788_v32 = vor.u32 %v8953_v22, %v7785_v24  ;;  %v8913_v33 = vld [vmem:[%s9828_s2 + $0x124] sm:$0xf] }
 0x62d   : > { %v3581_v52 = vpop.f32.mrf.mxu3  ;;  %v7992_v26 = vor.u32 %v9007_v7, %v7991_v2  ;;  %v9127_v47 = vld [vmem:[%s9828_s2 + $0x7cc] sm:$0xf0]  ;;  %v7548_v7 = vor.u32 %v8893_v61, %v7545_v62  ;;  %v7676_v8 = vor.u32 %v8925_v0, %v7673_v41  ;;  %v7497_v50 = vld [vmem:[%s9828_s2 + $0x30] sm:$0xf0]  ;;  %v8945_v61 = vld [vmem:[%s9828_s2 + $0x224] sm:$0xf] }
 0x62e   : > { %5384 = vmatpush.bf16.msrb.mxu2 %v8344_v15  ;;  %5359 = vmatpush.bf16.msrb.mxu0 %v8072_v17  ;;  %v3582_v57 = vadd.f32 %v3581_v52, %v3569_v51  ;;  %v8937_v15 = vld [vmem:[%s9828_s2 + $0x1e4] sm:$0xf]  ;;  %v7721_v17 = vld [vmem:[%s9828_s2 + $0x1f0] sm:$0xf0]  ;;  %v8455_v52 = vld [vmem:[%s9828_s2 + $0x7a0] sm:$0xf] }
 0x62f   : > { %v7724_v31 = vor.u32 %v8937_v15, %v7721_v17  ;;  %v7689_v51 = vld [vmem:[%s9828_s2 + $0x1b0] sm:$0xf0]  ;;  %v8921_v15 = vld [vmem:[%s9828_s2 + $0x164] sm:$0xf]  ;;  %v9111_v35 = vld [vmem:[%s9828_s2 + $0x74c] sm:$0xf0] }
 0x630   : > { %5372 = vmatpush.bf16.msrb.mxu1 %v8200_v18  ;;  %v3745_v6 = vmul.f32 0.01, %v3582_v57  ;;  %v7753_v62 = vld [vmem:[%s9828_s2 + $0x230] sm:$0xf0] }
 0x632   : > { %5385 = vmatpush.bf16.msrb.mxu2 %v8328_v28  ;;  %5360 = vmatpush.bf16.msrb.mxu0 %v8056_v29  ;;  %v3753_v21 = vmax.f32 %v3582_v57, %v3745_v6  ;;  %v8488_v28 = vor.u32 %v9131_v20, %v8487_v19  ;;  %v8969_v29 = vld [vmem:[%s9828_s2 + $0x2e4] sm:$0xf]  ;;  %v7817_v57 = vld [vmem:[%s9828_s2 + $0x2b0] sm:$0xf0]  ;;  %v8423_v19 = vld [vmem:[%s9828_s2 + $0x760] sm:$0xf] }
 0x633   : > { %v3570_v16 = vpop.f32.mrf.mxu2  ;;  %v9115_v20 = vld [vmem:[%s9828_s2 + $0x76c] sm:$0xf0] }
 0x634   : > { %5373 = vmatpush.bf16.msrb.mxu1 %v8184_v30  ;;  %v7849_v30 = vld [vmem:[%s9828_s2 + $0x2f0] sm:$0xf0]  ;;  %5396 = vmatpush.bf16.msrb.mxu3 %v8488_v28 }
 0x635   : > { %v3583_v18 = vpop.f32.mrf.mxu3  ;;  %v7852_v45 = vor.u32 %v8969_v29, %v7849_v30  ;;  %v7657_v16 = vld [vmem:[%s9828_s2 + $0x170] sm:$0xf0]  ;;  %v8885_v29 = vld [vmem:[%s9828_s2 + $0x44] sm:$0xf] }
 0x636   : > { %5386 = vmatpush.bf16.msrb.mxu2 %v8312_v44  ;;  %5361 = vmatpush.bf16.msrb.mxu0 %v8040_v48  ;;  %v10902_v44 = vpack.c.bf16 %v3753_v21, %v3753_v21  ;;  %v8472_v48 = vor.u32 %v9127_v47, %v8471_v46  ;;  %v8424_v21 = vor.u32 %v9115_v20, %v8423_v19  ;;  %v7513_v30 = vld [vmem:[%s9828_s2 + $0x50] sm:$0xf0]  ;;  %v8949_v47 = vld [vmem:[%s9828_s2 + $0x244] sm:$0xf] }
 0x637   : > { %v8408_v46 = vor.u32 %v9111_v35, %v8407_v38  ;;  %v7977_v19 = vld [vmem:[%s9828_s2 + $0x3f0] sm:$0xf0] }
 0x638   : > { %5374 = vmatpush.bf16.msrb.mxu1 %v8168_v49  ;;  %v8965_v49 = vld [vmem:[%s9828_s2 + $0x2c4] sm:$0xf]  ;;  %5397 = vmatpush.bf16.msrb.mxu3 %v8472_v48  ;;  %v7769_v48 = vld [vmem:[%s9828_s2 + $0x250] sm:$0xf0] }
 0x639   : > { %v7836_v54 = vor.u32 %v8965_v49, %v7833_v63  ;;  %v7516_v49 = vor.u32 %v8885_v29, %v7513_v30  ;;  %v9061_v29 = vld [vmem:[%s9828_s2 + $0x5c4] sm:$0xf]  ;;  %v8217_v30 = vld [vmem:[%s9828_s2 + $0x5d0] sm:$0xf0] }
 0x63a   : > { %5387 = vmatpush.bf16.msrb.mxu2 %v8296_v58  ;;  %5362 = vmatpush.bf16.msrb.mxu0 %v8024_v55  ;;  %v8929_v58 = vld [vmem:[%s9828_s2 + $0x1a4] sm:$0xf]  ;;  %v8456_v55 = vor.u32 %v9123_v34, %v8455_v52  ;;  %v7772_v34 = vor.u32 %v8949_v47, %v7769_v48  ;;  %v8220_v35 = vor.u32 %v9061_v29, %v8217_v30  ;;  %v8201_v47 = vld [vmem:[%s9828_s2 + $0x5b0] sm:$0xf0] }
 0x63b   : > { %v7692_v40 = vor.u32 %v8929_v58, %v7689_v51  ;;  %v7625_v58 = vld [vmem:[%s9828_s2 + $0x130] sm:$0xf0]  ;;  %v8993_v48 = vld [vmem:[%s9828_s2 + $0x3a4] sm:$0xf] }
 0x63c   : > { %5375 = vmatpush.bf16.msrb.mxu1 %v8152_v56  ;;  %v8961_v56 = vld [vmem:[%s9828_s2 + $0x2a4] sm:$0xf]  ;;  %5398 = vmatpush.bf16.msrb.mxu3 %v8456_v55  ;;  %v9107_v55 = vld [vmem:[%s9828_s2 + $0x72c] sm:$0xf0]  ;;  %v7628_v41 = vor.u32 %v8913_v33, %v7625_v58  ;;  %v8057_v33 = vld [vmem:[%s9828_s2 + $0x490] sm:$0xf0] }
 0x63d   : > { %v7820_v6 = vor.u32 %v8961_v56, %v7817_v57  ;;  %v8877_v57 = vld [vmem:[%s9828_s2 + $0x4] sm:$0xf] }
 0x63e   : > { %5388 = vmatpush.bf16.msrb.mxu2 %v8280_v60  ;;  %5363 = vmatpush.bf16.msrb.mxu0 %v8008_v3  ;;  %v8439_v60 = vld [vmem:[%s9828_s2 + $0x780] sm:$0xf]  ;;  %v8957_v3 = vld [vmem:[%s9828_s2 + $0x284] sm:$0xf] }
 0x63f   : > { %v8440_v2 = vor.u32 %v9119_v43, %v8439_v60  ;;  %v8909_v60 = vld [vmem:[%s9828_s2 + $0x104] sm:$0xf]  ;;  %v7609_v43 = vld [vmem:[%s9828_s2 + $0x110] sm:$0xf0] }
 0x640   : > { %5376 = vmatpush.bf16.msrb.mxu1 %v8136_v5  ;;  %v7801_v5 = vld [vmem:[%s9828_s2 + $0x290] sm:$0xf0]  ;;  %v9053_v58 = vld [vmem:[%s9828_s2 + $0x584] sm:$0xf] }
 0x641   : > { %v3594_v13 = vpop.f32.mrf.mxu0  ;;  %5399 = vmatpush.bf16.msrb.mxu3 %v8440_v2  ;;  %v7804_v18 = vor.u32 %v8957_v3, %v7801_v5  ;;  %v8105_v2 = vld [vmem:[%s9828_s2 + $0x4f0] sm:$0xf0]  ;;  %v8375_v3 = vld [vmem:[%s9828_s2 + $0x700] sm:$0xf]  ;;  %v9103_v5 = vld [vmem:[%s9828_s2 + $0x70c] sm:$0xf0] }
 0x642   : > { %5389 = vmatpush.bf16.msrb.mxu2 %v8264_v11  ;;  %5364 = vmatpush.bf16.msrb.mxu0 %v7992_v26  ;;  %v3595_v11 = vadd.f32 %v3594_v13, %v2034_v1  ;;  %v7532_v26 = vor.u32 %v8889_v12, %v7529_v14  ;;  %v9033_v1 = vld [vmem:[%s9828_s2 + $0x4e4] sm:$0xf]  ;;  %v7756_v13 = vor.u32 %v8945_v61, %v7753_v62  ;;  %v8169_v62 = vld [vmem:[%s9828_s2 + $0x570] sm:$0xf0] }
 0x643   : > { %v3607_v17 = vpop.f32.mrf.mxu1  ;;  %v8376_v14 = vor.u32 %v9103_v5, %v8375_v3  ;;  %v8108_v24 = vor.u32 %v9033_v1, %v8105_v2  ;;  %v9049_v61 = vld [vmem:[%s9828_s2 + $0x564] sm:$0xf] }
 0x644   : > { %5377 = vmatpush.bf16.msrb.mxu1 %v8120_v37  ;;  %v3608_v28 = vadd.f32 %v3607_v17, %v3595_v11  ;;  %v7660_v37 = vor.u32 %v8921_v15, %v7657_v16  ;;  %v8941_v15 = vld [vmem:[%s9828_s2 + $0x204] sm:$0xf]  ;;  %v7737_v17 = vld [vmem:[%s9828_s2 + $0x210] sm:$0xf0]  ;;  %v8172_v3 = vor.u32 %v9049_v61, %v8169_v62 }
 0x645   : > { %5365 = vmatmul.bf16.vlgmr.msrb.gmra.mxu0 %v10902_v44  ;;  %5400 = vmatpush.bf16.msrb.mxu3 %v8424_v21  ;;  %v7612_v21 = vor.u32 %v8909_v60, %v7609_v43  ;;  %v7913_v60 = vld [vmem:[%s9828_s2 + $0x370] sm:$0xf0]  ;;  %v9013_v5 = vld [vmem:[%s9828_s2 + $0x444] sm:$0xf] }
 0x646   : > { %5409 = vmatpush.bf16.msra.mxu0 %v7596_v53  ;;  %5390 = vmatpush.bf16.msrb.mxu2 %v8248_v39  ;;  %v8917_v53 = vld [vmem:[%s9828_s2 + $0x144] sm:$0xf] }
 0x647   : > { %v8977_v30 = vld [vmem:[%s9828_s2 + $0x324] sm:$0xf] }
 0x648   : > { %5422 = vmatpush.bf16.msra.mxu1 %v7724_v31  ;;  %v7641_v31 = vld [vmem:[%s9828_s2 + $0x150] sm:$0xf0]  ;;  %v9093_v62 = vld [vmem:[%s9828_s2 + $0x6c4] sm:$0xf] }
 0x649   : > { %v7644_v63 = vor.u32 %v8917_v53, %v7641_v31  ;;  %v3596_v51 = vpop.f32.mrf.mxu0  ;;  %5401 = vmatpush.bf16.msrb.mxu3 %v8408_v46  ;;  %v7740_v53 = vor.u32 %v8941_v15, %v7737_v17  ;;  %v8997_v31 = vld [vmem:[%s9828_s2 + $0x3c4] sm:$0xf]  ;;  %v7897_v15 = vld [vmem:[%s9828_s2 + $0x350] sm:$0xf0] }
 0x64a   : > { %5435 = vmatpush.bf16.msra.mxu2 %v7852_v45  ;;  %5410 = vmatpush.bf16.msra.mxu0 %v7580_v36  ;;  %v8881_v36 = vld [vmem:[%s9828_s2 + $0x24] sm:$0xf]  ;;  %v8185_v51 = vld [vmem:[%s9828_s2 + $0x590] sm:$0xf0] }
 0x64b   : > { %v3620_v27 = vpop.f32.mrf.mxu2  ;;  %v3609_v52 = vpop.f32.mrf.mxu1  ;;  %v7500_v0 = vor.u32 %v8881_v36, %v7497_v50  ;;  %v9057_v46 = vld [vmem:[%s9828_s2 + $0x5a4] sm:$0xf] }
 0x64c   : > { %5423 = vmatpush.bf16.msra.mxu1 %v7708_v42  ;;  %v3621_v39 = vadd.f32 %v3620_v27, %v3608_v28  ;;  %v7961_v27 = vld [vmem:[%s9828_s2 + $0x3d0] sm:$0xf0]  ;;  %v9021_v50 = vld [vmem:[%s9828_s2 + $0x484] sm:$0xf] }
 0x64d   : > { %v3633_v45 = vpop.f32.mrf.mxu3  ;;  %v8989_v52 = vld [vmem:[%s9828_s2 + $0x384] sm:$0xf] }
 0x64e   : > { %5436 = vmatpush.bf16.msra.mxu2 %v7836_v54  ;;  %5411 = vmatpush.bf16.msra.mxu0 %v7564_v59  ;;  %v3634_v42 = vadd.f32 %v3633_v45, %v3621_v39  ;;  %v8391_v54 = vld [vmem:[%s9828_s2 + $0x720] sm:$0xf]  ;;  %v7481_v59 = vld [vmem:[%s9828_s2 + $0x10] sm:$0xf0]  ;;  %v9025_v39 = vld [vmem:[%s9828_s2 + $0x4a4] sm:$0xf] }
 0x64f   : > { %v7484_v20 = vor.u32 %v8877_v57, %v7481_v59  ;;  %v8073_v45 = vld [vmem:[%s9828_s2 + $0x4b0] sm:$0xf0]  ;;  %v8188_v57 = vor.u32 %v9053_v58, %v8185_v51  ;;  %v9017_v59 = vld [vmem:[%s9828_s2 + $0x464] sm:$0xf] }
 0x650   : > { %5424 = vmatpush.bf16.msra.mxu1 %v7692_v40  ;;  %v3746_v56 = vmul.f32 0.01, %v3634_v42  ;;  %v8392_v40 = vor.u32 %v9107_v55, %v8391_v54  ;;  %v8076_v36 = vor.u32 %v9025_v39, %v8073_v45  ;;  %v2035_v54 = vperm.slane %v10861_v23, 6  ;;  %v8973_v58 = vld [vmem:[%s9828_s2 + $0x304] sm:$0xf] }
 0x651   : > { %v7865_v51 = vld [vmem:[%s9828_s2 + $0x310] sm:$0xf0] }
 0x652   : > { %5437 = vmatpush.bf16.msra.mxu2 %v7820_v6  ;;  %5412 = vmatpush.bf16.msra.mxu0 %v7548_v7  ;;  %v3754_v6 = vmax.f32 %v3634_v42, %v3746_v56  ;;  %v9065_v7 = vld [vmem:[%s9828_s2 + $0x5e4] sm:$0xf]  ;;  %v8204_v42 = vor.u32 %v9057_v46, %v8201_v47  ;;  %v8060_v56 = vor.u32 %v9021_v50, %v8057_v33  ;;  %v8940_v33 = vld [vmem:[%s9828_s2 + $0x1f4] sm:$0xf0] }
 0x653   : > { %5402 = vmatpush.bf16.msrb.mxu3 %v8392_v40  ;;  %v3622_v12 = vpop.f32.mrf.mxu2  ;;  %v8041_v40 = vld [vmem:[%s9828_s2 + $0x470] sm:$0xf0] }
 0x654   : > { %5425 = vmatpush.bf16.msra.mxu1 %v7676_v8  ;;  %v8233_v8 = vld [vmem:[%s9828_s2 + $0x5f0] sm:$0xf0]  ;;  %v10961_v16 = vpack.c.bf16 %v3754_v6, %v3754_v6  ;;  %v8044_v2 = vor.u32 %v9017_v59, %v8041_v40  ;;  %v9045_v12 = vld [vmem:[%s9828_s2 + $0x544] sm:$0xf] }
 0x655   : > { %v3635_v11 = vpop.f32.mrf.mxu3  ;;  %v8236_v28 = vor.u32 %v9065_v7, %v8233_v8  ;;  %v8025_v8 = vld [vmem:[%s9828_s2 + $0x450] sm:$0xf0] }
 0x656   : > { %5438 = vmatpush.bf16.msra.mxu2 %v7804_v18  ;;  %5413 = vmatpush.bf16.msra.mxu0 %v7532_v26  ;;  %v9001_v18 = vld [vmem:[%s9828_s2 + $0x3e4] sm:$0xf] }
 0x657   : > { %v7980_v22 = vor.u32 %v9001_v18, %v7977_v19  ;;  %5378 = vmatmul.bf16.vlgmr.msrb.gmra.mxu1 %v10961_v16  ;;  %v9029_v26 = vld [vmem:[%s9828_s2 + $0x4c4] sm:$0xf]  ;;  %5403 = vmatpush.bf16.msrb.mxu3 %v8376_v14 }
 0x658   : > { %5426 = vmatpush.bf16.msra.mxu1 %v7660_v37  ;;  %v8089_v37 = vld [vmem:[%s9828_s2 + $0x4d0] sm:$0xf0]  ;;  %v8981_v14 = vld [vmem:[%s9828_s2 + $0x344] sm:$0xf] }
 0x659   : > { %v8092_v38 = vor.u32 %v9029_v26, %v8089_v37  ;;  %v7900_v17 = vor.u32 %v8981_v14, %v7897_v15  ;;  %v8137_v26 = vld [vmem:[%s9828_s2 + $0x530] sm:$0xf0]  ;;  %v8932_v14 = vld [vmem:[%s9828_s2 + $0x1b4] sm:$0xf0] }
 0x65a   : > { %5439 = vmatpush.bf16.msra.mxu2 %v7788_v32  ;;  %5414 = vmatpush.bf16.msra.mxu0 %v7516_v49  ;;  %v7964_v32 = vor.u32 %v8997_v31, %v7961_v27  ;;  %v7945_v49 = vld [vmem:[%s9828_s2 + $0x3b0] sm:$0xf0]  ;;  %v9005_v27 = vld [vmem:[%s9828_s2 + $0x404] sm:$0xf] }
 0x65b   : > { %5448 = vmatpush.bf16.msra.mxu3 %v7980_v22  ;;  %v9009_v22 = vld [vmem:[%s9828_s2 + $0x424] sm:$0xf] }
 0x65c   : > { %5427 = vmatpush.bf16.msra.mxu1 %v7644_v63  ;;  %v7948_v63 = vor.u32 %v8993_v48, %v7945_v49  ;;  %v9097_v48 = vld [vmem:[%s9828_s2 + $0x6e4] sm:$0xf]  ;;  %v8361_v49 = vld [vmem:[%s9828_s2 + $0x6f0] sm:$0xf0] }
 0x65e   : > { %5440 = vmatpush.bf16.msra.mxu2 %v7772_v34  ;;  %5415 = vmatpush.bf16.msra.mxu0 %v7500_v0  ;;  %v7929_v34 = vld [vmem:[%s9828_s2 + $0x390] sm:$0xf0] }
 0x65f   : > { %5449 = vmatpush.bf16.msra.mxu3 %v7964_v32  ;;  %v7932_v55 = vor.u32 %v8989_v52, %v7929_v34  ;;  %v7993_v32 = vld [vmem:[%s9828_s2 + $0x410] sm:$0xf0]  ;;  %v8364_v52 = vor.u32 %v9097_v48, %v8361_v49  ;;  %v9077_v48 = vld [vmem:[%s9828_s2 + $0x644] sm:$0xf] }
 0x660   : > { %5428 = vmatpush.bf16.msra.mxu1 %v7628_v41  ;;  %v8985_v41 = vld [vmem:[%s9828_s2 + $0x364] sm:$0xf]  ;;  %v8281_v49 = vld [vmem:[%s9828_s2 + $0x650] sm:$0xf0] }
 0x661   : > { %v3646_v0 = vpop.f32.mrf.mxu0  ;;  %v7916_v6 = vor.u32 %v8985_v41, %v7913_v60  ;;  %v7583_v41 = vld [vmem:[%s9828_s2 + $0xc8] sm:$0xf]  ;;  %v8904_v60 = vld [vmem:[%s9828_s2 + $0xd4] sm:$0xf0] }
 0x662   : > { %5441 = vmatpush.bf16.msra.mxu2 %v7756_v13  ;;  %5416 = vmatpush.bf16.msra.mxu0 %v7484_v20  ;;  %v3647_v43 = vadd.f32 %v3646_v0, %v2035_v54  ;;  %v8153_v13 = vld [vmem:[%s9828_s2 + $0x550] sm:$0xf0]  ;;  %v8028_v20 = vor.u32 %v9013_v5, %v8025_v8  ;;  %v7868_v54 = vor.u32 %v8973_v58, %v7865_v51  ;;  %v9089_v5 = vld [vmem:[%s9828_s2 + $0x6a4] sm:$0xf]  ;;  %v7567_v8 = vld [vmem:[%s9828_s2 + $0xa8] sm:$0xf] }
 0x663   : > { %5450 = vmatpush.bf16.msra.mxu3 %v7948_v63  ;;  %v3659_v1 = vpop.f32.mrf.mxu1  ;;  %v7599_v63 = vld [vmem:[%s9828_s2 + $0xe8] sm:$0xf]  ;;  %v8345_v0 = vld [vmem:[%s9828_s2 + $0x6d0] sm:$0xf0]  ;;  %v8284_v58 = vor.u32 %v9077_v48, %v8281_v49  ;;  %v9064_v49 = vld [vmem:[%s9828_s2 + $0x5d4] sm:$0xf0] }
 0x664   : > { %5429 = vmatpush.bf16.msra.mxu1 %v7612_v21  ;;  %v3660_v7 = vadd.f32 %v3659_v1, %v3647_v43  ;;  %v8156_v21 = vor.u32 %v9045_v12, %v8153_v13  ;;  %v7711_v43 = vld [vmem:[%s9828_s2 + $0x1c8] sm:$0xf]  ;;  %v8936_v1 = vld [vmem:[%s9828_s2 + $0x1d4] sm:$0xf0] }
 0x665   : > { %5417 = vmatmul.bf16.vlgmr.msra.gmra.mxu0 %v10837_v25  ;;  %v8900_v12 = vld [vmem:[%s9828_s2 + $0xb4] sm:$0xf0]  ;;  %v7695_v13 = vld [vmem:[%s9828_s2 + $0x1a8] sm:$0xf] }
 0x666   : > { %5461 = vmatpush.bf16.msrb.mxu0 %v8108_v24  ;;  %5442 = vmatpush.bf16.msra.mxu2 %v7740_v53  ;;  %v8009_v24 = vld [vmem:[%s9828_s2 + $0x430] sm:$0xf0]  ;;  %v8223_v48 = vld [vmem:[%s9828_s2 + $0x5c8] sm:$0xf] }
 0x667   : > { %5451 = vmatpush.bf16.msra.mxu3 %v7932_v55  ;;  %5430 = vmatmul.bf16.vlgmr.msra.gmra.mxu1 %v10839_v4  ;;  %v7881_v53 = vld [vmem:[%s9828_s2 + $0x330] sm:$0xf0]  ;;  %v8012_v46 = vor.u32 %v9009_v22, %v8009_v24  ;;  %v7679_v22 = vld [vmem:[%s9828_s2 + $0x188] sm:$0xf]  ;;  %v8928_v24 = vld [vmem:[%s9828_s2 + $0x194] sm:$0xf0] }
 0x668   : > { %5474 = vmatpush.bf16.msrb.mxu1 %v8236_v28  ;;  %v9041_v28 = vld [vmem:[%s9828_s2 + $0x524] sm:$0xf]  ;;  %v7884_v39 = vor.u32 %v8977_v30, %v7881_v53  ;;  %v8297_v53 = vld [vmem:[%s9828_s2 + $0x670] sm:$0xf0] }
 0x669   : > { %v3648_v29 = vpop.f32.mrf.mxu0  ;;  %v8140_v47 = vor.u32 %v9041_v28, %v8137_v26  ;;  %v2036_v28 = vperm.slane %v10861_v23, 7  ;;  %v9081_v30 = vld [vmem:[%s9828_s2 + $0x664] sm:$0xf] }
 0x66a   : > { %5462 = vmatpush.bf16.msrb.mxu0 %v8092_v38  ;;  %v9037_v38 = vld [vmem:[%s9828_s2 + $0x504] sm:$0xf]  ;;  %v7680_v29 = vor.u32 %v8928_v24, %v7679_v22 }
 0x66b   : > { %5452 = vmatpush.bf16.msra.mxu3 %v7916_v6  ;;  %v3672_v11 = vpop.f32.mrf.mxu2  ;;  %v3661_v31 = vpop.f32.mrf.mxu1  ;;  %v8348_v6 = vor.u32 %v9093_v62, %v8345_v0  ;;  %v8916_v62 = vld [vmem:[%s9828_s2 + $0x134] sm:$0xf0] }
 0x66c   : > { %5475 = vmatpush.bf16.msrb.mxu1 %v8220_v35  ;;  %v3673_v18 = vadd.f32 %v3672_v11, %v3660_v7  ;;  %v8121_v35 = vld [vmem:[%s9828_s2 + $0x510] sm:$0xf0]  ;;  %v7568_v11 = vor.u32 %v8900_v12, %v7567_v8  ;;  %v7535_v31 = vld [vmem:[%s9828_s2 + $0x68] sm:$0xf] }
 0x66d   : > { %v3685_v19 = vpop.f32.mrf.mxu3  ;;  %v8329_v7 = vld [vmem:[%s9828_s2 + $0x6b0] sm:$0xf0]  ;;  %v7487_v12 = vld [vmem:[%s9828_s2 + $0x8] sm:$0xf] }
 0x66e   : > { %5463 = vmatpush.bf16.msrb.mxu0 %v8076_v36  ;;  %v3686_v37 = vadd.f32 %v3685_v19, %v3673_v18  ;;  %v8908_v36 = vld [vmem:[%s9828_s2 + $0xf4] sm:$0xf0]  ;;  %v8332_v15 = vor.u32 %v9089_v5, %v8329_v7  ;;  %v9085_v18 = vld [vmem:[%s9828_s2 + $0x684] sm:$0xf]  ;;  %v8313_v19 = vld [vmem:[%s9828_s2 + $0x690] sm:$0xf0] }
 0x66f   : > { %5453 = vmatpush.bf16.msra.mxu3 %v7900_v17  ;;  %v7600_v40 = vor.u32 %v8908_v36, %v7599_v63  ;;  %v7696_v17 = vor.u32 %v8932_v14, %v7695_v13  ;;  %v8316_v26 = vor.u32 %v9085_v18, %v8313_v19  ;;  %v7519_v63 = vld [vmem:[%s9828_s2 + $0x48] sm:$0xf]  ;;  %v8888_v36 = vld [vmem:[%s9828_s2 + $0x54] sm:$0xf0]  ;;  %v8249_v5 = vld [vmem:[%s9828_s2 + $0x610] sm:$0xf0] }
 0x670   : > { %5476 = vmatpush.bf16.msrb.mxu1 %v8204_v42  ;;  %v3747_v45 = vmul.f32 0.01, %v3686_v37  ;;  %v7727_v42 = vld [vmem:[%s9828_s2 + $0x1e8] sm:$0xf]  ;;  %v7520_v51 = vor.u32 %v8888_v36, %v7519_v63  ;;  %v9129_v7 = vld [vmem:[%s9828_s2 + $0x7e4] sm:$0xf] }
 0x671   : > { %v7728_v61 = vor.u32 %v8940_v33, %v7727_v42  ;;  %v7647_v42 = vld [vmem:[%s9828_s2 + $0x148] sm:$0xf]  ;;  %v8489_v8 = vld [vmem:[%s9828_s2 + $0x7f0] sm:$0xf0]  ;;  %v8880_v13 = vld [vmem:[%s9828_s2 + $0x14] sm:$0xf0] }
 0x672   : > { %5464 = vmatpush.bf16.msrb.mxu0 %v8060_v56  ;;  %v3755_v50 = vmax.f32 %v3686_v37, %v3747_v45  ;;  %v7996_v56 = vor.u32 %v9005_v27, %v7993_v32  ;;  %v8892_v27 = vld [vmem:[%s9828_s2 + $0x74] sm:$0xf0]  ;;  %v7663_v32 = vld [vmem:[%s9828_s2 + $0x168] sm:$0xf]  ;;  %v8300_v45 = vor.u32 %v9081_v30, %v8297_v53  ;;  %v7488_v24 = vor.u32 %v8880_v13, %v7487_v12  ;;  %v9113_v12 = vld [vmem:[%s9828_s2 + $0x764] sm:$0xf] }
 0x673   : > { %5454 = vmatpush.bf16.msra.mxu3 %v7884_v39  ;;  %v3674_v34 = vpop.f32.mrf.mxu2  ;;  %v7615_v14 = vld [vmem:[%s9828_s2 + $0x108] sm:$0xf]  ;;  %v8972_v19 = vld [vmem:[%s9828_s2 + $0x2f4] sm:$0xf0]  ;;  %v8492_v30 = vor.u32 %v9129_v7, %v8489_v8  ;;  %v8425_v13 = vld [vmem:[%s9828_s2 + $0x770] sm:$0xf0] }
 0x674   : > { %5477 = vmatpush.bf16.msrb.mxu1 %v8188_v57  ;;  %v11018_v55 = vpack.c.bf16 %v3755_v50, %v3755_v50  ;;  %v8124_v57 = vor.u32 %v9037_v38, %v8121_v35  ;;  %v8924_v38 = vld [vmem:[%s9828_s2 + $0x174] sm:$0xf0]  ;;  %v9073_v34 = vld [vmem:[%s9828_s2 + $0x624] sm:$0xf] }
 0x675   : > { %v3687_v59 = vpop.f32.mrf.mxu3  ;;  %v8920_v50 = vld [vmem:[%s9828_s2 + $0x154] sm:$0xf0] }
 0x676   : > { %5465 = vmatpush.bf16.msrb.mxu0 %v8044_v2  ;;  %5391 = vmatmul.bf16.vlgmr.msrb.gmra.mxu2 %v11018_v55  ;;  %v7584_v2 = vor.u32 %v8904_v60, %v7583_v41 }
 0x677   : > { %5455 = vmatpush.bf16.msra.mxu3 %v7868_v54  ;;  %5487 = vmatpush.bf16.msrb.mxu2 %v8364_v52  ;;  %v7648_v52 = vor.u32 %v8920_v50, %v7647_v42  ;;  %v8265_v54 = vld [vmem:[%s9828_s2 + $0x630] sm:$0xf0]  ;;  %v9121_v50 = vld [vmem:[%s9828_s2 + $0x7a4] sm:$0xf] }
 0x678   : > { %5478 = vmatpush.bf16.msrb.mxu1 %v8172_v3  ;;  %v7712_v3 = vor.u32 %v8936_v1, %v7711_v43  ;;  %v8268_v43 = vor.u32 %v9073_v34, %v8265_v54  ;;  %v9069_v1 = vld [vmem:[%s9828_s2 + $0x604] sm:$0xf]  ;;  %v8079_v34 = vld [vmem:[%s9828_s2 + $0x4a8] sm:$0xf]  ;;  %v9028_v54 = vld [vmem:[%s9828_s2 + $0x4b4] sm:$0xf0] }
 0x679   : > { %v8252_v18 = vor.u32 %v9069_v1, %v8249_v5  ;;  %v8063_v1 = vld [vmem:[%s9828_s2 + $0x488] sm:$0xf] }
 0x67a   : > { %5466 = vmatpush.bf16.msrb.mxu0 %v8028_v20  ;;  %v7551_v20 = vld [vmem:[%s9828_s2 + $0x88] sm:$0xf] }
 0x67b   : > { %5488 = vmatpush.bf16.msrb.mxu2 %v8348_v6 }
 0x67c   : > { %5479 = vmatpush.bf16.msrb.mxu1 %v8156_v21  ;;  %v8896_v21 = vld [vmem:[%s9828_s2 + $0x94] sm:$0xf0] }
 0x67d   : > { %v7552_v37 = vor.u32 %v8896_v21, %v7551_v20  ;;  %v8111_v20 = vld [vmem:[%s9828_s2 + $0x4e8] sm:$0xf]  ;;  %v9036_v21 = vld [vmem:[%s9828_s2 + $0x4f4] sm:$0xf0] }
 0x67e   : > { %5467 = vmatpush.bf16.msrb.mxu0 %v8012_v46  ;;  %v7536_v46 = vor.u32 %v8892_v27, %v7535_v31 }
 0x67f   : > { %5489 = vmatpush.bf16.msrb.mxu2 %v8332_v15 }
 0x680   : > { %5480 = vmatpush.bf16.msrb.mxu1 %v8140_v47  ;;  %v7664_v47 = vor.u32 %v8924_v38, %v7663_v32  ;;  %v8112_v32 = vor.u32 %v9036_v21, %v8111_v20  ;;  %v9125_v38 = vld [vmem:[%s9828_s2 + $0x7c4] sm:$0xf]  ;;  %v8175_v21 = vld [vmem:[%s9828_s2 + $0x568] sm:$0xf] }
 0x682   : > { %5468 = vmatpush.bf16.msrb.mxu0 %v7996_v56  ;;  %v3698_v35 = vpop.f32.mrf.mxu0  ;;  %v7503_v56 = vld [vmem:[%s9828_s2 + $0x28] sm:$0xf] }
 0x683   : > { %v3699_v23 = vadd.f32 %v3698_v35, %v2036_v28  ;;  %5490 = vmatpush.bf16.msrb.mxu2 %v8316_v26  ;;  %v8239_v28 = vld [vmem:[%s9828_s2 + $0x5e8] sm:$0xf]  ;;  %v9068_v26 = vld [vmem:[%s9828_s2 + $0x5f4] sm:$0xf0]  ;;  %v8473_v35 = vld [vmem:[%s9828_s2 + $0x7d0] sm:$0xf0] }
 0x684   : > { %5481 = vmatpush.bf16.msrb.mxu1 %v8124_v57  ;;  %v3711_v39 = vpop.f32.mrf.mxu1  ;;  %v8476_v63 = vor.u32 %v9125_v38, %v8473_v35  ;;  %v8031_v38 = vld [vmem:[%s9828_s2 + $0x448] sm:$0xf]  ;;  %v9016_v35 = vld [vmem:[%s9828_s2 + $0x454] sm:$0xf0] }
 0x685   : > { %5469 = vmatmul.bf16.vlgmr.msrb.gmra.mxu0 %v10902_v44  ;;  %v3712_v33 = vadd.f32 %v3711_v39, %v3699_v23  ;;  %v7839_v39 = vld [vmem:[%s9828_s2 + $0x2c8] sm:$0xf]  ;;  %v8240_v23 = vor.u32 %v9068_v26, %v8239_v28  ;;  %v8428_v28 = vor.u32 %v9113_v12, %v8425_v13 }
 0x686   : > { %5513 = vmatpush.bf16.msra.mxu0 %v7600_v40  ;;  %5443 = vmatmul.bf16.vlgmr.msra.gmra.mxu2 %v10842_v9  ;;  %v8884_v40 = vld [vmem:[%s9828_s2 + $0x34] sm:$0xf0]  ;;  %v8367_v12 = vld [vmem:[%s9828_s2 + $0x6e8] sm:$0xf] }
 0x687   : > { %5482 = vmatmul.bf16.vlgmr.msrb.gmra.mxu1 %v10961_v16  ;;  %5491 = vmatpush.bf16.msrb.mxu2 %v8300_v45  ;;  %v8968_v45 = vld [vmem:[%s9828_s2 + $0x2d4] sm:$0xf0] }
 0x688   : > { %5526 = vmatpush.bf16.msra.mxu1 %v7728_v61  ;;  %v7631_v61 = vld [vmem:[%s9828_s2 + $0x128] sm:$0xf]  ;;  %v7840_v36 = vor.u32 %v8968_v45, %v7839_v39 }
 0x689   : > { %v8159_v39 = vld [vmem:[%s9828_s2 + $0x548] sm:$0xf] }
 0x68a   : > { %5514 = vmatpush.bf16.msra.mxu0 %v7584_v2  ;;  %v3700_v41 = vpop.f32.mrf.mxu0  ;;  %v7504_v2 = vor.u32 %v8884_v40, %v7503_v56  ;;  %v8207_v56 = vld [vmem:[%s9828_s2 + $0x5a8] sm:$0xf] }
 0x68b   : > { %5492 = vmatpush.bf16.msrb.mxu2 %v8284_v58  ;;  %v7823_v58 = vld [vmem:[%s9828_s2 + $0x2a8] sm:$0xf] }
 0x68c   : > { %5527 = vmatpush.bf16.msra.mxu1 %v7712_v3  ;;  %v3724_v57 = vpop.f32.mrf.mxu2  ;;  %v3713_v60 = vpop.f32.mrf.mxu1  ;;  %v7632_v3 = vor.u32 %v8916_v62, %v7631_v61  ;;  %v8080_v61 = vor.u32 %v9028_v54, %v8079_v34  ;;  %v9117_v62 = vld [vmem:[%s9828_s2 + $0x784] sm:$0xf]  ;;  %v7807_v41 = vld [vmem:[%s9828_s2 + $0x288] sm:$0xf] }
 0x68d   : > { %v3725_v0 = vadd.f32 %v3724_v57, %v3712_v33  ;;  %v8457_v33 = vld [vmem:[%s9828_s2 + $0x7b0] sm:$0xf0]  ;;  %v9060_v57 = vld [vmem:[%s9828_s2 + $0x5b4] sm:$0xf0]  ;;  %v8143_v54 = vld [vmem:[%s9828_s2 + $0x528] sm:$0xf] }
 0x68e   : > { %5515 = vmatpush.bf16.msra.mxu0 %v7568_v11  ;;  %v3737_v59 = vpop.f32.mrf.mxu3  ;;  %v8912_v11 = vld [vmem:[%s9828_s2 + $0x114] sm:$0xf0]  ;;  %v8208_v60 = vor.u32 %v9060_v57, %v8207_v56 }
 0x68f   : > { %v3738_v6 = vadd.f32 %v3737_v59, %v3725_v0  ;;  %5493 = vmatpush.bf16.msrb.mxu2 %v8268_v43  ;;  %v7616_v53 = vor.u32 %v8912_v11, %v7615_v14  ;;  %v8460_v59 = vor.u32 %v9121_v50, %v8457_v33  ;;  %v8441_v0 = vld [vmem:[%s9828_s2 + $0x790] sm:$0xf0]  ;;  %v8960_v43 = vld [vmem:[%s9828_s2 + $0x294] sm:$0xf0]  ;;  %v7791_v14 = vld [vmem:[%s9828_s2 + $0x268] sm:$0xf] }
 0x690   : > { %5528 = vmatpush.bf16.msra.mxu1 %v7696_v17  ;;  %v7855_v17 = vld [vmem:[%s9828_s2 + $0x2e8] sm:$0xf]  ;;  %v8444_v5 = vor.u32 %v9117_v62, %v8441_v0  ;;  %v7808_v7 = vor.u32 %v8960_v43, %v7807_v41  ;;  %v8948_v33 = vld [vmem:[%s9828_s2 + $0x234] sm:$0xf0] }
 0x691   : > { %v3748_v15 = vmul.f32 0.01, %v3738_v6  ;;  %v7856_v27 = vor.u32 %v8972_v19, %v7855_v17  ;;  %v8956_v17 = vld [vmem:[%s9828_s2 + $0x274] sm:$0xf0] }
 0x692   : > { %5516 = vmatpush.bf16.msra.mxu0 %v7552_v37  ;;  %v9020_v19 = vld [vmem:[%s9828_s2 + $0x474] sm:$0xf0]  ;;  %v7792_v26 = vor.u32 %v8956_v17, %v7791_v14 }
 0x693   : > { %v3756_v22 = vmax.f32 %v3738_v6, %v3748_v15  ;;  %5494 = vmatpush.bf16.msrb.mxu2 %v8252_v18  ;;  %v9024_v6 = vld [vmem:[%s9828_s2 + $0x494] sm:$0xf0]  ;;  %v8047_v18 = vld [vmem:[%s9828_s2 + $0x468] sm:$0xf] }
 0x694   : > { %5529 = vmatpush.bf16.msra.mxu1 %v7680_v29  ;;  %v3726_v37 = vpop.f32.mrf.mxu2  ;;  %v8064_v8 = vor.u32 %v9024_v6, %v8063_v1  ;;  %v9044_v56 = vld [vmem:[%s9828_s2 + $0x534] sm:$0xf0]  ;;  %v7983_v1 = vld [vmem:[%s9828_s2 + $0x3e8] sm:$0xf] }
 0x695   : > { %v11075_v31 = vpack.c.bf16 %v3756_v22, %v3756_v22  ;;  %v9052_v22 = vld [vmem:[%s9828_s2 + $0x574] sm:$0xf0]  ;;  %v8048_v37 = vor.u32 %v9020_v19, %v8047_v18  ;;  %v8144_v6 = vor.u32 %v9044_v56, %v8143_v54  ;;  %v8938_v19 = vld [vmem:[%s9828_s2 + $0x1ec] sm:$0xf]  ;;  %v7935_v56 = vld [vmem:[%s9828_s2 + $0x388] sm:$0xf] }
 0x696   : > { %5517 = vmatpush.bf16.msra.mxu0 %v7536_v46  ;;  %v3739_v29 = vpop.f32.mrf.mxu3  ;;  %v8095_v46 = vld [vmem:[%s9828_s2 + $0x4c8] sm:$0xf]  ;;  %5495 = vmatmul.bf16.vlgmr.msrb.gmra.mxu2 %v11018_v55  ;;  %v8944_v43 = vld [vmem:[%s9828_s2 + $0x214] sm:$0xf0] }
 0x697   : > { %5404 = vmatmul.bf16.vlgmr.msrb.gmra.mxu3 %v11075_v31  ;;  %5539 = vmatpush.bf16.msra.mxu2 %v7856_v27  ;;  %v9109_v29 = vld [vmem:[%s9828_s2 + $0x744] sm:$0xf]  ;;  %v8176_v27 = vor.u32 %v9052_v22, %v8175_v21  ;;  %v9100_v14 = vld [vmem:[%s9828_s2 + $0x6f4] sm:$0xf0] }
 0x698   : > { %5530 = vmatpush.bf16.msra.mxu1 %v7664_v47  ;;  %v9032_v47 = vld [vmem:[%s9828_s2 + $0x4d4] sm:$0xf0]  ;;  %5500 = vmatpush.bf16.msrb.mxu3 %v8492_v30  ;;  %v8409_v30 = vld [vmem:[%s9828_s2 + $0x750] sm:$0xf0] }
 0x699   : > { %v8096_v42 = vor.u32 %v9032_v47, %v8095_v46  ;;  %v8412_v45 = vor.u32 %v9109_v29, %v8409_v30  ;;  %v8032_v47 = vor.u32 %v9016_v35, %v8031_v38  ;;  %v9000_v29 = vld [vmem:[%s9828_s2 + $0x3d4] sm:$0xf0]  ;;  %v8351_v30 = vld [vmem:[%s9828_s2 + $0x6c8] sm:$0xf]  ;;  %v7585_v38 = vld [vmem:[%s9828_s2 + $0xd8] sm:$0xf0] }
 0x69a   : > { %5518 = vmatpush.bf16.msra.mxu0 %v7520_v51  ;;  %v8224_v51 = vor.u32 %v9064_v49, %v8223_v48  ;;  %v9105_v48 = vld [vmem:[%s9828_s2 + $0x724] sm:$0xf]  ;;  %v8393_v49 = vld [vmem:[%s9828_s2 + $0x730] sm:$0xf0] }
 0x69b   : > { %5540 = vmatpush.bf16.msra.mxu2 %v7840_v36 }
 0x69c   : > { %5531 = vmatpush.bf16.msra.mxu1 %v7648_v52  ;;  %v8964_v52 = vld [vmem:[%s9828_s2 + $0x2b4] sm:$0xf0]  ;;  %5501 = vmatpush.bf16.msrb.mxu3 %v8476_v63  ;;  %v7759_v63 = vld [vmem:[%s9828_s2 + $0x228] sm:$0xf] }
 0x69d   : > { %v7824_v40 = vor.u32 %v8964_v52, %v7823_v58  ;;  %v8015_v58 = vld [vmem:[%s9828_s2 + $0x428] sm:$0xf]  ;;  %v7760_v0 = vor.u32 %v8948_v33, %v7759_v63  ;;  %v7569_v33 = vld [vmem:[%s9828_s2 + $0xb8] sm:$0xf0] }
 0x69e   : > { %5519 = vmatpush.bf16.msra.mxu0 %v7504_v2  ;;  %v8191_v2 = vld [vmem:[%s9828_s2 + $0x588] sm:$0xf] }
 0x69f   : > { %5541 = vmatpush.bf16.msra.mxu2 %v7824_v40  ;;  %v9101_v40 = vld [vmem:[%s9828_s2 + $0x704] sm:$0xf]  ;;  %v8335_v63 = vld [vmem:[%s9828_s2 + $0x6a8] sm:$0xf] }
 0x6a0   : > { %5532 = vmatpush.bf16.msra.mxu1 %v7632_v3  ;;  %v9056_v3 = vld [vmem:[%s9828_s2 + $0x594] sm:$0xf0]  ;;  %5502 = vmatpush.bf16.msrb.mxu3 %v8460_v59  ;;  %v8396_v59 = vor.u32 %v9105_v48, %v8393_v49  ;;  %v7951_v48 = vld [vmem:[%s9828_s2 + $0x3a8] sm:$0xf] }
 0x6a1   : > { %v8192_v11 = vor.u32 %v9056_v3, %v8191_v2  ;;  %v9004_v2 = vld [vmem:[%s9828_s2 + $0x3f4] sm:$0xf0]  ;;  %v7999_v3 = vld [vmem:[%s9828_s2 + $0x408] sm:$0xf] }
 0x6a2   : > { %5520 = vmatpush.bf16.msra.mxu0 %v7488_v24  ;;  %v5314_v15 = vpop.f32.mrf.mxu0  ;;  %v7984_v18 = vor.u32 %v9004_v2, %v7983_v1  ;;  %v8996_v49 = vld [vmem:[%s9828_s2 + $0x3b4] sm:$0xf0] }
 0x6a3   : > { %5542 = vmatpush.bf16.msra.mxu2 %v7808_v7  ;;  %v8127_v7 = vld [vmem:[%s9828_s2 + $0x508] sm:$0xf] }
 0x6a4   : > { %5533 = vmatpush.bf16.msra.mxu1 %v7616_v53  ;;  %v5327_v20 = vpop.f32.mrf.mxu1  ;;  %5503 = vmatpush.bf16.msrb.mxu3 %v8444_v5  ;;  %v7775_v53 = vld [vmem:[%s9828_s2 + $0x248] sm:$0xf]  ;;  %v9008_v5 = vld [vmem:[%s9828_s2 + $0x414] sm:$0xf0] }
 0x6a5   : > { %5521 = vmatmul.bf16.vlgmr.msra.gmra.mxu0 %v10837_v25  ;;  %v5328_v24 = vadd.f32 %v5327_v20, %v5314_v15  ;;  %v8906_v15 = vld [vmem:[%s9828_s2 + $0xec] sm:$0xf]  ;;  %v7729_v20 = vld [vmem:[%s9828_s2 + $0x1f8] sm:$0xf0]  ;;  %v8000_v22 = vor.u32 %v9008_v5, %v7999_v3  ;;  %v7919_v3 = vld [vmem:[%s9828_s2 + $0x368] sm:$0xf] }
 0x6a6   : > { %5565 = vmatpush.bf16.msrb.mxu0 %v8112_v32  ;;  %v8952_v32 = vld [vmem:[%s9828_s2 + $0x254] sm:$0xf0] }
 0x6a7   : > { %5534 = vmatmul.bf16.vlgmr.msra.gmra.mxu1 %v10839_v4  ;;  %5456 = vmatmul.bf16.vlgmr.msra.gmra.mxu3 %v10844_v10  ;;  %v7776_v46 = vor.u32 %v8952_v32, %v7775_v53  ;;  %v7732_v53 = vor.u32 %v8938_v19, %v7729_v20  ;;  %v8902_v32 = vld [vmem:[%s9828_s2 + $0xcc] sm:$0xf]  ;;  %v8988_v5 = vld [vmem:[%s9828_s2 + $0x374] sm:$0xf0] }
 0x6a8   : > { %5578 = vmatpush.bf16.msrb.mxu1 %v8240_v23  ;;  %v9048_v23 = vld [vmem:[%s9828_s2 + $0x554] sm:$0xf0]  ;;  %5504 = vmatpush.bf16.msrb.mxu3 %v8428_v28  ;;  %v8368_v28 = vor.u32 %v9100_v14, %v8367_v12  ;;  %v8890_v14 = vld [vmem:[%s9828_s2 + $0x6c] sm:$0xf]  ;;  %v7920_v19 = vor.u32 %v8988_v5, %v7919_v3 }
 0x6a9   : > { %5543 = vmatpush.bf16.msra.mxu2 %v7792_v26  ;;  %v8160_v50 = vor.u32 %v9048_v23, %v8159_v39  ;;  %v8934_v39 = vld [vmem:[%s9828_s2 + $0x1cc] sm:$0xf]  ;;  %v7713_v23 = vld [vmem:[%s9828_s2 + $0x1d8] sm:$0xf0] }
 0x6aa   : > { %5566 = vmatpush.bf16.msrb.mxu0 %v8096_v42  ;;  %v5316_v42 = vpop.f32.mrf.mxu0  ;;  %v9066_v5 = vld [vmem:[%s9828_s2 + $0x5ec] sm:$0xf] }
 0x6ab   : > { %v9092_v42 = vld [vmem:[%s9828_s2 + $0x6b4] sm:$0xf0] }
 0x6ac   : > { %5579 = vmatpush.bf16.msrb.mxu1 %v8224_v51  ;;  %v5340_v36 = vpop.f32.mrf.mxu2  ;;  %v9012_v51 = vld [vmem:[%s9828_s2 + $0x434] sm:$0xf0]  ;;  %v5329_v34 = vpop.f32.mrf.mxu1  ;;  %5505 = vmatpush.bf16.msrb.mxu3 %v8412_v45 }
 0x6ad   : > { %v5341_v52 = vadd.f32 %v5340_v36, %v5328_v24  ;;  %5544 = vmatpush.bf16.msra.mxu2 %v7776_v46  ;;  %v8016_v41 = vor.u32 %v9012_v51, %v8015_v58  ;;  %v7716_v36 = vor.u32 %v8934_v39, %v7713_v23  ;;  %v8930_v58 = vld [vmem:[%s9828_s2 + $0x1ac] sm:$0xf]  ;;  %v7697_v51 = vld [vmem:[%s9828_s2 + $0x1b8] sm:$0xf0]  ;;  %v8336_v34 = vor.u32 %v9092_v42, %v8335_v63  ;;  %v8980_v39 = vld [vmem:[%s9828_s2 + $0x334] sm:$0xf0] }
 0x6ae   : > { %5567 = vmatpush.bf16.msrb.mxu0 %v8080_v61  ;;  %v5353_v57 = vpop.f32.mrf.mxu3  ;;  %v8377_v61 = vld [vmem:[%s9828_s2 + $0x710] sm:$0xf0]  ;;  %v8271_v23 = vld [vmem:[%s9828_s2 + $0x628] sm:$0xf]  ;;  %v8914_v63 = vld [vmem:[%s9828_s2 + $0x12c] sm:$0xf] }
 0x6af   : > { %v11132_v62 = vadd.f32 %v5353_v57, %v5341_v52  ;;  %v8380_v13 = vor.u32 %v9101_v40, %v8377_v61  ;;  %v7952_v52 = vor.u32 %v8996_v49, %v7951_v48  ;;  %v8992_v57 = vld [vmem:[%s9828_s2 + $0x394] sm:$0xf0]  ;;  %v7700_v40 = vor.u32 %v8930_v58, %v7697_v51  ;;  %v7505_v48 = vld [vmem:[%s9828_s2 + $0x38] sm:$0xf0] }
 0x6b0   : > { %5580 = vmatpush.bf16.msrb.mxu1 %v8208_v60  ;;  %v7743_v60 = vld [vmem:[%s9828_s2 + $0x208] sm:$0xf]  ;;  %5506 = vmatpush.bf16.msrb.mxu3 %v8396_v59  ;;  %v9088_v61 = vld [vmem:[%s9828_s2 + $0x694] sm:$0xf0]  ;;  %v7936_v1 = vor.u32 %v8992_v57, %v7935_v56 }
 0x6b1   : > { %5545 = vmatpush.bf16.msra.mxu2 %v7760_v0  ;;  %v7744_v17 = vor.u32 %v8944_v43, %v7743_v60  ;;  %v8319_v59 = vld [vmem:[%s9828_s2 + $0x688] sm:$0xf]  ;;  %v8894_v0 = vld [vmem:[%s9828_s2 + $0x8c] sm:$0xf]  ;;  %v7681_v43 = vld [vmem:[%s9828_s2 + $0x198] sm:$0xf0] }
 0x6b2   : > { %5568 = vmatpush.bf16.msrb.mxu0 %v8064_v8  ;;  %v9040_v8 = vld [vmem:[%s9828_s2 + $0x514] sm:$0xf0]  ;;  %v8926_v60 = vld [vmem:[%s9828_s2 + $0x18c] sm:$0xf] }
 0x6b3   : > { %v8128_v24 = vor.u32 %v9040_v8, %v8127_v7  ;;  %v8303_v7 = vld [vmem:[%s9828_s2 + $0x668] sm:$0xf]  ;;  %v7684_v12 = vor.u32 %v8926_v60, %v7681_v43  ;;  %v9132_v57 = vld [vmem:[%s9828_s2 + $0x7f4] sm:$0xf0]  ;;  %v7857_v43 = vld [vmem:[%s9828_s2 + $0x2f8] sm:$0xf0] }
 0x6b4   : > { %5581 = vmatpush.bf16.msrb.mxu1 %v8192_v11  ;;  %v7601_v11 = vld [vmem:[%s9828_s2 + $0xf8] sm:$0xf0]  ;;  %v5342_v21 = vpop.f32.mrf.mxu2  ;;  %5507 = vmatpush.bf16.msrb.mxu3 %v8380_v13  ;;  %v9084_v13 = vld [vmem:[%s9828_s2 + $0x674] sm:$0xf0] }
 0x6b5   : > { %v7604_v26 = vor.u32 %v8906_v15, %v7601_v11  ;;  %5546 = vmatpush.bf16.msra.mxu2 %v7744_v17  ;;  %v7537_v15 = vld [vmem:[%s9828_s2 + $0x78] sm:$0xf0]  ;;  %v8922_v17 = vld [vmem:[%s9828_s2 + $0x16c] sm:$0xf]  ;;  %v8304_v20 = vor.u32 %v9084_v13, %v8303_v7 }
 0x6b6   : > { %5569 = vmatpush.bf16.msrb.mxu0 %v8048_v37  ;;  %v7967_v37 = vld [vmem:[%s9828_s2 + $0x3c8] sm:$0xf]  ;;  %v5355_v35 = vpop.f32.mrf.mxu3  ;;  %v7540_v21 = vor.u32 %v8890_v14, %v7537_v15  ;;  %v8241_v7 = vld [vmem:[%s9828_s2 + $0x5f8] sm:$0xf0] }
 0x6b7   : > { %v7968_v45 = vor.u32 %v9000_v29, %v7967_v37  ;;  %5508 = vmatmul.bf16.vlgmr.msrb.gmra.mxu3 %v11075_v31  ;;  %v8886_v37 = vld [vmem:[%s9828_s2 + $0x4c] sm:$0xf]  ;;  %v7521_v29 = vld [vmem:[%s9828_s2 + $0x58] sm:$0xf0]  ;;  %v7887_v35 = vld [vmem:[%s9828_s2 + $0x328] sm:$0xf] }
 0x6b8   : > { %5582 = vmatpush.bf16.msrb.mxu1 %v8176_v27  ;;  %v9096_v27 = vld [vmem:[%s9828_s2 + $0x6d4] sm:$0xf0]  ;;  %5552 = vmatpush.bf16.msra.mxu3 %v7984_v18  ;;  %v7665_v18 = vld [vmem:[%s9828_s2 + $0x178] sm:$0xf0]  ;;  %v7888_v42 = vor.u32 %v8980_v39, %v7887_v35  ;;  %v8479_v15 = vld [vmem:[%s9828_s2 + $0x7c8] sm:$0xf] }
 0x6b9   : > { %5591 = vmatpush.bf16.msrb.mxu2 %v8368_v28  ;;  %v8352_v46 = vor.u32 %v9096_v27, %v8351_v30  ;;  %v8287_v28 = vld [vmem:[%s9828_s2 + $0x648] sm:$0xf]  ;;  %v8918_v30 = vld [vmem:[%s9828_s2 + $0x14c] sm:$0xf]  ;;  %v8081_v35 = vld [vmem:[%s9828_s2 + $0x4b8] sm:$0xf0] }
 0x6ba   : > { %5570 = vmatpush.bf16.msrb.mxu0 %v8032_v47  ;;  %v7588_v47 = vor.u32 %v8902_v32, %v7585_v38  ;;  %5547 = vmatmul.bf16.vlgmr.msra.gmra.mxu2 %v10842_v9  ;;  %v7524_v38 = vor.u32 %v8886_v37, %v7521_v29  ;;  %v8463_v29 = vld [vmem:[%s9828_s2 + $0x7a8] sm:$0xf] }
 0x6bc   : > { %5583 = vmatpush.bf16.msrb.mxu1 %v8160_v50  ;;  %v8898_v50 = vld [vmem:[%s9828_s2 + $0xac] sm:$0xf]  ;;  %5553 = vmatpush.bf16.msra.mxu3 %v7968_v45 }
 0x6bd   : > { %5592 = vmatpush.bf16.msrb.mxu2 %v8352_v46  ;;  %v7572_v54 = vor.u32 %v8898_v50, %v7569_v33  ;;  %v9076_v46 = vld [vmem:[%s9828_s2 + $0x634] sm:$0xf0]  ;;  %v7871_v50 = vld [vmem:[%s9828_s2 + $0x308] sm:$0xf] }
 0x6be   : > { %5571 = vmatpush.bf16.msrb.mxu0 %v8016_v41  ;;  %v7553_v41 = vld [vmem:[%s9828_s2 + $0x98] sm:$0xf0]  ;;  %v8976_v33 = vld [vmem:[%s9828_s2 + $0x314] sm:$0xf0]  ;;  %v8272_v58 = vor.u32 %v9076_v46, %v8271_v23  ;;  %v9058_v23 = vld [vmem:[%s9828_s2 + $0x5ac] sm:$0xf] }
 0x6bf   : > { %v7556_v2 = vor.u32 %v8894_v0, %v7553_v41  ;;  %v7617_v0 = vld [vmem:[%s9828_s2 + $0x118] sm:$0xf0]  ;;  %v8970_v41 = vld [vmem:[%s9828_s2 + $0x2ec] sm:$0xf]  ;;  %v7872_v60 = vor.u32 %v8976_v33, %v7871_v50 }
 0x6c0   : > { %5584 = vmatpush.bf16.msrb.mxu1 %v8144_v6  ;;  %5554 = vmatpush.bf16.msra.mxu3 %v7952_v52  ;;  %v8320_v6 = vor.u32 %v9088_v61, %v8319_v59  ;;  %v8255_v52 = vld [vmem:[%s9828_s2 + $0x608] sm:$0xf]  ;;  %v8878_v59 = vld [vmem:[%s9828_s2 + $0xc] sm:$0xf]  ;;  %v7860_v13 = vor.u32 %v8970_v41, %v7857_v43  ;;  %v8065_v33 = vld [vmem:[%s9828_s2 + $0x498] sm:$0xf0] }
 0x6c1   : > { %5593 = vmatpush.bf16.msrb.mxu2 %v8336_v34  ;;  %v9072_v34 = vld [vmem:[%s9828_s2 + $0x614] sm:$0xf0]  ;;  %v8910_v61 = vld [vmem:[%s9828_s2 + $0x10c] sm:$0xf]  ;;  %v8049_v41 = vld [vmem:[%s9828_s2 + $0x478] sm:$0xf0] }
 0x6c2   : > { %5572 = vmatpush.bf16.msrb.mxu0 %v8000_v22  ;;  %v5366_v8 = vpop.f32.mrf.mxu0  ;;  %v7903_v22 = vld [vmem:[%s9828_s2 + $0x348] sm:$0xf]  ;;  %v9022_v50 = vld [vmem:[%s9828_s2 + $0x48c] sm:$0xf] }
 0x6c3   : > { %v11183_v11 = vadd.f32 %v5366_v8, %v11132_v62  ;;  %v7668_v62 = vor.u32 %v8922_v17, %v7665_v18  ;;  %v9128_v17 = vld [vmem:[%s9828_s2 + $0x7d4] sm:$0xf0]  ;;  %v8966_v18 = vld [vmem:[%s9828_s2 + $0x2cc] sm:$0xf] }
 0x6c4   : > { %5585 = vmatpush.bf16.msrb.mxu1 %v8128_v24  ;;  %5555 = vmatpush.bf16.msra.mxu3 %v7936_v1  ;;  %v8984_v24 = vld [vmem:[%s9828_s2 + $0x354] sm:$0xf0]  ;;  %v9034_v1 = vld [vmem:[%s9828_s2 + $0x4ec] sm:$0xf] }
 0x6c5   : > { %5573 = vmatmul.bf16.vlgmr.msrb.gmra.mxu0 %v10902_v44  ;;  %5594 = vmatpush.bf16.msrb.mxu2 %v8320_v6  ;;  %v7904_v27 = vor.u32 %v8984_v24, %v7903_v22  ;;  %v8113_v6 = vld [vmem:[%s9828_s2 + $0x4f8] sm:$0xf0]  ;;  %v9062_v24 = vld [vmem:[%s9828_s2 + $0x5cc] sm:$0xf] }
 0x6c6   : > { %5617 = vmatpush.bf16.msra.mxu0 %v7604_v26  ;;  %v9080_v26 = vld [vmem:[%s9828_s2 + $0x654] sm:$0xf0]  ;;  %v8116_v14 = vor.u32 %v9034_v1, %v8113_v6  ;;  %v8097_v22 = vld [vmem:[%s9828_s2 + $0x4d8] sm:$0xf0]  ;;  %v9050_v43 = vld [vmem:[%s9828_s2 + $0x56c] sm:$0xf] }
 0x6c7   : > { %5586 = vmatmul.bf16.vlgmr.msrb.gmra.mxu1 %v10961_v16  ;;  %v8288_v32 = vor.u32 %v9080_v26, %v8287_v28  ;;  %v8225_v28 = vld [vmem:[%s9828_s2 + $0x5d8] sm:$0xf0] }
 0x6c8   : > { %5630 = vmatpush.bf16.msra.mxu1 %v7732_v53  ;;  %v7649_v53 = vld [vmem:[%s9828_s2 + $0x158] sm:$0xf0]  ;;  %5556 = vmatpush.bf16.msra.mxu3 %v7920_v19  ;;  %v8244_v19 = vor.u32 %v9066_v5, %v8241_v7  ;;  %v8415_v5 = vld [vmem:[%s9828_s2 + $0x748] sm:$0xf]  ;;  %v9112_v7 = vld [vmem:[%s9828_s2 + $0x754] sm:$0xf0] }
 0x6c9   : > { %5595 = vmatpush.bf16.msrb.mxu2 %v8304_v20  ;;  %v7652_v45 = vor.u32 %v8918_v30, %v7649_v53  ;;  %v7841_v20 = vld [vmem:[%s9828_s2 + $0x2d8] sm:$0xf0]  ;;  %v9124_v30 = vld [vmem:[%s9828_s2 + $0x7b4] sm:$0xf0]  ;;  %v8962_v53 = vld [vmem:[%s9828_s2 + $0x2ac] sm:$0xf] }
 0x6ca   : > { %5618 = vmatpush.bf16.msra.mxu0 %v7588_v47  ;;  %v8882_v47 = vld [vmem:[%s9828_s2 + $0x2c] sm:$0xf]  ;;  %v5368_v49 = vpop.f32.mrf.mxu0  ;;  %v7844_v26 = vor.u32 %v8966_v18, %v7841_v20  ;;  %v8464_v46 = vor.u32 %v9124_v30, %v8463_v29  ;;  %v8177_v1 = vld [vmem:[%s9828_s2 + $0x578] sm:$0xf0] }
 0x6cb   : > { %v7508_v51 = vor.u32 %v8882_v47, %v7505_v48  ;;  %v8447_v49 = vld [vmem:[%s9828_s2 + $0x788] sm:$0xf]  ;;  %v8161_v18 = vld [vmem:[%s9828_s2 + $0x558] sm:$0xf0]  ;;  %v9010_v29 = vld [vmem:[%s9828_s2 + $0x42c] sm:$0xf] }
 0x6cc   : > { %5631 = vmatpush.bf16.msra.mxu1 %v7716_v36  ;;  %v7633_v36 = vld [vmem:[%s9828_s2 + $0x138] sm:$0xf0]  ;;  %5557 = vmatpush.bf16.msra.mxu3 %v7904_v27  ;;  %v8228_v27 = vor.u32 %v9062_v24, %v8225_v28  ;;  %v8399_v24 = vld [vmem:[%s9828_s2 + $0x728] sm:$0xf]  ;;  %v9108_v28 = vld [vmem:[%s9828_s2 + $0x734] sm:$0xf0] }
 0x6cd   : > { %5596 = vmatpush.bf16.msrb.mxu2 %v8288_v32  ;;  %v7636_v56 = vor.u32 %v8914_v63, %v7633_v36  ;;  %v7825_v32 = vld [vmem:[%s9828_s2 + $0x2b8] sm:$0xf0]  ;;  %v9120_v63 = vld [vmem:[%s9828_s2 + $0x794] sm:$0xf0] }
 0x6ce   : > { %5619 = vmatpush.bf16.msra.mxu0 %v7572_v54  ;;  %v8495_v54 = vld [vmem:[%s9828_s2 + $0x7e8] sm:$0xf]  ;;  %v7828_v47 = vor.u32 %v8962_v53, %v7825_v32  ;;  %v8017_v30 = vld [vmem:[%s9828_s2 + $0x438] sm:$0xf0]  ;;  %v9042_v53 = vld [vmem:[%s9828_s2 + $0x52c] sm:$0xf]  ;;  %v8400_v32 = vor.u32 %v9108_v28, %v8399_v24 }
 0x6cf   : > { %v8496_v3 = vor.u32 %v9132_v57, %v8495_v54  ;;  %v8068_v54 = vor.u32 %v9022_v50, %v8065_v33  ;;  %v9116_v57 = vld [vmem:[%s9828_s2 + $0x774] sm:$0xf0]  ;;  %v8001_v50 = vld [vmem:[%s9828_s2 + $0x418] sm:$0xf0]  ;;  %v9038_v33 = vld [vmem:[%s9828_s2 + $0x50c] sm:$0xf] }
 0x6d0   : > { %5632 = vmatpush.bf16.msra.mxu1 %v7700_v40  ;;  %v7489_v40 = vld [vmem:[%s9828_s2 + $0x18] sm:$0xf0]  ;;  %5558 = vmatpush.bf16.msra.mxu3 %v7888_v42 }
 0x6d1   : > { %5597 = vmatpush.bf16.msrb.mxu2 %v8272_v58  ;;  %v7492_v8 = vor.u32 %v8878_v59, %v7489_v40  ;;  %v7809_v42 = vld [vmem:[%s9828_s2 + $0x298] sm:$0xf0]  ;;  %v8954_v59 = vld [vmem:[%s9828_s2 + $0x26c] sm:$0xf] }
 0x6d2   : > { %5620 = vmatpush.bf16.msra.mxu0 %v7556_v2  ;;  %v8256_v2 = vor.u32 %v9072_v34, %v8255_v52  ;;  %v8193_v58 = vld [vmem:[%s9828_s2 + $0x598] sm:$0xf0] }
 0x6d4   : > { %5633 = vmatpush.bf16.msra.mxu1 %v7684_v12  ;;  %v7620_v12 = vor.u32 %v8910_v61, %v7617_v0  ;;  %5559 = vmatpush.bf16.msra.mxu3 %v7872_v60  ;;  %v11236_v39 = vpop.f32.mrf.mxu1  ;;  %v7793_v61 = vld [vmem:[%s9828_s2 + $0x278] sm:$0xf0]  ;;  %v9018_v0 = vld [vmem:[%s9828_s2 + $0x46c] sm:$0xf] }
 0x6d5   : > { %5598 = vmatpush.bf16.msrb.mxu2 %v8256_v2  ;;  %v7796_v2 = vor.u32 %v8954_v59, %v7793_v61  ;;  %v7969_v61 = vld [vmem:[%s9828_s2 + $0x3d8] sm:$0xf0] }
 0x6d6   : > { %5621 = vmatpush.bf16.msra.mxu0 %v7540_v21  ;;  %v9030_v21 = vld [vmem:[%s9828_s2 + $0x4cc] sm:$0xf] }
 0x6d7   : > { %v8100_v37 = vor.u32 %v9030_v21, %v8097_v22  ;;  %5560 = vmatmul.bf16.vlgmr.msra.gmra.mxu3 %v10844_v10 }
 0x6d8   : > { %5634 = vmatpush.bf16.msra.mxu1 %v7668_v62  ;;  %5604 = vmatpush.bf16.msrb.mxu3 %v8496_v3  ;;  %v8480_v62 = vor.u32 %v9128_v17, %v8479_v15  ;;  %v8052_v3 = vor.u32 %v9018_v0, %v8049_v41  ;;  %v8033_v15 = vld [vmem:[%s9828_s2 + $0x458] sm:$0xf0]  ;;  %v9046_v17 = vld [vmem:[%s9828_s2 + $0x54c] sm:$0xf] }
 0x6d9   : > { %5643 = vmatpush.bf16.msra.mxu2 %v7860_v13  ;;  %v7777_v13 = vld [vmem:[%s9828_s2 + $0x258] sm:$0xf0]  ;;  %v9094_v41 = vld [vmem:[%s9828_s2 + $0x6cc] sm:$0xf] }
 0x6da   : > { %5622 = vmatpush.bf16.msra.mxu0 %v7524_v38  ;;  %v9026_v38 = vld [vmem:[%s9828_s2 + $0x4ac] sm:$0xf]  ;;  %5599 = vmatmul.bf16.vlgmr.msrb.gmra.mxu2 %v11018_v55 }
 0x6db   : > { %v8084_v48 = vor.u32 %v9026_v38, %v8081_v35  ;;  %v8383_v35 = vld [vmem:[%s9828_s2 + $0x708] sm:$0xf] }
 0x6dc   : > { %5635 = vmatpush.bf16.msra.mxu1 %v7652_v45  ;;  %v8209_v45 = vld [vmem:[%s9828_s2 + $0x5b8] sm:$0xf0]  ;;  %5605 = vmatpush.bf16.msrb.mxu3 %v8480_v62  ;;  %v5381_v60 = vpop.f32.mrf.mxu1  ;;  %v8946_v62 = vld [vmem:[%s9828_s2 + $0x22c] sm:$0xf] }
 0x6dd   : > { %5644 = vmatpush.bf16.msra.mxu2 %v7844_v26  ;;  %v8212_v36 = vor.u32 %v9058_v23, %v8209_v45  ;;  %v8164_v26 = vor.u32 %v9046_v17, %v8161_v18  ;;  %v8353_v60 = vld [vmem:[%s9828_s2 + $0x6d8] sm:$0xf0] }
 0x6de   : > { %5623 = vmatpush.bf16.msra.mxu0 %v7508_v51  ;;  %v8448_v51 = vor.u32 %v9120_v63, %v8447_v49  ;;  %v7745_v49 = vld [vmem:[%s9828_s2 + $0x218] sm:$0xf0] }
 0x6e0   : > { %5636 = vmatpush.bf16.msra.mxu1 %v7636_v56  ;;  %5606 = vmatpush.bf16.msrb.mxu3 %v8464_v46  ;;  %v8431_v56 = vld [vmem:[%s9828_s2 + $0x768] sm:$0xf]  ;;  %v8020_v46 = vor.u32 %v9010_v29, %v8017_v30  ;;  %v8289_v29 = vld [vmem:[%s9828_s2 + $0x658] sm:$0xf0] }
 0x6e1   : > { %5645 = vmatpush.bf16.msra.mxu2 %v7828_v47  ;;  %v8432_v6 = vor.u32 %v9116_v57, %v8431_v56  ;;  %v9104_v47 = vld [vmem:[%s9828_s2 + $0x714] sm:$0xf0] }
 0x6e2   : > { %5624 = vmatpush.bf16.msra.mxu0 %v7492_v8  ;;  %v5418_v52 = vpop.f32.mrf.mxu0  ;;  %v8950_v8 = vld [vmem:[%s9828_s2 + $0x24c] sm:$0xf] }
 0x6e3   : > { %v7780_v21 = vor.u32 %v8950_v8, %v7777_v13  ;;  %v7937_v13 = vld [vmem:[%s9828_s2 + $0x398] sm:$0xf0] }
 0x6e4   : > { %5637 = vmatpush.bf16.msra.mxu1 %v7620_v12  ;;  %5607 = vmatpush.bf16.msrb.mxu3 %v8448_v51  ;;  %v8180_v12 = vor.u32 %v9050_v43, %v8177_v1  ;;  %v5431_v38 = vpop.f32.mrf.mxu1  ;;  %v9098_v51 = vld [vmem:[%s9828_s2 + $0x6ec] sm:$0xf]  ;;  %v8356_v1 = vor.u32 %v9094_v41, %v8353_v60  ;;  %v8449_v41 = vld [vmem:[%s9828_s2 + $0x798] sm:$0xf0]  ;;  %v5380_v60 = vadd.f32 %v11236_v39, %v11183_v11 }
 0x6e5   : > { %5625 = vmatmul.bf16.vlgmr.msra.gmra.mxu0 %v10837_v25  ;;  %v8958_v25 = vld [vmem:[%s9828_s2 + $0x28c] sm:$0xf]  ;;  %v11274_v45 = vadd.f32 %v5431_v38, %v5418_v52  ;;  %v8369_v52 = vld [vmem:[%s9828_s2 + $0x6f8] sm:$0xf0] }
 0x6e6   : > { %5669 = vmatpush.bf16.msrb.mxu0 %v8116_v14  ;;  %v7812_v34 = vor.u32 %v8958_v25, %v7809_v42  ;;  %v9014_v14 = vld [vmem:[%s9828_s2 + $0x44c] sm:$0xf]  ;;  %v8372_v59 = vor.u32 %v9098_v51, %v8369_v52 }
 0x6e7   : > { %5638 = vmatmul.bf16.vlgmr.msra.gmra.mxu1 %v10839_v4  ;;  %v9054_v4 = vld [vmem:[%s9828_s2 + $0x58c] sm:$0xf]  ;;  %v8036_v22 = vor.u32 %v9014_v14, %v8033_v15  ;;  %v8321_v15 = vld [vmem:[%s9828_s2 + $0x698] sm:$0xf0] }
 0x6e8   : > { %5682 = vmatpush.bf16.msrb.mxu1 %v8244_v19  ;;  %v8196_v40 = vor.u32 %v9054_v4, %v8193_v58  ;;  %5646 = vmatpush.bf16.msra.mxu2 %v7812_v34  ;;  %v8416_v19 = vor.u32 %v9112_v7, %v8415_v5  ;;  %v9002_v25 = vld [vmem:[%s9828_s2 + $0x3ec] sm:$0xf]  ;;  %v8129_v4 = vld [vmem:[%s9828_s2 + $0x518] sm:$0xf0]  ;;  %v8384_v58 = vor.u32 %v9104_v47, %v8383_v35 }
 0x6e9   : > { %5608 = vmatpush.bf16.msrb.mxu3 %v8432_v6  ;;  %v9006_v42 = vld [vmem:[%s9828_s2 + $0x40c] sm:$0xf]  ;;  %v8132_v57 = vor.u32 %v9038_v33, %v8129_v4  ;;  %v8337_v5 = vld [vmem:[%s9828_s2 + $0x6b8] sm:$0xf0] }
 0x6ea   : > { %5670 = vmatpush.bf16.msrb.mxu0 %v8100_v37  ;;  %v5420_v20 = vpop.f32.mrf.mxu0  ;;  %v7761_v37 = vld [vmem:[%s9828_s2 + $0x238] sm:$0xf0]  ;;  %v8004_v56 = vor.u32 %v9006_v42, %v8001_v50  ;;  %v8994_v6 = vld [vmem:[%s9828_s2 + $0x3ac] sm:$0xf] }
 0x6eb   : > { %v7764_v23 = vor.u32 %v8946_v62, %v7761_v37  ;;  %v9086_v14 = vld [vmem:[%s9828_s2 + $0x68c] sm:$0xf]  ;;  %v7921_v20 = vld [vmem:[%s9828_s2 + $0x378] sm:$0xf0] }
 0x6ec   : > { %5683 = vmatpush.bf16.msrb.mxu1 %v8228_v27  ;;  %5647 = vmatpush.bf16.msra.mxu2 %v7796_v2  ;;  %v8145_v27 = vld [vmem:[%s9828_s2 + $0x538] sm:$0xf0]  ;;  %v5433_v0 = vpop.f32.mrf.mxu1  ;;  %v8324_v17 = vor.u32 %v9086_v14, %v8321_v15  ;;  %v8982_v62 = vld [vmem:[%s9828_s2 + $0x34c] sm:$0xf] }
 0x6ed   : > { %5609 = vmatpush.bf16.msrb.mxu3 %v8416_v19  ;;  %v8148_v63 = vor.u32 %v9042_v53, %v8145_v27  ;;  %v7953_v2 = vld [vmem:[%s9828_s2 + $0x3b8] sm:$0xf0]  ;;  %v8986_v19 = vld [vmem:[%s9828_s2 + $0x36c] sm:$0xf] }
 0x6ee   : > { %5671 = vmatpush.bf16.msrb.mxu0 %v8084_v48  ;;  %v8942_v48 = vld [vmem:[%s9828_s2 + $0x20c] sm:$0xf]  ;;  %v7956_v7 = vor.u32 %v8994_v6, %v7953_v2  ;;  %v7924_v24 = vor.u32 %v8986_v19, %v7921_v20  ;;  %v8273_v47 = vld [vmem:[%s9828_s2 + $0x638] sm:$0xf0] }
 0x6ef   : > { %v7748_v34 = vor.u32 %v8942_v48, %v7745_v49  ;;  %v9078_v37 = vld [vmem:[%s9828_s2 + $0x64c] sm:$0xf]  ;;  %v8257_v42 = vld [vmem:[%s9828_s2 + $0x618] sm:$0xf0] }
 0x6f0   : > { %5684 = vmatpush.bf16.msrb.mxu1 %v8212_v36  ;;  %5648 = vmatpush.bf16.msra.mxu2 %v7780_v21  ;;  %v7985_v36 = vld [vmem:[%s9828_s2 + $0x3f8] sm:$0xf0]  ;;  %v9082_v21 = vld [vmem:[%s9828_s2 + $0x66c] sm:$0xf] }
 0x6f1   : > { %5610 = vmatpush.bf16.msrb.mxu3 %v8400_v32  ;;  %v8292_v32 = vor.u32 %v9078_v37, %v8289_v29  ;;  %v8978_v35 = vld [vmem:[%s9828_s2 + $0x32c] sm:$0xf]  ;;  %v8497_v33 = vld [vmem:[%s9828_s2 + $0x7f8] sm:$0xf0] }
 0x6f2   : > { %5672 = vmatpush.bf16.msrb.mxu0 %v8068_v54  ;;  %v7988_v54 = vor.u32 %v9002_v25, %v7985_v36  ;;  %v7873_v25 = vld [vmem:[%s9828_s2 + $0x318] sm:$0xf0]  ;;  %v9070_v36 = vld [vmem:[%s9828_s2 + $0x60c] sm:$0xf] }
 0x6f3   : > { %v9130_v50 = vld [vmem:[%s9828_s2 + $0x7ec] sm:$0xf]  ;;  %v8417_v14 = vld [vmem:[%s9828_s2 + $0x758] sm:$0xf0] }
 0x6f4   : > { %5685 = vmatpush.bf16.msrb.mxu1 %v8196_v40  ;;  %5649 = vmatpush.bf16.msra.mxu2 %v7764_v23  ;;  %v8998_v40 = vld [vmem:[%s9828_s2 + $0x3cc] sm:$0xf]  ;;  %v7889_v23 = vld [vmem:[%s9828_s2 + $0x338] sm:$0xf0]  ;;  %v8500_v51 = vor.u32 %v9130_v50, %v8497_v33 }
 0x6f5   : > { %5611 = vmatpush.bf16.msrb.mxu3 %v8384_v58  ;;  %v7972_v43 = vor.u32 %v8998_v40, %v7969_v61  ;;  %v7892_v48 = vor.u32 %v8978_v35, %v7889_v23  ;;  %v8260_v58 = vor.u32 %v9070_v36, %v8257_v42  ;;  %v9118_v0 = vld [vmem:[%s9828_s2 + $0x78c] sm:$0xf]  ;;  %v8401_v19 = vld [vmem:[%s9828_s2 + $0x738] sm:$0xf0] }
 0x6f6   : > { %5673 = vmatpush.bf16.msrb.mxu0 %v8052_v3  ;;  %v9090_v3 = vld [vmem:[%s9828_s2 + $0x6ac] sm:$0xf] }
 0x6f7   : > { %v8340_v8 = vor.u32 %v9090_v3, %v8337_v5  ;;  %v9114_v2 = vld [vmem:[%s9828_s2 + $0x76c] sm:$0xf]  ;;  %v8433_v3 = vld [vmem:[%s9828_s2 + $0x778] sm:$0xf0] }
 0x6f8   : > { %5686 = vmatpush.bf16.msrb.mxu1 %v8180_v12  ;;  %5650 = vmatpush.bf16.msra.mxu2 %v7748_v34  ;;  %v8990_v12 = vld [vmem:[%s9828_s2 + $0x38c] sm:$0xf] }
 0x6f9   : > { %5656 = vmatpush.bf16.msra.mxu3 %v7988_v54  ;;  %v5392_v18 = vpop.f32.mrf.mxu2  ;;  %v9126_v34 = vld [vmem:[%s9828_s2 + $0x7cc] sm:$0xf]  ;;  %v8481_v54 = vld [vmem:[%s9828_s2 + $0x7d8] sm:$0xf0] }
 0x6fa   : > { %5674 = vmatpush.bf16.msrb.mxu0 %v8036_v22  ;;  %5612 = vmatmul.bf16.vlgmr.msrb.gmra.mxu3 %v11075_v31  ;;  %v8305_v22 = vld [vmem:[%s9828_s2 + $0x678] sm:$0xf0]  ;;  %v5393_v5 = vadd.f32 %v5392_v18, %v5380_v60  ;;  %v9106_v18 = vld [vmem:[%s9828_s2 + $0x72c] sm:$0xf] }
 0x6fb   : > { %5651 = vmatmul.bf16.vlgmr.msra.gmra.mxu2 %v10842_v9  ;;  %v8308_v28 = vor.u32 %v9082_v21, %v8305_v22  ;;  %v8404_v21 = vor.u32 %v9106_v18, %v8401_v19  ;;  %v9102_v22 = vld [vmem:[%s9828_s2 + $0x70c] sm:$0xf] }
 0x6fc   : > { %5687 = vmatpush.bf16.msrb.mxu1 %v8164_v26  ;;  %5695 = vmatpush.bf16.msrb.mxu2 %v8372_v59  ;;  %v7905_v26 = vld [vmem:[%s9828_s2 + $0x358] sm:$0xf0] }
 0x6fd   : > { %5657 = vmatpush.bf16.msra.mxu3 %v7972_v43  ;;  %v7908_v27 = vor.u32 %v8982_v62, %v7905_v26  ;;  %v8465_v59 = vld [vmem:[%s9828_s2 + $0x7b8] sm:$0xf0]  ;;  %v8452_v43 = vor.u32 %v9118_v0, %v8449_v41 }
 0x6fe   : > { %5675 = vmatpush.bf16.msrb.mxu0 %v8020_v46  ;;  %v9074_v46 = vld [vmem:[%s9828_s2 + $0x62c] sm:$0xf] }
 0x6ff   : > { %v8276_v49 = vor.u32 %v9074_v46, %v8273_v47  ;;  %v3758_v46 = vld [vmem:[#allocation3 + $0x18] sm:$0xff] }
 0x700   : > { %5688 = vmatpush.bf16.msrb.mxu1 %v8148_v63  ;;  %5696 = vmatpush.bf16.msrb.mxu2 %v8356_v1  ;;  %v8974_v63 = vld [vmem:[%s9828_s2 + $0x30c] sm:$0xf] }
 0x701   : > { %5658 = vmatpush.bf16.msra.mxu3 %v7956_v7  ;;  %v5394_v38 = vpop.f32.mrf.mxu2  ;;  %v7876_v4 = vor.u32 %v8974_v63, %v7873_v25 }
 0x702   : > { %5676 = vmatpush.bf16.msrb.mxu0 %v8004_v56  ;;  %v11303_v9 = vpop.f32.mrf.mxu0  ;;  %v8484_v56 = vor.u32 %v9126_v34, %v8481_v54 }
 0x704   : > { %5689 = vmatpush.bf16.msrb.mxu1 %v8132_v57  ;;  %5697 = vmatpush.bf16.msrb.mxu2 %v8340_v8  ;;  %v9122_v57 = vld [vmem:[%s9828_s2 + $0x7ac] sm:$0xf] }
 0x705   : > { %5677 = vmatmul.bf16.vlgmr.msrb.gmra.mxu0 %v10902_v44  ;;  %v11305_v44 = vpop.f32.mrf.mxu1  ;;  %v8468_v40 = vor.u32 %v9122_v57, %v8465_v59 }
 0x707   : > { %5690 = vmatmul.bf16.vlgmr.msrb.gmra.mxu1 %v10961_v16  ;;  %v7940_v16 = vor.u32 %v8990_v12, %v7937_v13  ;;  %v8436_v12 = vor.u32 %v9114_v2, %v8433_v3  ;;  %v9110_v13 = vld [vmem:[%s9828_s2 + $0x74c] sm:$0xf] }
 0x708   : > { %5698 = vmatpush.bf16.msrb.mxu2 %v8324_v17  ;;  %v8420_v15 = vor.u32 %v9110_v13, %v8417_v14 }
 0x709   : > { %5659 = vmatpush.bf16.msra.mxu3 %v7940_v16  ;;  %v5444_v52 = vpop.f32.mrf.mxu2 }
 0x70a   : > { %v5472_v30 = vpop.f32.mrf.mxu0  ;;  %v5445_v37 = vadd.f32 %v5444_v52, %v11274_v45 }
 0x70c   : > { %5699 = vmatpush.bf16.msrb.mxu2 %v8308_v28 }
 0x70d   : > { %5660 = vmatpush.bf16.msra.mxu3 %v7924_v24  ;;  %v5485_v53 = vpop.f32.mrf.mxu1  ;;  %v8385_v24 = vld [vmem:[%s9828_s2 + $0x718] sm:$0xf0] }
 0x70e   : > { %v8388_v62 = vor.u32 %v9102_v22, %v8385_v24 }
 0x710   : > { %5700 = vmatpush.bf16.msrb.mxu2 %v8292_v32 }
 0x711   : > { %5661 = vmatpush.bf16.msra.mxu3 %v7908_v27  ;;  %v5446_v61 = vpop.f32.mrf.mxu2 }
 0x712   : > { %v3759_v61 = vld [vmem:[#allocation3 + $0x8] sm:$0xff] }
 0x714   : > { %5701 = vmatpush.bf16.msrb.mxu2 %v8276_v49 }
 0x715   : > { %5662 = vmatpush.bf16.msra.mxu3 %v7892_v48 }
 0x718   : > { %5702 = vmatpush.bf16.msrb.mxu2 %v8260_v58 }
 0x719   : > { %5663 = vmatpush.bf16.msra.mxu3 %v7876_v4  ;;  %v5496_v39 = vpop.f32.mrf.mxu2 }
 0x71a   : > { %v5405_v7 = vpop.f32.mrf.mxu3 }
 0x71b   : > { %5703 = vmatmul.bf16.vlgmr.msrb.gmra.mxu2 %v11018_v55  ;;  %v3757_v55 = vld [vmem:[#allocation3] sm:$0xff]  ;;  %v5406_v8 = vadd.f32 %v5405_v7, %v5393_v5 }
 0x71c   : > { %5664 = vmatmul.bf16.vlgmr.msra.gmra.mxu3 %v10844_v10 }
 0x71d   : > { %5708 = vmatpush.bf16.msrb.mxu3 %v8500_v51  ;;  %v5721_v11 = vadd.f32 %v5406_v8, %v3757_v55 }
 0x71f   : > { %5725 = vst [vmem:[#allocation3] sm:$0xff] %v5721_v11 }
 0x721   : > { %5709 = vmatpush.bf16.msrb.mxu3 %v8484_v56  ;;  %v5498_v28 = vpop.f32.mrf.mxu2 }
 0x722   : > { %v5522_v1 = vpop.f32.mrf.mxu0  ;;  %v5407_v20 = vpop.f32.mrf.mxu3 }
 0x724   : > { %v5535_v6 = vpop.f32.mrf.mxu1 }
 0x725   : > { %5710 = vmatpush.bf16.msrb.mxu3 %v8468_v40  ;;  %v5536_v10 = vadd.f32 %v5535_v6, %v5522_v1 }
 0x729   : > { %5711 = vmatpush.bf16.msrb.mxu3 %v8452_v43 }
 0x72a   : > { %v5524_v16 = vpop.f32.mrf.mxu0  ;;  %v5457_v26 = vpop.f32.mrf.mxu3 }
 0x72b   : > { %v5458_v29 = vadd.f32 %v5457_v26, %v5445_v37 }
 0x72c   : > { %v5537_v17 = vpop.f32.mrf.mxu1 }
 0x72d   : > { %5712 = vmatpush.bf16.msrb.mxu3 %v8436_v12  ;;  %v5471_v53 = vadd.f32 %v11303_v9, %v5458_v29 }
 0x72f   : > { %v5484_v38 = vadd.f32 %v11305_v44, %v5471_v53 }
 0x731   : > { %5713 = vmatpush.bf16.msrb.mxu3 %v8420_v15  ;;  %v5497_v23 = vadd.f32 %v5496_v39, %v5484_v38  ;;  %v3760_v39 = vld [vmem:[#allocation3 + $0x10] sm:$0xff] }
 0x732   : > { %v5459_v30 = vpop.f32.mrf.mxu3 }
 0x735   : > { %5714 = vmatpush.bf16.msrb.mxu3 %v8404_v21 }
 0x739   : > { %5715 = vmatpush.bf16.msrb.mxu3 %v8388_v62 }
 0x73a   : > { %v5509_v47 = vpop.f32.mrf.mxu3 }
 0x73b   : > { %v5510_v48 = vadd.f32 %v5509_v47, %v5497_v23 }
 0x73c   : > { %5716 = vmatmul.bf16.vlgmr.msrb.gmra.mxu3 %v11075_v31 }
 0x73d   : > { %v5548_v35 = vpop.f32.mrf.mxu2  ;;  %v5722_v63 = vadd.f32 %v5510_v48, %v3758_v46 }
 0x73e   : > { %v5549_v52 = vadd.f32 %v5548_v35, %v5536_v10 }
 0x73f   : > { %5726 = vst [vmem:[#allocation3 + $0x18] sm:$0xff] %v5722_v63 }
 0x742   : > { %v5574_v27 = vpop.f32.mrf.mxu0  ;;  %v5511_v36 = vpop.f32.mrf.mxu3 }
 0x744   : > { %v5587_v32 = vpop.f32.mrf.mxu1 }
 0x745   : > { %v5550_v45 = vpop.f32.mrf.mxu2 }
 0x74a   : > { %v5576_v49 = vpop.f32.mrf.mxu0 }
 0x74c   : > { %v5589_v25 = vpop.f32.mrf.mxu1 }
 0x75a   : > { %v5561_v33 = vpop.f32.mrf.mxu3 }
 0x75b   : > { %v5562_v34 = vadd.f32 %v5561_v33, %v5549_v52 }
 0x75d   : > { %v5600_v9 = vpop.f32.mrf.mxu2  ;;  %v5575_v54 = vadd.f32 %v5574_v27, %v5562_v34 }
 0x75f   : > { %v5588_v56 = vadd.f32 %v5587_v32, %v5575_v54 }
 0x761   : > { %v5601_v40 = vadd.f32 %v5600_v9, %v5588_v56 }
 0x762   : > { %v5626_v31 = vpop.f32.mrf.mxu0  ;;  %v5563_v51 = vpop.f32.mrf.mxu3 }
 0x764   : > { %v5639_v42 = vpop.f32.mrf.mxu1 }
 0x765   : > { %v5640_v50 = vadd.f32 %v5639_v42, %v5626_v31  ;;  %v5602_v44 = vpop.f32.mrf.mxu2 }
 0x76a   : > { %v5628_v4 = vpop.f32.mrf.mxu0 }
 0x76c   : > { %v5641_v58 = vpop.f32.mrf.mxu1 }
 0x77d   : > { %v5613_v0 = vpop.f32.mrf.mxu3 }
 0x77e   : > { %v5614_v41 = vadd.f32 %v5613_v0, %v5601_v40  ;;  %v5652_v60 = vpop.f32.mrf.mxu2 }
 0x77f   : > { %v5653_v8 = vadd.f32 %v5652_v60, %v5640_v50 }
 0x780   : > { %v5723_v43 = vadd.f32 %v5614_v41, %v3759_v61 }
 0x782   : > { %v5678_v57 = vpop.f32.mrf.mxu0  ;;  %5727 = vst [vmem:[#allocation3 + $0x8] sm:$0xff] %v5723_v43 }
 0x784   : > { %v5691_v59 = vpop.f32.mrf.mxu1 }
 0x785   : > { %v5615_v2 = vpop.f32.mrf.mxu3 }
 0x786   : > { %v5654_v3 = vpop.f32.mrf.mxu2 }
 0x78a   : > { %v5680_v1 = vpop.f32.mrf.mxu0 }
 0x78c   : > { %v5693_v6 = vpop.f32.mrf.mxu1 }
 0x79e   : > { %v5704_v55 = vpop.f32.mrf.mxu2 }
 0x79f   : > { %v5665_v5 = vpop.f32.mrf.mxu3 }
 0x7a0   : > { %v5666_v12 = vadd.f32 %v5665_v5, %v5653_v8 }
 0x7a2   : > { %v5679_v13 = vadd.f32 %v5678_v57, %v5666_v12 }
 0x7a4   : > { %v5692_v14 = vadd.f32 %v5691_v59, %v5679_v13 }
 0x7a6   : > { %v5706_v10 = vpop.f32.mrf.mxu2  ;;  %v5705_v11 = vadd.f32 %v5704_v55, %v5692_v14 }
 0x7a7   : > { %v5667_v7 = vpop.f32.mrf.mxu3 }
 0x7bf   : > { %v5717_v15 = vpop.f32.mrf.mxu3 }
 0x7c0   : > { %v5718_v16 = vadd.f32 %v5717_v15, %v5705_v11 }
 0x7c2   : > { %v5724_v17 = vadd.f32 %v5718_v16, %v3760_v39 }
 0x7c3   : > { %5732 = sbr.rel (%p8501_p1) target bundleno = 2282 (0x8ea), region = 104 }
 0x7c4   : > { %5728 = vst [vmem:[#allocation3 + $0x10] sm:$0xff] %v5724_v17 }
 0x7c7   : > { %v5719_v18 = vpop.f32.mrf.mxu3 }
 0x7c8   : > { %v5733_v19 = vld [vmem:[#allocation3] sm:$0xff]  ;;  %v5734_v20 = vld [vmem:[#allocation3 + $0x18] sm:$0xff]  ;;  %v5735_v21 = vld [vmem:[#allocation3 + $0x8] sm:$0xff] }
 0x7c9   : > { %v5737_v24 = vld [vmem:[#allocation12] sm:$0xf]  ;;  %v5752_v30 = vld [vmem:[#allocation2] sm:$0xff]  ;;  %v5753_v53 = vld [vmem:[#allocation2 + $0x18] sm:$0xff] }
 0x7ca   : > { %v5739_v28 = vperm.slane %v5737_v24, 0  ;;  %v5740_v62 = vperm.slane %v5737_v24, 1  ;;  %v5741_v26 = vperm.slane %v5737_v24, 2  ;;  %v5742_v37 = vperm.slane %v5737_v24, 3  ;;  %v5751_v29 = vld [vmem:[#allocation2 + $0x10] sm:$0xff]  ;;  %v5754_v23 = vld [vmem:[#allocation2 + $0x8] sm:$0xff] }
 0x7cb   : > { %v5736_v22 = vld [vmem:[#allocation3 + $0x10] sm:$0xff]  ;;  %v5760_v1 = vld [vmem:[#allocation15] sm:$0xf] }
 0x7cc   : > { %v5747_v27 = vadd.f32 %v5739_v28, %v5733_v19  ;;  %v5748_v32 = vadd.f32 %v5740_v62, %v5734_v20  ;;  %v5749_v38 = vadd.f32 %v5741_v26, %v5735_v21  ;;  %v5750_v35 = vadd.f32 %v5742_v37, %v5736_v22  ;;  %v5759_v60 = vld [vmem:[#allocation13] sm:$0xf] }
 0x7cd   : > { %v5797_v2 = vperm.slane %v5759_v60, 0  ;;  %v5798_v3 = vperm.slane %v5759_v60, 1  ;;  %v5799_v5 = vperm.slane %v5759_v60, 2  ;;  %v5800_v55 = vperm.slane %v5759_v60, 3 }
 0x7ce   : > { %v5755_v46 = vadd.f32 %v5751_v29, %v5747_v27  ;;  %v5756_v47 = vadd.f32 %v5752_v30, %v5748_v32  ;;  %v5757_v48 = vadd.f32 %v5753_v53, %v5749_v38  ;;  %v5758_v49 = vadd.f32 %v5754_v23, %v5750_v35 }
 0x7cf   : > { %v5810_v7 = vperm.slane %v5760_v1, 0  ;;  %v5811_v10 = vperm.slane %v5760_v1, 1  ;;  %v5812_v8 = vperm.slane %v5760_v1, 2  ;;  %v5813_v15 = vperm.slane %v5760_v1, 3 }
 0x7d0   : > { %v5761_v63 = vadd.f32 %v5756_v47, %v5755_v46 }
 0x7d2   : > { %v5762_v25 = vadd.f32 %v5761_v63, %v5757_v48 }
 0x7d4   : > { %v5763_v45 = vadd.f32 %v5762_v25, %v5758_v49 }
 0x7d6   : > { %5764 = vadd.xlane.f32.xlu0 %v5763_v45 }
 0x849   : > { %v5765_v36 = vpop.xlane.xlu0 %5764 }
 0x84a   : > { %v5766_v31 = vmul.f32 0.001953125, %v5765_v36 }
 0x84c   : > { %v5767_v42 = vsub.f32 %v5755_v46, %v5766_v31  ;;  %v5768_v50 = vsub.f32 %v5756_v47, %v5766_v31  ;;  %v5769_v33 = vsub.f32 %v5757_v48, %v5766_v31  ;;  %v5770_v9 = vsub.f32 %v5758_v49, %v5766_v31 }
 0x84e   : > { %v5771_v4 = vmul.f32 %v5767_v42, %v5767_v42  ;;  %v5772_v58 = vmul.f32 %v5768_v50, %v5768_v50  ;;  %v5773_v51 = vmul.f32 %v5769_v33, %v5769_v33  ;;  %v5774_v52 = vmul.f32 %v5770_v9, %v5770_v9 }
 0x850   : > { %v5775_v44 = vadd.f32 %v5772_v58, %v5771_v4 }
 0x852   : > { %v5776_v34 = vadd.f32 %v5775_v44, %v5773_v51 }
 0x854   : > { %v5777_v54 = vadd.f32 %v5776_v34, %v5774_v52 }
 0x856   : > { %5778 = vadd.xlane.f32.xlu0 %v5777_v54 }
 0x8c9   : > { %v5779_v56 = vpop.xlane.xlu0 %5778 }
 0x8ca   : > { %v5780_v57 = vmul.f32 0.001953125, %v5779_v56 }
 0x8cc   : > { %v5781_v59 = vadd.f32 1e-05, %v5780_v57 }
 0x8ce   : > { %9253 = vrsqrt.f32 %v5781_v59  ;;  %vm5788_vm7 = vweird.f32 %v5781_v59 }
 0x8d4   : > { %v9254_v40 = vpop.eup %9253 }
 0x8d5   : > { %v5783_v61 = vmul.f32 %v9254_v40, %v5781_v59  ;;  %vm5789_vm6 = vweird.f32 %v9254_v40 }
 0x8d6   : > { %vm5790_vm8 = vmor %vm5788_vm7, %vm5789_vm6 }
 0x8d7   : > { %v5784_v0 = vmul.f32 %v9254_v40, %v5783_v61 }
 0x8d9   : > { %v5785_v41 = vmul.f32 0.5, %v5784_v0 }
 0x8db   : > { %v5786_v43 = vsub.f32 1.5, %v5785_v41 }
 0x8dd   : > { %v5787_v6 = vmul.f32 %v9254_v40, %v5786_v43 }
 0x8df   : > { %v5791_v12 = vsel %vm5790_vm8, %v9254_v40, %v5787_v6 }
 0x8e0   : > { %v5792_v13 = vmul.f32 %v5791_v12, %v5767_v42  ;;  %v5793_v14 = vmul.f32 %v5791_v12, %v5768_v50  ;;  %v5794_v11 = vmul.f32 %v5791_v12, %v5769_v33  ;;  %v5795_v39 = vmul.f32 %v5791_v12, %v5770_v9 }
 0x8e2   : > { %v5805_v16 = vmul.f32 %v5797_v2, %v5792_v13  ;;  %v5806_v17 = vmul.f32 %v5798_v3, %v5793_v14  ;;  %v5807_v18 = vmul.f32 %v5799_v5, %v5794_v11  ;;  %v5808_v19 = vmul.f32 %v5800_v55, %v5795_v39 }
 0x8e4   : > { %v5818_v20 = vadd.f32 %v5810_v7, %v5805_v16  ;;  %v5819_v21 = vadd.f32 %v5811_v10, %v5806_v17  ;;  %v5820_v22 = vadd.f32 %v5812_v8, %v5807_v18  ;;  %v5821_v24 = vadd.f32 %v5813_v15, %v5808_v19 }
 0x8e6   : > { %5822 = vst [vmem:[#allocation16] sm:$0xff] %v5818_v20 }
 0x8e7   : > { %5823 = vst [vmem:[#allocation16 + $0x8] sm:$0xff] %v5819_v21 }
 0x8e8   : > { %5824 = vst [vmem:[#allocation16 + $0x10] sm:$0xff] %v5820_v22 }
 0x8e9   : > { %5825 = vst [vmem:[#allocation16 + $0x18] sm:$0xff] %v5821_v24 }
 0x8ea PF: > { %p9200_p4 = scmp.eq.s32.totalorder %s9670_s21, 1  ;;  %s9590_s24 = smov [#allocation16]  }
 0x8eb   : > { %s5832_s0 = sshll.u32 %s9590_s24, 4  ;;  %s11408_s20 = sld [smem:[#allocation31_spill]]  ;;  %s5833_s0 = int_to_ptr.vmem [resolvable:$true] %s5832_s0 }
 0x8f1   : > { %s5834_s5 = sshll.u32 %s11408_s20, 4  ;;  %s5835_s5 = int_to_ptr.hbm [resolvable:$true] %s5834_s5 }
 0x8f2   : > { %9160 = dma.vmem_to_hbm [thread:$0]  (%p9200_p4), %s5833_s0, 512, %s5835_s5, [#allocation6]  }
 0x8f3   : > { %9560 = dma.done.wait (%p9200_p4), [#allocation6], 512  }
 0x8f4   : > { %9562 = vsyncadd (%p9200_p4), [#allocation6], 4294966784 }
 0x8f5 PF: > { %s11409_s20 = sld [smem:[#allocation23_spill]]  ;;  %s11411_s17 = smov %s9569_s18 }
 0x8f6   : > { %s11410_s15 = sld [smem:[#allocation24_spill]]  ;;  %s11412_s18 = smov %s9573_s19 }
 0x8fb   : > { %p22_p5 = scmp.ge.s32.totalorder %s11409_s20, 4  }
 0x8fc   : > { %s11413_s19 = smov %s11410_s15 }
 0x8fd   :  { %24 = sbr.rel (!%p22_p5) target bundleno = 13 (0xd), region = 150 }
 0x902   :  { %5848 = vsyncpa [#allocation5], 1 }
 0x903   :  { %5850 = vsyncpa [#allocation5 + $0x1], 1 }
 0x904   :  { %5851 = vsyncpa [#allocation8], 1 }
 0x905   :  { %5852 = vsyncpa [#allocation14], 1 }
 0x906   :  { %5853 = vsyncpa [#allocation6], 1 }
 0x907   :  { %5855 = vsyncpa [#allocation6 + $0x1], 1 }

</bundles_post_ra>
